<compile_context>
chip_gen: v6e
topology: v6e:2x2x1
jax: 0.10.0
libtpu: 0.0.40
codegen_flags: <defaults>
</compile_context>

<pallas_src>
import functools

import jax
import jax.numpy as jnp
from jax.experimental import pallas as pl
from jax.experimental.pallas import tpu as pltpu

# ---- small, fixed model config (Python constants -> fully static/unrolled kernel) ----
BATCH = 2
SEQ = 8
CHANNELS = 4      # channel_num == LSTM input_size for Encoder and Decoder
HIDDEN = 32
LAYERS = 2
OUT = 8           # output_size

BP = 8                      # batch rows padded to one f32 sublane tile
IN_PAD = 2 * HIDDEN         # layer-0 input zero-padded to the layer>=1 input width (64)
GW = 8 * HIDDEN             # fused gate lanes: [i_f,i_b | f_f,f_b | o_f,o_b | g_f,g_b] = 256
BLK = 2 * HIDDEN            # rows per packed weight block (64)
assert CHANNELS <= IN_PAD


# ---- static row offsets into the packed bf16 weight array (every block is BLK rows) ----
def _enc_wa(l):  return (3 * l + 0) * BLK      # layer-l fused input weight, "same step" half
def _enc_wb(l):  return (3 * l + 1) * BLK      # layer-l fused input weight, "reversed step" half
def _enc_whh(l): return (3 * l + 2) * BLK      # layer-l block-diagonal recurrent weight
_DEC0 = 3 * LAYERS * BLK
def _dec_wih0(): return _DEC0                  # decoder layer-0 input weight (both dirs summed)
def _dec_whh0(): return _DEC0 + BLK
def _dec_wfi(l): return _DEC0 + (2 * l) * BLK          # l >= 1: input half of fused weight
def _dec_wfh(l): return _DEC0 + (2 * l + 1) * BLK      # l >= 1: recurrent half
W_ROWS = _DEC0 + 2 * LAYERS * BLK                      # 640 rows x 256 lanes (bf16)


# ----------------------------------------------------------------------------------------
# Kernel
# ----------------------------------------------------------------------------------------
def seq2seq_kernel(data_ref, bias_ref, wts_ref, lw_ref, lb_ref, out_ref,
                   hs_ref, p_ref, q_ref):
    H, L, S = HIDDEN, LAYERS, SEQ
    dot = functools.partial(jnp.dot, preferred_element_type=jnp.float32)
    bf16 = lambda v: v.astype(jnp.bfloat16)

    # fused gate layout over 8H lanes: [i_f,i_b | f_f,f_b | o_f,o_b | g_f,g_b]
    def cell_pair(gates, c_pair):
        sig = jax.nn.sigmoid(gates[:, :6 * H])     # one contiguous sigmoid slab (i, f, o; both dirs)
        g = jnp.tanh(gates[:, 6 * H:])             # one contiguous tanh slab (g; both dirs)
        i = sig[:, 0:2 * H]
        f = sig[:, 2 * H:4 * H]
        o = sig[:, 4 * H:6 * H]
        c_new = f * c_pair + i * g
        h_new = o * jnp.tanh(c_new)
        return h_new, c_new                        # both (BP, 2H) = [fwd | bwd]

    x_bf = bf16(data_ref[0:S * BP, :])             # (S*BP, IN_PAD), all timesteps, bf16 once
    h_pair = [data_ref[S * BP + l * BP:S * BP + (l + 1) * BP, :] for l in range(L)]
    c_pair = [data_ref[S * BP + (L + l) * BP:S * BP + (L + l + 1) * BP, :] for l in range(L)]

    # ---------------- Encoder ----------------
    # Fused step k runs the forward direction at time k and the backward direction at time
    # S-1-k (independent chains).  Per layer, both directions' input projections for ALL
    # steps are two time-batched matmuls into VMEM scratch (p: same-step term + bias,
    # q: reversed-step term); per step only an aligned (BP, 8H) slice of each is read plus
    # one (BP, 2H) @ (2H, 8H) recurrent matmul.
    for l in range(L):
        wa = wts_ref[_enc_wa(l):_enc_wa(l) + BLK, :]
        wb = wts_ref[_enc_wb(l):_enc_wb(l) + BLK, :]
        whh = wts_ref[_enc_whh(l):_enc_whh(l) + BLK, :]
        u = x_bf if l == 0 else bf16(hs_ref[...])
        p_ref[...] = dot(u, wa) + bias_ref[l:l + 1, :]
        q_ref[...] = dot(u, wb)
        h, c = h_pair[l], c_pair[l]
        for k in range(S):
            gates = (p_ref[k * BP:(k + 1) * BP, :]
                     + q_ref[(S - 1 - k) * BP:(S - k) * BP, :]
                     + dot(bf16(h), whh))
            h, c = cell_pair(gates, c)
            if l + 1 < L:
                hs_ref[k * BP:(k + 1) * BP, :] = h   # paired slab: [h_fwd[k] | h_bwd[S-1-k]]
        h_pair[l], c_pair[l] = h, c                  # PyTorch final (h, c) of this layer

    # ---------------- Decoder: one bi-LSTM step per timestep, carrying (h, c) --------------
    wih0 = wts_ref[_dec_wih0():_dec_wih0() + BLK, :]
    whh0 = wts_ref[_dec_whh0():_dec_whh0() + BLK, :]
    p_ref[...] = dot(x_bf, wih0) + bias_ref[L:L + 1, :]   # layer-0 input proj, all timesteps
    wfi = [wts_ref[_dec_wfi(l):_dec_wfi(l) + BLK, :] for l in range(1, L)]
    wfh = [wts_ref[_dec_wfh(l):_dec_wfh(l) + BLK, :] for l in range(1, L)]
    dbf = [jnp.broadcast_to(bias_ref[L + l:L + l + 1, :], (BP, GW)) for l in range(1, L)]

    for t in range(S):
        gates0 = p_ref[t * BP:(t + 1) * BP, :] + dot(bf16(h_pair[0]), whh0)
        h_pair[0], c_pair[0] = cell_pair(gates0, c_pair[0])
        feed = h_pair[0]
        for l in range(1, L):
            gates = (dot(bf16(feed), wfi[l - 1])
                     + dot(bf16(h_pair[l]), wfh[l - 1])
                     + dbf[l - 1])
            h_pair[l], c_pair[l] = cell_pair(gates, c_pair[l])
            feed = h_pair[l]

    # Seq2Seq returns Linear(decoder output) at the final timestep only (single f32 matmul)
    out_ref[...] = dot(feed, lw_ref[...]) + lb_ref[...]


# ----------------------------------------------------------------------------------------
# Parameter packing (wrapper-side layout plumbing)
# ----------------------------------------------------------------------------------------
def _place_cols(w_t, d):
    """Scatter a (K, 4H) matrix whose columns follow the PyTorch gate order [i, f, g, o] into
    the fused (K, 8H) layout [i_f,i_b | f_f,f_b | o_f,o_b | g_f,g_b] for direction d."""
    H = HIDDEN
    out = jnp.zeros((w_t.shape[0], GW), jnp.float32)
    for slot, src in enumerate((0, 1, 3, 2)):          # fused (I,F,O,G) <- PyTorch (i,f,o,g)
        out = out.at[:, slot * 2 * H + d * H: slot * 2 * H + (d + 1) * H].set(
            w_t[:, src * H:(src + 1) * H])
    return out


def _pad_rows(w, rows):
    out = jnp.zeros((rows, w.shape[1]), w.dtype)
    return out.at[:w.shape[0], :].set(w)


def pack_weights(enc_raw, dec_raw):
    """One (W_ROWS, 8H) bf16 slab of all matmul weights (static 64-row blocks)."""
    H = HIDDEN
    blocks = []
    # --- encoder ---
    for l, ((wif, whf, _), (wib, whb, _)) in enumerate(enc_raw):
        wf = _place_cols(_pad_rows(wif.T, BLK), 0)     # fwd-dir placed, (BLK, 8H)
        wbk = _place_cols(_pad_rows(wib.T, BLK), 1)    # bwd-dir placed
        if l == 0:
            wa, wb = wf, wbk                           # rows multiply x[k] / x[S-1-k]
        else:
            # fold the fwd/bwd layer-handoff permutation into the weights: fused step k of
            # layer l consumes hs[k] (= [h_fwd[k] | h_bwd[S-1-k]]) via Wa and hs[S-1-k] via Wb
            wa = jnp.concatenate([wf[:H], wbk[H:2 * H]], axis=0)
            wb = jnp.concatenate([wbk[:H], wf[H:2 * H]], axis=0)
        whh = jnp.concatenate([_place_cols(whf.T, 0), _place_cols(whb.T, 1)], axis=0)
        blocks += [wa, wb, whh]
    # --- decoder layer 0 (both directions read the same x[t]; no zero-padded bottom half) ---
    (wif, whf, _), (wib, whb, _) = dec_raw[0]
    blocks += [_place_cols(_pad_rows(wif.T, BLK), 0) + _place_cols(_pad_rows(wib.T, BLK), 1),
               jnp.concatenate([_place_cols(whf.T, 0), _place_cols(whb.T, 1)], axis=0)]
    # --- decoder upper layers: split fused weight into input / recurrent halves ---
    for (wifu, whfu, _), (wibu, whbu, _) in dec_raw[1:]:
        blocks += [_place_cols(wifu.T, 0) + _place_cols(wibu.T, 1),
                   jnp.concatenate([_place_cols(whfu.T, 0), _place_cols(whbu.T, 1)], axis=0)]
    w = jnp.concatenate(blocks, axis=0)
    assert w.shape == (W_ROWS, GW), w.shape
    return w.astype(jnp.bfloat16)


def pack_biases(enc_raw, dec_raw):
    """(8, 8H) f32: row l = encoder layer-l bias, row LAYERS+l = decoder layer-l bias."""
    rows = [_place_cols(b_f.reshape(1, -1), 0) + _place_cols(b_b.reshape(1, -1), 1)
            for (_, _, b_f), (_, _, b_b) in list(enc_raw) + list(dec_raw)]
    return _pad_rows(jnp.concatenate(rows, axis=0), 8)


def pack_data(x, h0, c0):
    """(S*BP + 2*L*BP, IN_PAD) f32: batch rows padded B -> BP, channels padded to IN_PAD,
    per-direction initial states lane-paired [fwd | bwd]."""
    B, S, C = x.shape
    xt = jnp.transpose(x, (1, 0, 2))                                        # (S, B, C)
    x_rows = jnp.zeros((S, BP, IN_PAD), jnp.float32).at[:, :B, :C].set(xt).reshape(S * BP, IN_PAD)
    h0p = jnp.concatenate([h0[0::2], h0[1::2]], axis=-1)                    # (L, B, 2H)
    c0p = jnp.concatenate([c0[0::2], c0[1::2]], axis=-1)
    hp = jnp.zeros((LAYERS, BP, 2 * HIDDEN), jnp.float32).at[:, :B, :].set(h0p).reshape(LAYERS * BP, -1)
    cp = jnp.zeros((LAYERS, BP, 2 * HIDDEN), jnp.float32).at[:, :B, :].set(c0p).reshape(LAYERS * BP, -1)
    return jnp.concatenate([x_rows, hp, cp], axis=0)


def init_bilstm_raw(key, input_size, hidden, layers):
    """PyTorch-shaped bi-LSTM params: per layer, per direction (W_ih, W_hh, b_ih+b_hh)."""
    H = hidden
    k = 1.0 / float(H) ** 0.5
    params = []
    for l in range(layers):
        in_l = input_size if l == 0 else 2 * H
        dirs = []
        for _d in range(2):
            key, k1, k2, k3, k4 = jax.random.split(key, 5)
            w_ih = jax.random.uniform(k1, (4 * H, in_l), jnp.float32, -k, k)
            w_hh = jax.random.uniform(k2, (4 * H, H), jnp.float32, -k, k)
            b_ih = jax.random.uniform(k3, (4 * H,), jnp.float32, -k, k)
            b_hh = jax.random.uniform(k4, (4 * H,), jnp.float32, -k, k)
            dirs.append((w_ih, w_hh, b_ih + b_hh))
        params.append(dirs)
    return key, params


# ----------------------------------------------------------------------------------------
# Wrapper
# ----------------------------------------------------------------------------------------
def seq2seq_forward(x, h0, c0, enc_raw, dec_raw, lin_w, lin_b):
    B = x.shape[0]
    data = pack_data(x, h0, c0)
    biases = pack_biases(enc_raw, dec_raw)
    wts = pack_weights(enc_raw, dec_raw)

    vmem = pl.BlockSpec(memory_space=pltpu.MemorySpace.VMEM)
    out = pl.pallas_call(
        seq2seq_kernel,
        out_shape=jax.ShapeDtypeStruct((BP, OUT), jnp.float32),
        in_specs=[vmem] * 5,
        out_specs=vmem,
        scratch_shapes=[
            pltpu.VMEM((SEQ * BP, 2 * HIDDEN), jnp.float32),   # hs: encoder layer-handoff slab
            pltpu.VMEM((SEQ * BP, GW), jnp.float32),           # p : same-step projections (+bias)
            pltpu.VMEM((SEQ * BP, GW), jnp.float32),           # q : reversed-step projections
        ],
    )(data, biases, wts, lin_w, lin_b)
    return out[:B]


# ----------------------------------------------------------------------------------------
# Pure-JAX reference (mirrors the PyTorch module) for a self-check
# ----------------------------------------------------------------------------------------
def _lstm_cell_ref(x, h, c, w_ih, w_hh, b):
    H = HIDDEN
    gates = x @ w_ih.T + h @ w_hh.T + b
    i = jax.nn.sigmoid(gates[:, 0 * H:1 * H])
    f = jax.nn.sigmoid(gates[:, 1 * H:2 * H])
    g = jnp.tanh(gates[:, 2 * H:3 * H])
    o = jax.nn.sigmoid(gates[:, 3 * H:4 * H])
    c_new = f * c + i * g
    return o * jnp.tanh(c_new), c_new


def _bilstm_ref(x_seq, h0, c0, raw):
    B, S, _ = x_seq.shape
    L = len(raw)
    h_fin, c_fin = [None] * (2 * L), [None] * (2 * L)
    layer_in = [x_seq[:, t, :] for t in range(S)]
    for l in range(L):
        (wif, whf, bfo), (wib, whb, bba) = raw[l]
        h, c = h0[2 * l], c0[2 * l]
        fwd = []
        for t in range(S):
            h, c = _lstm_cell_ref(layer_in[t], h, c, wif, whf, bfo)
            fwd.append(h)
        h_fin[2 * l], c_fin[2 * l] = h, c
        h, c = h0[2 * l + 1], c0[2 * l + 1]
        bwd = [None] * S
        for t in range(S - 1, -1, -1):
            h, c = _lstm_cell_ref(layer_in[t], h, c, wib, whb, bba)
            bwd[t] = h
        h_fin[2 * l + 1], c_fin[2 * l + 1] = h, c
        layer_in = [jnp.concatenate([fwd[t], bwd[t]], axis=1) for t in range(S)]
    return jnp.stack(layer_in, axis=1), jnp.stack(h_fin), jnp.stack(c_fin)


def seq2seq_ref(x, h0, c0, enc_raw, dec_raw, lin_w, lin_b):
    B, S, _ = x.shape
    _, h, c = _bilstm_ref(x, h0, c0, enc_raw)
    pred = None
    for t in range(S):
        out, h, c = _bilstm_ref(x[:, t:t + 1, :], h, c, dec_raw)
        pred = out[:, -1, :] @ lin_w + lin_b
    return pred


if __name__ == "__main__":
    key = jax.random.PRNGKey(0)
    key, kx, kh, kc, klw, klb = jax.random.split(key, 6)

    x = jax.random.normal(kx, (BATCH, SEQ, CHANNELS), jnp.float32)
    # TODO(synk): the PyTorch Encoder draws torch.randn initial states inside forward
    # (non-deterministic); here they are deterministic explicit inputs instead.
    h0 = jax.random.normal(kh, (2 * LAYERS, BATCH, HIDDEN), jnp.float32)
    c0 = jax.random.normal(kc, (2 * LAYERS, BATCH, HIDDEN), jnp.float32)

    key, enc_raw = init_bilstm_raw(key, CHANNELS, HIDDEN, LAYERS)
    key, dec_raw = init_bilstm_raw(key, CHANNELS, HIDDEN, LAYERS)

    kl = 1.0 / float(2 * HIDDEN) ** 0.5
    lin_w = jax.random.uniform(klw, (2 * HIDDEN, OUT), jnp.float32, -kl, kl)   # = nn.Linear weight.T
    lin_b = jax.random.uniform(klb, (1, OUT), jnp.float32, -kl, kl)

    out = seq2seq_forward(x, h0, c0, enc_raw, dec_raw, lin_w, lin_b)
    out = jax.block_until_ready(out)
    assert out.shape == (BATCH, OUT), out.shape
    assert bool(jnp.all(jnp.isfinite(out)))

    ref = seq2seq_ref(x, h0, c0, enc_raw, dec_raw, lin_w, lin_b)
    max_err = float(jnp.max(jnp.abs(out - ref)))
    assert max_err < 5e-2, f"max |kernel - reference| = {max_err}"   # bf16 MXU operands, f32 accum

    print("KERNEL_OK")
</pallas_src>

<mosaic_0001>
module attributes {stable_mosaic.version = 11 : i64} {
  func.func @seq2seq_kernel(%arg0: memref<96x64xf32, #tpu.memory_space<vmem>>, %arg1: memref<8x256xf32, #tpu.memory_space<vmem>>, %arg2: memref<640x256xbf16, #tpu.memory_space<vmem>>, %arg3: memref<64x8xf32, #tpu.memory_space<vmem>>, %arg4: memref<1x8xf32, #tpu.memory_space<vmem>>, %arg5: memref<8x8xf32, #tpu.memory_space<vmem>>, %arg6: memref<64x64xf32, #tpu.memory_space<vmem>>, %arg7: memref<64x256xf32, #tpu.memory_space<vmem>>, %arg8: memref<64x256xf32, #tpu.memory_space<vmem>>) attributes {dimension_semantics = [], scalar_prefetch = 0 : i64, scratch_operands = 3 : i64, tpu.core_type = #tpu.core_type<tc>} {
    %c0 = arith.constant 0 : index
    %c0_0 = arith.constant 0 : index
    %0 = vector.load %arg0[%c0, %c0_0] : memref<96x64xf32, #tpu.memory_space<vmem>>, vector<64x64xf32>
    %1 = arith.truncf %0 : vector<64x64xf32> to vector<64x64xbf16>
    %c64 = arith.constant 64 : index
    %c0_1 = arith.constant 0 : index
    %2 = vector.load %arg0[%c64, %c0_1] : memref<96x64xf32, #tpu.memory_space<vmem>>, vector<8x64xf32>
    %c72 = arith.constant 72 : index
    %c0_2 = arith.constant 0 : index
    %3 = vector.load %arg0[%c72, %c0_2] : memref<96x64xf32, #tpu.memory_space<vmem>>, vector<8x64xf32>
    %c80 = arith.constant 80 : index
    %c0_3 = arith.constant 0 : index
    %4 = vector.load %arg0[%c80, %c0_3] : memref<96x64xf32, #tpu.memory_space<vmem>>, vector<8x64xf32>
    %c88 = arith.constant 88 : index
    %c0_4 = arith.constant 0 : index
    %5 = vector.load %arg0[%c88, %c0_4] : memref<96x64xf32, #tpu.memory_space<vmem>>, vector<8x64xf32>
    %c0_5 = arith.constant 0 : index
    %c0_6 = arith.constant 0 : index
    %6 = vector.load %arg2[%c0_5, %c0_6] : memref<640x256xbf16, #tpu.memory_space<vmem>>, vector<64x256xbf16>
    %c64_7 = arith.constant 64 : index
    %c0_8 = arith.constant 0 : index
    %7 = vector.load %arg2[%c64_7, %c0_8] : memref<640x256xbf16, #tpu.memory_space<vmem>>, vector<64x256xbf16>
    %c128 = arith.constant 128 : index
    %c0_9 = arith.constant 0 : index
    %8 = vector.load %arg2[%c128, %c0_9] : memref<640x256xbf16, #tpu.memory_space<vmem>>, vector<64x256xbf16>
    %cst = arith.constant dense<0.000000e+00> : vector<64x256xf32>
    %9 = tpu.matmul %1, %6, %cst {dimension_numbers = #tpu.dot_dimension_numbers<[1], [0], [0], [1], [0, 0, 1, 1], [], []>} : vector<64x64xbf16>, vector<64x256xbf16>, vector<64x256xf32> -> vector<64x256xf32>
    %c0_10 = arith.constant 0 : index
    %c0_11 = arith.constant 0 : index
    %10 = vector.load %arg1[%c0_10, %c0_11] : memref<8x256xf32, #tpu.memory_space<vmem>>, vector<1x256xf32>
    %11 = vector.broadcast %10 : vector<1x256xf32> to vector<64x256xf32>
    %12 = arith.addf %9, %11 : vector<64x256xf32>
    %c0_12 = arith.constant 0 : index
    %c0_13 = arith.constant 0 : index
    %13 = vector.load %arg7[%c0_12, %c0_13] : memref<64x256xf32, #tpu.memory_space<vmem>>, vector<64x256xf32>
    tpu.vector_store %arg7[%c0_12, %c0_13], %12 {strides = array<i32>} : memref<64x256xf32, #tpu.memory_space<vmem>>, vector<64x256xf32>,
    %cst_14 = arith.constant dense<0.000000e+00> : vector<64x256xf32>
    %14 = tpu.matmul %1, %7, %cst_14 {dimension_numbers = #tpu.dot_dimension_numbers<[1], [0], [0], [1], [0, 0, 1, 1], [], []>} : vector<64x64xbf16>, vector<64x256xbf16>, vector<64x256xf32> -> vector<64x256xf32>
    %c0_15 = arith.constant 0 : index
    %c0_16 = arith.constant 0 : index
    %15 = vector.load %arg8[%c0_15, %c0_16] : memref<64x256xf32, #tpu.memory_space<vmem>>, vector<64x256xf32>
    tpu.vector_store %arg8[%c0_15, %c0_16], %14 {strides = array<i32>} : memref<64x256xf32, #tpu.memory_space<vmem>>, vector<64x256xf32>,
    %c0_17 = arith.constant 0 : index
    %c0_18 = arith.constant 0 : index
    %16 = vector.load %arg7[%c0_17, %c0_18] : memref<64x256xf32, #tpu.memory_space<vmem>>, vector<8x256xf32>
    %c56 = arith.constant 56 : index
    %c0_19 = arith.constant 0 : index
    %17 = vector.load %arg8[%c56, %c0_19] : memref<64x256xf32, #tpu.memory_space<vmem>>, vector<8x256xf32>
    %18 = arith.addf %16, %17 : vector<8x256xf32>
    %19 = arith.truncf %2 : vector<8x64xf32> to vector<8x64xbf16>
    %cst_20 = arith.constant dense<0.000000e+00> : vector<8x256xf32>
    %20 = tpu.matmul %19, %8, %cst_20 {dimension_numbers = #tpu.dot_dimension_numbers<[1], [0], [0], [1], [0, 0, 1, 1], [], []>} : vector<8x64xbf16>, vector<64x256xbf16>, vector<8x256xf32> -> vector<8x256xf32>
    %21 = arith.addf %18, %20 : vector<8x256xf32>
    %22 = vector.extract_strided_slice %21 {offsets = [0, 0], sizes = [8, 192], strides = [1, 1]} : vector<8x256xf32> to vector<8x192xf32>
    %23 = arith.negf %22 : vector<8x192xf32>
    %24 = math.exp %23 : vector<8x192xf32>
    %cst_21 = arith.constant 1.000000e+00 : f32
    %25 = vector.broadcast %cst_21 : f32 to vector<8x192xf32>
    %26 = arith.addf %25, %24 : vector<8x192xf32>
    %27 = arith.divf %25, %26 : vector<8x192xf32>
    %28 = vector.extract_strided_slice %21 {offsets = [0, 192], sizes = [8, 64], strides = [1, 1]} : vector<8x256xf32> to vector<8x64xf32>
    %29 = math.tanh %28 : vector<8x64xf32>
    %30 = vector.extract_strided_slice %27 {offsets = [0, 0], sizes = [8, 64], strides = [1, 1]} : vector<8x192xf32> to vector<8x64xf32>
    %31 = vector.extract_strided_slice %27 {offsets = [0, 64], sizes = [8, 64], strides = [1, 1]} : vector<8x192xf32> to vector<8x64xf32>
    %32 = vector.extract_strided_slice %27 {offsets = [0, 128], sizes = [8, 64], strides = [1, 1]} : vector<8x192xf32> to vector<8x64xf32>
    %33 = arith.mulf %31, %4 : vector<8x64xf32>
    %34 = arith.mulf %30, %29 : vector<8x64xf32>
    %35 = arith.addf %33, %34 : vector<8x64xf32>
    %36 = math.tanh %35 : vector<8x64xf32>
    %37 = arith.mulf %32, %36 : vector<8x64xf32>
    %c0_22 = arith.constant 0 : index
    %c0_23 = arith.constant 0 : index
    %38 = vector.load %arg6[%c0_22, %c0_23] : memref<64x64xf32, #tpu.memory_space<vmem>>, vector<8x64xf32>
    tpu.vector_store %arg6[%c0_22, %c0_23], %37 {strides = array<i32>} : memref<64x64xf32, #tpu.memory_space<vmem>>, vector<8x64xf32>,
    %c8 = arith.constant 8 : index
    %c0_24 = arith.constant 0 : index
    %39 = vector.load %arg7[%c8, %c0_24] : memref<64x256xf32, #tpu.memory_space<vmem>>, vector<8x256xf32>
    %c48 = arith.constant 48 : index
    %c0_25 = arith.constant 0 : index
    %40 = vector.load %arg8[%c48, %c0_25] : memref<64x256xf32, #tpu.memory_space<vmem>>, vector<8x256xf32>
    %41 = arith.addf %39, %40 : vector<8x256xf32>
    %42 = arith.truncf %37 : vector<8x64xf32> to vector<8x64xbf16>
    %cst_26 = arith.constant dense<0.000000e+00> : vector<8x256xf32>
    %43 = tpu.matmul %42, %8, %cst_26 {dimension_numbers = #tpu.dot_dimension_numbers<[1], [0], [0], [1], [0, 0, 1, 1], [], []>} : vector<8x64xbf16>, vector<64x256xbf16>, vector<8x256xf32> -> vector<8x256xf32>
    %44 = arith.addf %41, %43 : vector<8x256xf32>
    %45 = vector.extract_strided_slice %44 {offsets = [0, 0], sizes = [8, 192], strides = [1, 1]} : vector<8x256xf32> to vector<8x192xf32>
    %46 = arith.negf %45 : vector<8x192xf32>
    %47 = math.exp %46 : vector<8x192xf32>
    %cst_27 = arith.constant 1.000000e+00 : f32
    %48 = vector.broadcast %cst_27 : f32 to vector<8x192xf32>
    %49 = arith.addf %48, %47 : vector<8x192xf32>
    %50 = arith.divf %48, %49 : vector<8x192xf32>
    %51 = vector.extract_strided_slice %44 {offsets = [0, 192], sizes = [8, 64], strides = [1, 1]} : vector<8x256xf32> to vector<8x64xf32>
    %52 = math.tanh %51 : vector<8x64xf32>
    %53 = vector.extract_strided_slice %50 {offsets = [0, 0], sizes = [8, 64], strides = [1, 1]} : vector<8x192xf32> to vector<8x64xf32>
    %54 = vector.extract_strided_slice %50 {offsets = [0, 64], sizes = [8, 64], strides = [1, 1]} : vector<8x192xf32> to vector<8x64xf32>
    %55 = vector.extract_strided_slice %50 {offsets = [0, 128], sizes = [8, 64], strides = [1, 1]} : vector<8x192xf32> to vector<8x64xf32>
    %56 = arith.mulf %54, %35 : vector<8x64xf32>
    %57 = arith.mulf %53, %52 : vector<8x64xf32>
    %58 = arith.addf %56, %57 : vector<8x64xf32>
    %59 = math.tanh %58 : vector<8x64xf32>
    %60 = arith.mulf %55, %59 : vector<8x64xf32>
    %c8_28 = arith.constant 8 : index
    %c0_29 = arith.constant 0 : index
    %61 = vector.load %arg6[%c8_28, %c0_29] : memref<64x64xf32, #tpu.memory_space<vmem>>, vector<8x64xf32>
    tpu.vector_store %arg6[%c8_28, %c0_29], %60 {strides = array<i32>} : memref<64x64xf32, #tpu.memory_space<vmem>>, vector<8x64xf32>,
    %c16 = arith.constant 16 : index
    %c0_30 = arith.constant 0 : index
    %62 = vector.load %arg7[%c16, %c0_30] : memref<64x256xf32, #tpu.memory_space<vmem>>, vector<8x256xf32>
    %c40 = arith.constant 40 : index
    %c0_31 = arith.constant 0 : index
    %63 = vector.load %arg8[%c40, %c0_31] : memref<64x256xf32, #tpu.memory_space<vmem>>, vector<8x256xf32>
    %64 = arith.addf %62, %63 : vector<8x256xf32>
    %65 = arith.truncf %60 : vector<8x64xf32> to vector<8x64xbf16>
    %cst_32 = arith.constant dense<0.000000e+00> : vector<8x256xf32>
    %66 = tpu.matmul %65, %8, %cst_32 {dimension_numbers = #tpu.dot_dimension_numbers<[1], [0], [0], [1], [0, 0, 1, 1], [], []>} : vector<8x64xbf16>, vector<64x256xbf16>, vector<8x256xf32> -> vector<8x256xf32>
    %67 = arith.addf %64, %66 : vector<8x256xf32>
    %68 = vector.extract_strided_slice %67 {offsets = [0, 0], sizes = [8, 192], strides = [1, 1]} : vector<8x256xf32> to vector<8x192xf32>
    %69 = arith.negf %68 : vector<8x192xf32>
    %70 = math.exp %69 : vector<8x192xf32>
    %cst_33 = arith.constant 1.000000e+00 : f32
    %71 = vector.broadcast %cst_33 : f32 to vector<8x192xf32>
    %72 = arith.addf %71, %70 : vector<8x192xf32>
    %73 = arith.divf %71, %72 : vector<8x192xf32>
    %74 = vector.extract_strided_slice %67 {offsets = [0, 192], sizes = [8, 64], strides = [1, 1]} : vector<8x256xf32> to vector<8x64xf32>
    %75 = math.tanh %74 : vector<8x64xf32>
    %76 = vector.extract_strided_slice %73 {offsets = [0, 0], sizes = [8, 64], strides = [1, 1]} : vector<8x192xf32> to vector<8x64xf32>
    %77 = vector.extract_strided_slice %73 {offsets = [0, 64], sizes = [8, 64], strides = [1, 1]} : vector<8x192xf32> to vector<8x64xf32>
    %78 = vector.extract_strided_slice %73 {offsets = [0, 128], sizes = [8, 64], strides = [1, 1]} : vector<8x192xf32> to vector<8x64xf32>
    %79 = arith.mulf %77, %58 : vector<8x64xf32>
    %80 = arith.mulf %76, %75 : vector<8x64xf32>
    %81 = arith.addf %79, %80 : vector<8x64xf32>
    %82 = math.tanh %81 : vector<8x64xf32>
    %83 = arith.mulf %78, %82 : vector<8x64xf32>
    %c16_34 = arith.constant 16 : index
    %c0_35 = arith.constant 0 : index
    %84 = vector.load %arg6[%c16_34, %c0_35] : memref<64x64xf32, #tpu.memory_space<vmem>>, vector<8x64xf32>
    tpu.vector_store %arg6[%c16_34, %c0_35], %83 {strides = array<i32>} : memref<64x64xf32, #tpu.memory_space<vmem>>, vector<8x64xf32>,
    %c24 = arith.constant 24 : index
    %c0_36 = arith.constant 0 : index
    %85 = vector.load %arg7[%c24, %c0_36] : memref<64x256xf32, #tpu.memory_space<vmem>>, vector<8x256xf32>
    %c32 = arith.constant 32 : index
    %c0_37 = arith.constant 0 : index
    %86 = vector.load %arg8[%c32, %c0_37] : memref<64x256xf32, #tpu.memory_space<vmem>>, vector<8x256xf32>
    %87 = arith.addf %85, %86 : vector<8x256xf32>
    %88 = arith.truncf %83 : vector<8x64xf32> to vector<8x64xbf16>
    %cst_38 = arith.constant dense<0.000000e+00> : vector<8x256xf32>
    %89 = tpu.matmul %88, %8, %cst_38 {dimension_numbers = #tpu.dot_dimension_numbers<[1], [0], [0], [1], [0, 0, 1, 1], [], []>} : vector<8x64xbf16>, vector<64x256xbf16>, vector<8x256xf32> -> vector<8x256xf32>
    %90 = arith.addf %87, %89 : vector<8x256xf32>
    %91 = vector.extract_strided_slice %90 {offsets = [0, 0], sizes = [8, 192], strides = [1, 1]} : vector<8x256xf32> to vector<8x192xf32>
    %92 = arith.negf %91 : vector<8x192xf32>
    %93 = math.exp %92 : vector<8x192xf32>
    %cst_39 = arith.constant 1.000000e+00 : f32
    %94 = vector.broadcast %cst_39 : f32 to vector<8x192xf32>
    %95 = arith.addf %94, %93 : vector<8x192xf32>
    %96 = arith.divf %94, %95 : vector<8x192xf32>
    %97 = vector.extract_strided_slice %90 {offsets = [0, 192], sizes = [8, 64], strides = [1, 1]} : vector<8x256xf32> to vector<8x64xf32>
    %98 = math.tanh %97 : vector<8x64xf32>
    %99 = vector.extract_strided_slice %96 {offsets = [0, 0], sizes = [8, 64], strides = [1, 1]} : vector<8x192xf32> to vector<8x64xf32>
    %100 = vector.extract_strided_slice %96 {offsets = [0, 64], sizes = [8, 64], strides = [1, 1]} : vector<8x192xf32> to vector<8x64xf32>
    %101 = vector.extract_strided_slice %96 {offsets = [0, 128], sizes = [8, 64], strides = [1, 1]} : vector<8x192xf32> to vector<8x64xf32>
    %102 = arith.mulf %100, %81 : vector<8x64xf32>
    %103 = arith.mulf %99, %98 : vector<8x64xf32>
    %104 = arith.addf %102, %103 : vector<8x64xf32>
    %105 = math.tanh %104 : vector<8x64xf32>
    %106 = arith.mulf %101, %105 : vector<8x64xf32>
    %c24_40 = arith.constant 24 : index
    %c0_41 = arith.constant 0 : index
    %107 = vector.load %arg6[%c24_40, %c0_41] : memref<64x64xf32, #tpu.memory_space<vmem>>, vector<8x64xf32>
    tpu.vector_store %arg6[%c24_40, %c0_41], %106 {strides = array<i32>} : memref<64x64xf32, #tpu.memory_space<vmem>>, vector<8x64xf32>,
    %c32_42 = arith.constant 32 : index
    %c0_43 = arith.constant 0 : index
    %108 = vector.load %arg7[%c32_42, %c0_43] : memref<64x256xf32, #tpu.memory_space<vmem>>, vector<8x256xf32>
    %c24_44 = arith.constant 24 : index
    %c0_45 = arith.constant 0 : index
    %109 = vector.load %arg8[%c24_44, %c0_45] : memref<64x256xf32, #tpu.memory_space<vmem>>, vector<8x256xf32>
    %110 = arith.addf %108, %109 : vector<8x256xf32>
    %111 = arith.truncf %106 : vector<8x64xf32> to vector<8x64xbf16>
    %cst_46 = arith.constant dense<0.000000e+00> : vector<8x256xf32>
    %112 = tpu.matmul %111, %8, %cst_46 {dimension_numbers = #tpu.dot_dimension_numbers<[1], [0], [0], [1], [0, 0, 1, 1], [], []>} : vector<8x64xbf16>, vector<64x256xbf16>, vector<8x256xf32> -> vector<8x256xf32>
    %113 = arith.addf %110, %112 : vector<8x256xf32>
    %114 = vector.extract_strided_slice %113 {offsets = [0, 0], sizes = [8, 192], strides = [1, 1]} : vector<8x256xf32> to vector<8x192xf32>
    %115 = arith.negf %114 : vector<8x192xf32>
    %116 = math.exp %115 : vector<8x192xf32>
    %cst_47 = arith.constant 1.000000e+00 : f32
    %117 = vector.broadcast %cst_47 : f32 to vector<8x192xf32>
    %118 = arith.addf %117, %116 : vector<8x192xf32>
    %119 = arith.divf %117, %118 : vector<8x192xf32>
    %120 = vector.extract_strided_slice %113 {offsets = [0, 192], sizes = [8, 64], strides = [1, 1]} : vector<8x256xf32> to vector<8x64xf32>
    %121 = math.tanh %120 : vector<8x64xf32>
    %122 = vector.extract_strided_slice %119 {offsets = [0, 0], sizes = [8, 64], strides = [1, 1]} : vector<8x192xf32> to vector<8x64xf32>
    %123 = vector.extract_strided_slice %119 {offsets = [0, 64], sizes = [8, 64], strides = [1, 1]} : vector<8x192xf32> to vector<8x64xf32>
    %124 = vector.extract_strided_slice %119 {offsets = [0, 128], sizes = [8, 64], strides = [1, 1]} : vector<8x192xf32> to vector<8x64xf32>
    %125 = arith.mulf %123, %104 : vector<8x64xf32>
    %126 = arith.mulf %122, %121 : vector<8x64xf32>
    %127 = arith.addf %125, %126 : vector<8x64xf32>
    %128 = math.tanh %127 : vector<8x64xf32>
    %129 = arith.mulf %124, %128 : vector<8x64xf32>
    %c32_48 = arith.constant 32 : index
    %c0_49 = arith.constant 0 : index
    %130 = vector.load %arg6[%c32_48, %c0_49] : memref<64x64xf32, #tpu.memory_space<vmem>>, vector<8x64xf32>
    tpu.vector_store %arg6[%c32_48, %c0_49], %129 {strides = array<i32>} : memref<64x64xf32, #tpu.memory_space<vmem>>, vector<8x64xf32>,
    %c40_50 = arith.constant 40 : index
    %c0_51 = arith.constant 0 : index
    %131 = vector.load %arg7[%c40_50, %c0_51] : memref<64x256xf32, #tpu.memory_space<vmem>>, vector<8x256xf32>
    %c16_52 = arith.constant 16 : index
    %c0_53 = arith.constant 0 : index
    %132 = vector.load %arg8[%c16_52, %c0_53] : memref<64x256xf32, #tpu.memory_space<vmem>>, vector<8x256xf32>
    %133 = arith.addf %131, %132 : vector<8x256xf32>
    %134 = arith.truncf %129 : vector<8x64xf32> to vector<8x64xbf16>
    %cst_54 = arith.constant dense<0.000000e+00> : vector<8x256xf32>
    %135 = tpu.matmul %134, %8, %cst_54 {dimension_numbers = #tpu.dot_dimension_numbers<[1], [0], [0], [1], [0, 0, 1, 1], [], []>} : vector<8x64xbf16>, vector<64x256xbf16>, vector<8x256xf32> -> vector<8x256xf32>
    %136 = arith.addf %133, %135 : vector<8x256xf32>
    %137 = vector.extract_strided_slice %136 {offsets = [0, 0], sizes = [8, 192], strides = [1, 1]} : vector<8x256xf32> to vector<8x192xf32>
    %138 = arith.negf %137 : vector<8x192xf32>
    %139 = math.exp %138 : vector<8x192xf32>
    %cst_55 = arith.constant 1.000000e+00 : f32
    %140 = vector.broadcast %cst_55 : f32 to vector<8x192xf32>
    %141 = arith.addf %140, %139 : vector<8x192xf32>
    %142 = arith.divf %140, %141 : vector<8x192xf32>
    %143 = vector.extract_strided_slice %136 {offsets = [0, 192], sizes = [8, 64], strides = [1, 1]} : vector<8x256xf32> to vector<8x64xf32>
    %144 = math.tanh %143 : vector<8x64xf32>
    %145 = vector.extract_strided_slice %142 {offsets = [0, 0], sizes = [8, 64], strides = [1, 1]} : vector<8x192xf32> to vector<8x64xf32>
    %146 = vector.extract_strided_slice %142 {offsets = [0, 64], sizes = [8, 64], strides = [1, 1]} : vector<8x192xf32> to vector<8x64xf32>
    %147 = vector.extract_strided_slice %142 {offsets = [0, 128], sizes = [8, 64], strides = [1, 1]} : vector<8x192xf32> to vector<8x64xf32>
    %148 = arith.mulf %146, %127 : vector<8x64xf32>
    %149 = arith.mulf %145, %144 : vector<8x64xf32>
    %150 = arith.addf %148, %149 : vector<8x64xf32>
    %151 = math.tanh %150 : vector<8x64xf32>
    %152 = arith.mulf %147, %151 : vector<8x64xf32>
    %c40_56 = arith.constant 40 : index
    %c0_57 = arith.constant 0 : index
    %153 = vector.load %arg6[%c40_56, %c0_57] : memref<64x64xf32, #tpu.memory_space<vmem>>, vector<8x64xf32>
    tpu.vector_store %arg6[%c40_56, %c0_57], %152 {strides = array<i32>} : memref<64x64xf32, #tpu.memory_space<vmem>>, vector<8x64xf32>,
    %c48_58 = arith.constant 48 : index
    %c0_59 = arith.constant 0 : index
    %154 = vector.load %arg7[%c48_58, %c0_59] : memref<64x256xf32, #tpu.memory_space<vmem>>, vector<8x256xf32>
    %c8_60 = arith.constant 8 : index
    %c0_61 = arith.constant 0 : index
    %155 = vector.load %arg8[%c8_60, %c0_61] : memref<64x256xf32, #tpu.memory_space<vmem>>, vector<8x256xf32>
    %156 = arith.addf %154, %155 : vector<8x256xf32>
    %157 = arith.truncf %152 : vector<8x64xf32> to vector<8x64xbf16>
    %cst_62 = arith.constant dense<0.000000e+00> : vector<8x256xf32>
    %158 = tpu.matmul %157, %8, %cst_62 {dimension_numbers = #tpu.dot_dimension_numbers<[1], [0], [0], [1], [0, 0, 1, 1], [], []>} : vector<8x64xbf16>, vector<64x256xbf16>, vector<8x256xf32> -> vector<8x256xf32>
    %159 = arith.addf %156, %158 : vector<8x256xf32>
    %160 = vector.extract_strided_slice %159 {offsets = [0, 0], sizes = [8, 192], strides = [1, 1]} : vector<8x256xf32> to vector<8x192xf32>
    %161 = arith.negf %160 : vector<8x192xf32>
    %162 = math.exp %161 : vector<8x192xf32>
    %cst_63 = arith.constant 1.000000e+00 : f32
    %163 = vector.broadcast %cst_63 : f32 to vector<8x192xf32>
    %164 = arith.addf %163, %162 : vector<8x192xf32>
    %165 = arith.divf %163, %164 : vector<8x192xf32>
    %166 = vector.extract_strided_slice %159 {offsets = [0, 192], sizes = [8, 64], strides = [1, 1]} : vector<8x256xf32> to vector<8x64xf32>
    %167 = math.tanh %166 : vector<8x64xf32>
    %168 = vector.extract_strided_slice %165 {offsets = [0, 0], sizes = [8, 64], strides = [1, 1]} : vector<8x192xf32> to vector<8x64xf32>
    %169 = vector.extract_strided_slice %165 {offsets = [0, 64], sizes = [8, 64], strides = [1, 1]} : vector<8x192xf32> to vector<8x64xf32>
    %170 = vector.extract_strided_slice %165 {offsets = [0, 128], sizes = [8, 64], strides = [1, 1]} : vector<8x192xf32> to vector<8x64xf32>
    %171 = arith.mulf %169, %150 : vector<8x64xf32>
    %172 = arith.mulf %168, %167 : vector<8x64xf32>
    %173 = arith.addf %171, %172 : vector<8x64xf32>
    %174 = math.tanh %173 : vector<8x64xf32>
    %175 = arith.mulf %170, %174 : vector<8x64xf32>
    %c48_64 = arith.constant 48 : index
    %c0_65 = arith.constant 0 : index
    %176 = vector.load %arg6[%c48_64, %c0_65] : memref<64x64xf32, #tpu.memory_space<vmem>>, vector<8x64xf32>
    tpu.vector_store %arg6[%c48_64, %c0_65], %175 {strides = array<i32>} : memref<64x64xf32, #tpu.memory_space<vmem>>, vector<8x64xf32>,
    %c56_66 = arith.constant 56 : index
    %c0_67 = arith.constant 0 : index
    %177 = vector.load %arg7[%c56_66, %c0_67] : memref<64x256xf32, #tpu.memory_space<vmem>>, vector<8x256xf32>
    %c0_68 = arith.constant 0 : index
    %c0_69 = arith.constant 0 : index
    %178 = vector.load %arg8[%c0_68, %c0_69] : memref<64x256xf32, #tpu.memory_space<vmem>>, vector<8x256xf32>
    %179 = arith.addf %177, %178 : vector<8x256xf32>
    %180 = arith.truncf %175 : vector<8x64xf32> to vector<8x64xbf16>
    %cst_70 = arith.constant dense<0.000000e+00> : vector<8x256xf32>
    %181 = tpu.matmul %180, %8, %cst_70 {dimension_numbers = #tpu.dot_dimension_numbers<[1], [0], [0], [1], [0, 0, 1, 1], [], []>} : vector<8x64xbf16>, vector<64x256xbf16>, vector<8x256xf32> -> vector<8x256xf32>
    %182 = arith.addf %179, %181 : vector<8x256xf32>
    %183 = vector.extract_strided_slice %182 {offsets = [0, 0], sizes = [8, 192], strides = [1, 1]} : vector<8x256xf32> to vector<8x192xf32>
    %184 = arith.negf %183 : vector<8x192xf32>
    %185 = math.exp %184 : vector<8x192xf32>
    %cst_71 = arith.constant 1.000000e+00 : f32
    %186 = vector.broadcast %cst_71 : f32 to vector<8x192xf32>
    %187 = arith.addf %186, %185 : vector<8x192xf32>
    %188 = arith.divf %186, %187 : vector<8x192xf32>
    %189 = vector.extract_strided_slice %182 {offsets = [0, 192], sizes = [8, 64], strides = [1, 1]} : vector<8x256xf32> to vector<8x64xf32>
    %190 = math.tanh %189 : vector<8x64xf32>
    %191 = vector.extract_strided_slice %188 {offsets = [0, 0], sizes = [8, 64], strides = [1, 1]} : vector<8x192xf32> to vector<8x64xf32>
    %192 = vector.extract_strided_slice %188 {offsets = [0, 64], sizes = [8, 64], strides = [1, 1]} : vector<8x192xf32> to vector<8x64xf32>
    %193 = vector.extract_strided_slice %188 {offsets = [0, 128], sizes = [8, 64], strides = [1, 1]} : vector<8x192xf32> to vector<8x64xf32>
    %194 = arith.mulf %192, %173 : vector<8x64xf32>
    %195 = arith.mulf %191, %190 : vector<8x64xf32>
    %196 = arith.addf %194, %195 : vector<8x64xf32>
    %197 = math.tanh %196 : vector<8x64xf32>
    %198 = arith.mulf %193, %197 : vector<8x64xf32>
    %c56_72 = arith.constant 56 : index
    %c0_73 = arith.constant 0 : index
    %199 = vector.load %arg6[%c56_72, %c0_73] : memref<64x64xf32, #tpu.memory_space<vmem>>, vector<8x64xf32>
    tpu.vector_store %arg6[%c56_72, %c0_73], %198 {strides = array<i32>} : memref<64x64xf32, #tpu.memory_space<vmem>>, vector<8x64xf32>,
    %c192 = arith.constant 192 : index
    %c0_74 = arith.constant 0 : index
    %200 = vector.load %arg2[%c192, %c0_74] : memref<640x256xbf16, #tpu.memory_space<vmem>>, vector<64x256xbf16>
    %c256 = arith.constant 256 : index
    %c0_75 = arith.constant 0 : index
    %201 = vector.load %arg2[%c256, %c0_75] : memref<640x256xbf16, #tpu.memory_space<vmem>>, vector<64x256xbf16>
    %c320 = arith.constant 320 : index
    %c0_76 = arith.constant 0 : index
    %202 = vector.load %arg2[%c320, %c0_76] : memref<640x256xbf16, #tpu.memory_space<vmem>>, vector<64x256xbf16>
    %c0_77 = arith.constant 0 : index
    %c0_78 = arith.constant 0 : index
    %203 = vector.load %arg6[%c0_77, %c0_78] : memref<64x64xf32, #tpu.memory_space<vmem>>, vector<64x64xf32>
    %204 = arith.truncf %203 : vector<64x64xf32> to vector<64x64xbf16>
    %cst_79 = arith.constant dense<0.000000e+00> : vector<64x256xf32>
    %205 = tpu.matmul %204, %200, %cst_79 {dimension_numbers = #tpu.dot_dimension_numbers<[1], [0], [0], [1], [0, 0, 1, 1], [], []>} : vector<64x64xbf16>, vector<64x256xbf16>, vector<64x256xf32> -> vector<64x256xf32>
    %c1 = arith.constant 1 : index
    %c0_80 = arith.constant 0 : index
    %206 = vector.load %arg1[%c1, %c0_80] : memref<8x256xf32, #tpu.memory_space<vmem>>, vector<1x256xf32>
    %207 = vector.broadcast %206 : vector<1x256xf32> to vector<64x256xf32>
    %208 = arith.addf %205, %207 : vector<64x256xf32>
    %c0_81 = arith.constant 0 : index
    %c0_82 = arith.constant 0 : index
    %209 = vector.load %arg7[%c0_81, %c0_82] : memref<64x256xf32, #tpu.memory_space<vmem>>, vector<64x256xf32>
    tpu.vector_store %arg7[%c0_81, %c0_82], %208 {strides = array<i32>} : memref<64x256xf32, #tpu.memory_space<vmem>>, vector<64x256xf32>,
    %cst_83 = arith.constant dense<0.000000e+00> : vector<64x256xf32>
    %210 = tpu.matmul %204, %201, %cst_83 {dimension_numbers = #tpu.dot_dimension_numbers<[1], [0], [0], [1], [0, 0, 1, 1], [], []>} : vector<64x64xbf16>, vector<64x256xbf16>, vector<64x256xf32> -> vector<64x256xf32>
    %c0_84 = arith.constant 0 : index
    %c0_85 = arith.constant 0 : index
    %211 = vector.load %arg8[%c0_84, %c0_85] : memref<64x256xf32, #tpu.memory_space<vmem>>, vector<64x256xf32>
    tpu.vector_store %arg8[%c0_84, %c0_85], %210 {strides = array<i32>} : memref<64x256xf32, #tpu.memory_space<vmem>>, vector<64x256xf32>,
    %c0_86 = arith.constant 0 : index
    %c0_87 = arith.constant 0 : index
    %212 = vector.load %arg7[%c0_86, %c0_87] : memref<64x256xf32, #tpu.memory_space<vmem>>, vector<8x256xf32>
    %c56_88 = arith.constant 56 : index
    %c0_89 = arith.constant 0 : index
    %213 = vector.load %arg8[%c56_88, %c0_89] : memref<64x256xf32, #tpu.memory_space<vmem>>, vector<8x256xf32>
    %214 = arith.addf %212, %213 : vector<8x256xf32>
    %215 = arith.truncf %3 : vector<8x64xf32> to vector<8x64xbf16>
    %cst_90 = arith.constant dense<0.000000e+00> : vector<8x256xf32>
    %216 = tpu.matmul %215, %202, %cst_90 {dimension_numbers = #tpu.dot_dimension_numbers<[1], [0], [0], [1], [0, 0, 1, 1], [], []>} : vector<8x64xbf16>, vector<64x256xbf16>, vector<8x256xf32> -> vector<8x256xf32>
    %217 = arith.addf %214, %216 : vector<8x256xf32>
    %218 = vector.extract_strided_slice %217 {offsets = [0, 0], sizes = [8, 192], strides = [1, 1]} : vector<8x256xf32> to vector<8x192xf32>
    %219 = arith.negf %218 : vector<8x192xf32>
    %220 = math.exp %219 : vector<8x192xf32>
    %cst_91 = arith.constant 1.000000e+00 : f32
    %221 = vector.broadcast %cst_91 : f32 to vector<8x192xf32>
    %222 = arith.addf %221, %220 : vector<8x192xf32>
    %223 = arith.divf %221, %222 : vector<8x192xf32>
    %224 = vector.extract_strided_slice %217 {offsets = [0, 192], sizes = [8, 64], strides = [1, 1]} : vector<8x256xf32> to vector<8x64xf32>
    %225 = math.tanh %224 : vector<8x64xf32>
    %226 = vector.extract_strided_slice %223 {offsets = [0, 0], sizes = [8, 64], strides = [1, 1]} : vector<8x192xf32> to vector<8x64xf32>
    %227 = vector.extract_strided_slice %223 {offsets = [0, 64], sizes = [8, 64], strides = [1, 1]} : vector<8x192xf32> to vector<8x64xf32>
    %228 = vector.extract_strided_slice %223 {offsets = [0, 128], sizes = [8, 64], strides = [1, 1]} : vector<8x192xf32> to vector<8x64xf32>
    %229 = arith.mulf %227, %5 : vector<8x64xf32>
    %230 = arith.mulf %226, %225 : vector<8x64xf32>
    %231 = arith.addf %229, %230 : vector<8x64xf32>
    %232 = math.tanh %231 : vector<8x64xf32>
    %233 = arith.mulf %228, %232 : vector<8x64xf32>
    %c8_92 = arith.constant 8 : index
    %c0_93 = arith.constant 0 : index
    %234 = vector.load %arg7[%c8_92, %c0_93] : memref<64x256xf32, #tpu.memory_space<vmem>>, vector<8x256xf32>
    %c48_94 = arith.constant 48 : index
    %c0_95 = arith.constant 0 : index
    %235 = vector.load %arg8[%c48_94, %c0_95] : memref<64x256xf32, #tpu.memory_space<vmem>>, vector<8x256xf32>
    %236 = arith.addf %234, %235 : vector<8x256xf32>
    %237 = arith.truncf %233 : vector<8x64xf32> to vector<8x64xbf16>
    %cst_96 = arith.constant dense<0.000000e+00> : vector<8x256xf32>
    %238 = tpu.matmul %237, %202, %cst_96 {dimension_numbers = #tpu.dot_dimension_numbers<[1], [0], [0], [1], [0, 0, 1, 1], [], []>} : vector<8x64xbf16>, vector<64x256xbf16>, vector<8x256xf32> -> vector<8x256xf32>
    %239 = arith.addf %236, %238 : vector<8x256xf32>
    %240 = vector.extract_strided_slice %239 {offsets = [0, 0], sizes = [8, 192], strides = [1, 1]} : vector<8x256xf32> to vector<8x192xf32>
    %241 = arith.negf %240 : vector<8x192xf32>
    %242 = math.exp %241 : vector<8x192xf32>
    %cst_97 = arith.constant 1.000000e+00 : f32
    %243 = vector.broadcast %cst_97 : f32 to vector<8x192xf32>
    %244 = arith.addf %243, %242 : vector<8x192xf32>
    %245 = arith.divf %243, %244 : vector<8x192xf32>
    %246 = vector.extract_strided_slice %239 {offsets = [0, 192], sizes = [8, 64], strides = [1, 1]} : vector<8x256xf32> to vector<8x64xf32>
    %247 = math.tanh %246 : vector<8x64xf32>
    %248 = vector.extract_strided_slice %245 {offsets = [0, 0], sizes = [8, 64], strides = [1, 1]} : vector<8x192xf32> to vector<8x64xf32>
    %249 = vector.extract_strided_slice %245 {offsets = [0, 64], sizes = [8, 64], strides = [1, 1]} : vector<8x192xf32> to vector<8x64xf32>
    %250 = vector.extract_strided_slice %245 {offsets = [0, 128], sizes = [8, 64], strides = [1, 1]} : vector<8x192xf32> to vector<8x64xf32>
    %251 = arith.mulf %249, %231 : vector<8x64xf32>
    %252 = arith.mulf %248, %247 : vector<8x64xf32>
    %253 = arith.addf %251, %252 : vector<8x64xf32>
    %254 = math.tanh %253 : vector<8x64xf32>
    %255 = arith.mulf %250, %254 : vector<8x64xf32>
    %c16_98 = arith.constant 16 : index
    %c0_99 = arith.constant 0 : index
    %256 = vector.load %arg7[%c16_98, %c0_99] : memref<64x256xf32, #tpu.memory_space<vmem>>, vector<8x256xf32>
    %c40_100 = arith.constant 40 : index
    %c0_101 = arith.constant 0 : index
    %257 = vector.load %arg8[%c40_100, %c0_101] : memref<64x256xf32, #tpu.memory_space<vmem>>, vector<8x256xf32>
    %258 = arith.addf %256, %257 : vector<8x256xf32>
    %259 = arith.truncf %255 : vector<8x64xf32> to vector<8x64xbf16>
    %cst_102 = arith.constant dense<0.000000e+00> : vector<8x256xf32>
    %260 = tpu.matmul %259, %202, %cst_102 {dimension_numbers = #tpu.dot_dimension_numbers<[1], [0], [0], [1], [0, 0, 1, 1], [], []>} : vector<8x64xbf16>, vector<64x256xbf16>, vector<8x256xf32> -> vector<8x256xf32>
    %261 = arith.addf %258, %260 : vector<8x256xf32>
    %262 = vector.extract_strided_slice %261 {offsets = [0, 0], sizes = [8, 192], strides = [1, 1]} : vector<8x256xf32> to vector<8x192xf32>
    %263 = arith.negf %262 : vector<8x192xf32>
    %264 = math.exp %263 : vector<8x192xf32>
    %cst_103 = arith.constant 1.000000e+00 : f32
    %265 = vector.broadcast %cst_103 : f32 to vector<8x192xf32>
    %266 = arith.addf %265, %264 : vector<8x192xf32>
    %267 = arith.divf %265, %266 : vector<8x192xf32>
    %268 = vector.extract_strided_slice %261 {offsets = [0, 192], sizes = [8, 64], strides = [1, 1]} : vector<8x256xf32> to vector<8x64xf32>
    %269 = math.tanh %268 : vector<8x64xf32>
    %270 = vector.extract_strided_slice %267 {offsets = [0, 0], sizes = [8, 64], strides = [1, 1]} : vector<8x192xf32> to vector<8x64xf32>
    %271 = vector.extract_strided_slice %267 {offsets = [0, 64], sizes = [8, 64], strides = [1, 1]} : vector<8x192xf32> to vector<8x64xf32>
    %272 = vector.extract_strided_slice %267 {offsets = [0, 128], sizes = [8, 64], strides = [1, 1]} : vector<8x192xf32> to vector<8x64xf32>
    %273 = arith.mulf %271, %253 : vector<8x64xf32>
    %274 = arith.mulf %270, %269 : vector<8x64xf32>
    %275 = arith.addf %273, %274 : vector<8x64xf32>
    %276 = math.tanh %275 : vector<8x64xf32>
    %277 = arith.mulf %272, %276 : vector<8x64xf32>
    %c24_104 = arith.constant 24 : index
    %c0_105 = arith.constant 0 : index
    %278 = vector.load %arg7[%c24_104, %c0_105] : memref<64x256xf32, #tpu.memory_space<vmem>>, vector<8x256xf32>
    %c32_106 = arith.constant 32 : index
    %c0_107 = arith.constant 0 : index
    %279 = vector.load %arg8[%c32_106, %c0_107] : memref<64x256xf32, #tpu.memory_space<vmem>>, vector<8x256xf32>
    %280 = arith.addf %278, %279 : vector<8x256xf32>
    %281 = arith.truncf %277 : vector<8x64xf32> to vector<8x64xbf16>
    %cst_108 = arith.constant dense<0.000000e+00> : vector<8x256xf32>
    %282 = tpu.matmul %281, %202, %cst_108 {dimension_numbers = #tpu.dot_dimension_numbers<[1], [0], [0], [1], [0, 0, 1, 1], [], []>} : vector<8x64xbf16>, vector<64x256xbf16>, vector<8x256xf32> -> vector<8x256xf32>
    %283 = arith.addf %280, %282 : vector<8x256xf32>
    %284 = vector.extract_strided_slice %283 {offsets = [0, 0], sizes = [8, 192], strides = [1, 1]} : vector<8x256xf32> to vector<8x192xf32>
    %285 = arith.negf %284 : vector<8x192xf32>
    %286 = math.exp %285 : vector<8x192xf32>
    %cst_109 = arith.constant 1.000000e+00 : f32
    %287 = vector.broadcast %cst_109 : f32 to vector<8x192xf32>
    %288 = arith.addf %287, %286 : vector<8x192xf32>
    %289 = arith.divf %287, %288 : vector<8x192xf32>
    %290 = vector.extract_strided_slice %283 {offsets = [0, 192], sizes = [8, 64], strides = [1, 1]} : vector<8x256xf32> to vector<8x64xf32>
    %291 = math.tanh %290 : vector<8x64xf32>
    %292 = vector.extract_strided_slice %289 {offsets = [0, 0], sizes = [8, 64], strides = [1, 1]} : vector<8x192xf32> to vector<8x64xf32>
    %293 = vector.extract_strided_slice %289 {offsets = [0, 64], sizes = [8, 64], strides = [1, 1]} : vector<8x192xf32> to vector<8x64xf32>
    %294 = vector.extract_strided_slice %289 {offsets = [0, 128], sizes = [8, 64], strides = [1, 1]} : vector<8x192xf32> to vector<8x64xf32>
    %295 = arith.mulf %293, %275 : vector<8x64xf32>
    %296 = arith.mulf %292, %291 : vector<8x64xf32>
    %297 = arith.addf %295, %296 : vector<8x64xf32>
    %298 = math.tanh %297 : vector<8x64xf32>
    %299 = arith.mulf %294, %298 : vector<8x64xf32>
    %c32_110 = arith.constant 32 : index
    %c0_111 = arith.constant 0 : index
    %300 = vector.load %arg7[%c32_110, %c0_111] : memref<64x256xf32, #tpu.memory_space<vmem>>, vector<8x256xf32>
    %c24_112 = arith.constant 24 : index
    %c0_113 = arith.constant 0 : index
    %301 = vector.load %arg8[%c24_112, %c0_113] : memref<64x256xf32, #tpu.memory_space<vmem>>, vector<8x256xf32>
    %302 = arith.addf %300, %301 : vector<8x256xf32>
    %303 = arith.truncf %299 : vector<8x64xf32> to vector<8x64xbf16>
    %cst_114 = arith.constant dense<0.000000e+00> : vector<8x256xf32>
    %304 = tpu.matmul %303, %202, %cst_114 {dimension_numbers = #tpu.dot_dimension_numbers<[1], [0], [0], [1], [0, 0, 1, 1], [], []>} : vector<8x64xbf16>, vector<64x256xbf16>, vector<8x256xf32> -> vector<8x256xf32>
    %305 = arith.addf %302, %304 : vector<8x256xf32>
    %306 = vector.extract_strided_slice %305 {offsets = [0, 0], sizes = [8, 192], strides = [1, 1]} : vector<8x256xf32> to vector<8x192xf32>
    %307 = arith.negf %306 : vector<8x192xf32>
    %308 = math.exp %307 : vector<8x192xf32>
    %cst_115 = arith.constant 1.000000e+00 : f32
    %309 = vector.broadcast %cst_115 : f32 to vector<8x192xf32>
    %310 = arith.addf %309, %308 : vector<8x192xf32>
    %311 = arith.divf %309, %310 : vector<8x192xf32>
    %312 = vector.extract_strided_slice %305 {offsets = [0, 192], sizes = [8, 64], strides = [1, 1]} : vector<8x256xf32> to vector<8x64xf32>
    %313 = math.tanh %312 : vector<8x64xf32>
    %314 = vector.extract_strided_slice %311 {offsets = [0, 0], sizes = [8, 64], strides = [1, 1]} : vector<8x192xf32> to vector<8x64xf32>
    %315 = vector.extract_strided_slice %311 {offsets = [0, 64], sizes = [8, 64], strides = [1, 1]} : vector<8x192xf32> to vector<8x64xf32>
    %316 = vector.extract_strided_slice %311 {offsets = [0, 128], sizes = [8, 64], strides = [1, 1]} : vector<8x192xf32> to vector<8x64xf32>
    %317 = arith.mulf %315, %297 : vector<8x64xf32>
    %318 = arith.mulf %314, %313 : vector<8x64xf32>
    %319 = arith.addf %317, %318 : vector<8x64xf32>
    %320 = math.tanh %319 : vector<8x64xf32>
    %321 = arith.mulf %316, %320 : vector<8x64xf32>
    %c40_116 = arith.constant 40 : index
    %c0_117 = arith.constant 0 : index
    %322 = vector.load %arg7[%c40_116, %c0_117] : memref<64x256xf32, #tpu.memory_space<vmem>>, vector<8x256xf32>
    %c16_118 = arith.constant 16 : index
    %c0_119 = arith.constant 0 : index
    %323 = vector.load %arg8[%c16_118, %c0_119] : memref<64x256xf32, #tpu.memory_space<vmem>>, vector<8x256xf32>
    %324 = arith.addf %322, %323 : vector<8x256xf32>
    %325 = arith.truncf %321 : vector<8x64xf32> to vector<8x64xbf16>
    %cst_120 = arith.constant dense<0.000000e+00> : vector<8x256xf32>
    %326 = tpu.matmul %325, %202, %cst_120 {dimension_numbers = #tpu.dot_dimension_numbers<[1], [0], [0], [1], [0, 0, 1, 1], [], []>} : vector<8x64xbf16>, vector<64x256xbf16>, vector<8x256xf32> -> vector<8x256xf32>
    %327 = arith.addf %324, %326 : vector<8x256xf32>
    %328 = vector.extract_strided_slice %327 {offsets = [0, 0], sizes = [8, 192], strides = [1, 1]} : vector<8x256xf32> to vector<8x192xf32>
    %329 = arith.negf %328 : vector<8x192xf32>
    %330 = math.exp %329 : vector<8x192xf32>
    %cst_121 = arith.constant 1.000000e+00 : f32
    %331 = vector.broadcast %cst_121 : f32 to vector<8x192xf32>
    %332 = arith.addf %331, %330 : vector<8x192xf32>
    %333 = arith.divf %331, %332 : vector<8x192xf32>
    %334 = vector.extract_strided_slice %327 {offsets = [0, 192], sizes = [8, 64], strides = [1, 1]} : vector<8x256xf32> to vector<8x64xf32>
    %335 = math.tanh %334 : vector<8x64xf32>
    %336 = vector.extract_strided_slice %333 {offsets = [0, 0], sizes = [8, 64], strides = [1, 1]} : vector<8x192xf32> to vector<8x64xf32>
    %337 = vector.extract_strided_slice %333 {offsets = [0, 64], sizes = [8, 64], strides = [1, 1]} : vector<8x192xf32> to vector<8x64xf32>
    %338 = vector.extract_strided_slice %333 {offsets = [0, 128], sizes = [8, 64], strides = [1, 1]} : vector<8x192xf32> to vector<8x64xf32>
    %339 = arith.mulf %337, %319 : vector<8x64xf32>
    %340 = arith.mulf %336, %335 : vector<8x64xf32>
    %341 = arith.addf %339, %340 : vector<8x64xf32>
    %342 = math.tanh %341 : vector<8x64xf32>
    %343 = arith.mulf %338, %342 : vector<8x64xf32>
    %c48_122 = arith.constant 48 : index
    %c0_123 = arith.constant 0 : index
    %344 = vector.load %arg7[%c48_122, %c0_123] : memref<64x256xf32, #tpu.memory_space<vmem>>, vector<8x256xf32>
    %c8_124 = arith.constant 8 : index
    %c0_125 = arith.constant 0 : index
    %345 = vector.load %arg8[%c8_124, %c0_125] : memref<64x256xf32, #tpu.memory_space<vmem>>, vector<8x256xf32>
    %346 = arith.addf %344, %345 : vector<8x256xf32>
    %347 = arith.truncf %343 : vector<8x64xf32> to vector<8x64xbf16>
    %cst_126 = arith.constant dense<0.000000e+00> : vector<8x256xf32>
    %348 = tpu.matmul %347, %202, %cst_126 {dimension_numbers = #tpu.dot_dimension_numbers<[1], [0], [0], [1], [0, 0, 1, 1], [], []>} : vector<8x64xbf16>, vector<64x256xbf16>, vector<8x256xf32> -> vector<8x256xf32>
    %349 = arith.addf %346, %348 : vector<8x256xf32>
    %350 = vector.extract_strided_slice %349 {offsets = [0, 0], sizes = [8, 192], strides = [1, 1]} : vector<8x256xf32> to vector<8x192xf32>
    %351 = arith.negf %350 : vector<8x192xf32>
    %352 = math.exp %351 : vector<8x192xf32>
    %cst_127 = arith.constant 1.000000e+00 : f32
    %353 = vector.broadcast %cst_127 : f32 to vector<8x192xf32>
    %354 = arith.addf %353, %352 : vector<8x192xf32>
    %355 = arith.divf %353, %354 : vector<8x192xf32>
    %356 = vector.extract_strided_slice %349 {offsets = [0, 192], sizes = [8, 64], strides = [1, 1]} : vector<8x256xf32> to vector<8x64xf32>
    %357 = math.tanh %356 : vector<8x64xf32>
    %358 = vector.extract_strided_slice %355 {offsets = [0, 0], sizes = [8, 64], strides = [1, 1]} : vector<8x192xf32> to vector<8x64xf32>
    %359 = vector.extract_strided_slice %355 {offsets = [0, 64], sizes = [8, 64], strides = [1, 1]} : vector<8x192xf32> to vector<8x64xf32>
    %360 = vector.extract_strided_slice %355 {offsets = [0, 128], sizes = [8, 64], strides = [1, 1]} : vector<8x192xf32> to vector<8x64xf32>
    %361 = arith.mulf %359, %341 : vector<8x64xf32>
    %362 = arith.mulf %358, %357 : vector<8x64xf32>
    %363 = arith.addf %361, %362 : vector<8x64xf32>
    %364 = math.tanh %363 : vector<8x64xf32>
    %365 = arith.mulf %360, %364 : vector<8x64xf32>
    %c56_128 = arith.constant 56 : index
    %c0_129 = arith.constant 0 : index
    %366 = vector.load %arg7[%c56_128, %c0_129] : memref<64x256xf32, #tpu.memory_space<vmem>>, vector<8x256xf32>
    %c0_130 = arith.constant 0 : index
    %c0_131 = arith.constant 0 : index
    %367 = vector.load %arg8[%c0_130, %c0_131] : memref<64x256xf32, #tpu.memory_space<vmem>>, vector<8x256xf32>
    %368 = arith.addf %366, %367 : vector<8x256xf32>
    %369 = arith.truncf %365 : vector<8x64xf32> to vector<8x64xbf16>
    %cst_132 = arith.constant dense<0.000000e+00> : vector<8x256xf32>
    %370 = tpu.matmul %369, %202, %cst_132 {dimension_numbers = #tpu.dot_dimension_numbers<[1], [0], [0], [1], [0, 0, 1, 1], [], []>} : vector<8x64xbf16>, vector<64x256xbf16>, vector<8x256xf32> -> vector<8x256xf32>
    %371 = arith.addf %368, %370 : vector<8x256xf32>
    %372 = vector.extract_strided_slice %371 {offsets = [0, 0], sizes = [8, 192], strides = [1, 1]} : vector<8x256xf32> to vector<8x192xf32>
    %373 = arith.negf %372 : vector<8x192xf32>
    %374 = math.exp %373 : vector<8x192xf32>
    %cst_133 = arith.constant 1.000000e+00 : f32
    %375 = vector.broadcast %cst_133 : f32 to vector<8x192xf32>
    %376 = arith.addf %375, %374 : vector<8x192xf32>
    %377 = arith.divf %375, %376 : vector<8x192xf32>
    %378 = vector.extract_strided_slice %371 {offsets = [0, 192], sizes = [8, 64], strides = [1, 1]} : vector<8x256xf32> to vector<8x64xf32>
    %379 = math.tanh %378 : vector<8x64xf32>
    %380 = vector.extract_strided_slice %377 {offsets = [0, 0], sizes = [8, 64], strides = [1, 1]} : vector<8x192xf32> to vector<8x64xf32>
    %381 = vector.extract_strided_slice %377 {offsets = [0, 64], sizes = [8, 64], strides = [1, 1]} : vector<8x192xf32> to vector<8x64xf32>
    %382 = vector.extract_strided_slice %377 {offsets = [0, 128], sizes = [8, 64], strides = [1, 1]} : vector<8x192xf32> to vector<8x64xf32>
    %383 = arith.mulf %381, %363 : vector<8x64xf32>
    %384 = arith.mulf %380, %379 : vector<8x64xf32>
    %385 = arith.addf %383, %384 : vector<8x64xf32>
    %386 = math.tanh %385 : vector<8x64xf32>
    %387 = arith.mulf %382, %386 : vector<8x64xf32>
    %c384 = arith.constant 384 : index
    %c0_134 = arith.constant 0 : index
    %388 = vector.load %arg2[%c384, %c0_134] : memref<640x256xbf16, #tpu.memory_space<vmem>>, vector<64x256xbf16>
    %c448 = arith.constant 448 : index
    %c0_135 = arith.constant 0 : index
    %389 = vector.load %arg2[%c448, %c0_135] : memref<640x256xbf16, #tpu.memory_space<vmem>>, vector<64x256xbf16>
    %cst_136 = arith.constant dense<0.000000e+00> : vector<64x256xf32>
    %390 = tpu.matmul %1, %388, %cst_136 {dimension_numbers = #tpu.dot_dimension_numbers<[1], [0], [0], [1], [0, 0, 1, 1], [], []>} : vector<64x64xbf16>, vector<64x256xbf16>, vector<64x256xf32> -> vector<64x256xf32>
    %c2 = arith.constant 2 : index
    %c0_137 = arith.constant 0 : index
    %391 = vector.load %arg1[%c2, %c0_137] : memref<8x256xf32, #tpu.memory_space<vmem>>, vector<1x256xf32>
    %392 = vector.broadcast %391 : vector<1x256xf32> to vector<64x256xf32>
    %393 = arith.addf %390, %392 : vector<64x256xf32>
    %c0_138 = arith.constant 0 : index
    %c0_139 = arith.constant 0 : index
    %394 = vector.load %arg7[%c0_138, %c0_139] : memref<64x256xf32, #tpu.memory_space<vmem>>, vector<64x256xf32>
    tpu.vector_store %arg7[%c0_138, %c0_139], %393 {strides = array<i32>} : memref<64x256xf32, #tpu.memory_space<vmem>>, vector<64x256xf32>,
    %c512 = arith.constant 512 : index
    %c0_140 = arith.constant 0 : index
    %395 = vector.load %arg2[%c512, %c0_140] : memref<640x256xbf16, #tpu.memory_space<vmem>>, vector<64x256xbf16>
    %c576 = arith.constant 576 : index
    %c0_141 = arith.constant 0 : index
    %396 = vector.load %arg2[%c576, %c0_141] : memref<640x256xbf16, #tpu.memory_space<vmem>>, vector<64x256xbf16>
    %c3 = arith.constant 3 : index
    %c0_142 = arith.constant 0 : index
    %397 = vector.load %arg1[%c3, %c0_142] : memref<8x256xf32, #tpu.memory_space<vmem>>, vector<1x256xf32>
    %398 = vector.shape_cast %397 : vector<1x256xf32> to vector<1x256xf32>
    %399 = vector.broadcast %398 : vector<1x256xf32> to vector<8x256xf32>
    %c0_143 = arith.constant 0 : index
    %c0_144 = arith.constant 0 : index
    %400 = vector.load %arg7[%c0_143, %c0_144] : memref<64x256xf32, #tpu.memory_space<vmem>>, vector<8x256xf32>
    %401 = arith.truncf %198 : vector<8x64xf32> to vector<8x64xbf16>
    %cst_145 = arith.constant dense<0.000000e+00> : vector<8x256xf32>
    %402 = tpu.matmul %401, %389, %cst_145 {dimension_numbers = #tpu.dot_dimension_numbers<[1], [0], [0], [1], [0, 0, 1, 1], [], []>} : vector<8x64xbf16>, vector<64x256xbf16>, vector<8x256xf32> -> vector<8x256xf32>
    %403 = arith.addf %400, %402 : vector<8x256xf32>
    %404 = vector.extract_strided_slice %403 {offsets = [0, 0], sizes = [8, 192], strides = [1, 1]} : vector<8x256xf32> to vector<8x192xf32>
    %405 = arith.negf %404 : vector<8x192xf32>
    %406 = math.exp %405 : vector<8x192xf32>
    %cst_146 = arith.constant 1.000000e+00 : f32
    %407 = vector.broadcast %cst_146 : f32 to vector<8x192xf32>
    %408 = arith.addf %407, %406 : vector<8x192xf32>
    %409 = arith.divf %407, %408 : vector<8x192xf32>
    %410 = vector.extract_strided_slice %403 {offsets = [0, 192], sizes = [8, 64], strides = [1, 1]} : vector<8x256xf32> to vector<8x64xf32>
    %411 = math.tanh %410 : vector<8x64xf32>
    %412 = vector.extract_strided_slice %409 {offsets = [0, 0], sizes = [8, 64], strides = [1, 1]} : vector<8x192xf32> to vector<8x64xf32>
    %413 = vector.extract_strided_slice %409 {offsets = [0, 64], sizes = [8, 64], strides = [1, 1]} : vector<8x192xf32> to vector<8x64xf32>
    %414 = vector.extract_strided_slice %409 {offsets = [0, 128], sizes = [8, 64], strides = [1, 1]} : vector<8x192xf32> to vector<8x64xf32>
    %415 = arith.mulf %413, %196 : vector<8x64xf32>
    %416 = arith.mulf %412, %411 : vector<8x64xf32>
    %417 = arith.addf %415, %416 : vector<8x64xf32>
    %418 = math.tanh %417 : vector<8x64xf32>
    %419 = arith.mulf %414, %418 : vector<8x64xf32>
    %420 = arith.truncf %419 : vector<8x64xf32> to vector<8x64xbf16>
    %cst_147 = arith.constant dense<0.000000e+00> : vector<8x256xf32>
    %421 = tpu.matmul %420, %395, %cst_147 {dimension_numbers = #tpu.dot_dimension_numbers<[1], [0], [0], [1], [0, 0, 1, 1], [], []>} : vector<8x64xbf16>, vector<64x256xbf16>, vector<8x256xf32> -> vector<8x256xf32>
    %422 = arith.truncf %387 : vector<8x64xf32> to vector<8x64xbf16>
    %cst_148 = arith.constant dense<0.000000e+00> : vector<8x256xf32>
    %423 = tpu.matmul %422, %396, %cst_148 {dimension_numbers = #tpu.dot_dimension_numbers<[1], [0], [0], [1], [0, 0, 1, 1], [], []>} : vector<8x64xbf16>, vector<64x256xbf16>, vector<8x256xf32> -> vector<8x256xf32>
    %424 = arith.addf %421, %423 : vector<8x256xf32>
    %425 = arith.addf %424, %399 : vector<8x256xf32>
    %426 = vector.extract_strided_slice %425 {offsets = [0, 0], sizes = [8, 192], strides = [1, 1]} : vector<8x256xf32> to vector<8x192xf32>
    %427 = arith.negf %426 : vector<8x192xf32>
    %428 = math.exp %427 : vector<8x192xf32>
    %cst_149 = arith.constant 1.000000e+00 : f32
    %429 = vector.broadcast %cst_149 : f32 to vector<8x192xf32>
    %430 = arith.addf %429, %428 : vector<8x192xf32>
    %431 = arith.divf %429, %430 : vector<8x192xf32>
    %432 = vector.extract_strided_slice %425 {offsets = [0, 192], sizes = [8, 64], strides = [1, 1]} : vector<8x256xf32> to vector<8x64xf32>
    %433 = math.tanh %432 : vector<8x64xf32>
    %434 = vector.extract_strided_slice %431 {offsets = [0, 0], sizes = [8, 64], strides = [1, 1]} : vector<8x192xf32> to vector<8x64xf32>
    %435 = vector.extract_strided_slice %431 {offsets = [0, 64], sizes = [8, 64], strides = [1, 1]} : vector<8x192xf32> to vector<8x64xf32>
    %436 = vector.extract_strided_slice %431 {offsets = [0, 128], sizes = [8, 64], strides = [1, 1]} : vector<8x192xf32> to vector<8x64xf32>
    %437 = arith.mulf %435, %385 : vector<8x64xf32>
    %438 = arith.mulf %434, %433 : vector<8x64xf32>
    %439 = arith.addf %437, %438 : vector<8x64xf32>
    %440 = math.tanh %439 : vector<8x64xf32>
    %441 = arith.mulf %436, %440 : vector<8x64xf32>
    %c8_150 = arith.constant 8 : index
    %c0_151 = arith.constant 0 : index
    %442 = vector.load %arg7[%c8_150, %c0_151] : memref<64x256xf32, #tpu.memory_space<vmem>>, vector<8x256xf32>
    %443 = arith.truncf %419 : vector<8x64xf32> to vector<8x64xbf16>
    %cst_152 = arith.constant dense<0.000000e+00> : vector<8x256xf32>
    %444 = tpu.matmul %443, %389, %cst_152 {dimension_numbers = #tpu.dot_dimension_numbers<[1], [0], [0], [1], [0, 0, 1, 1], [], []>} : vector<8x64xbf16>, vector<64x256xbf16>, vector<8x256xf32> -> vector<8x256xf32>
    %445 = arith.addf %442, %444 : vector<8x256xf32>
    %446 = vector.extract_strided_slice %445 {offsets = [0, 0], sizes = [8, 192], strides = [1, 1]} : vector<8x256xf32> to vector<8x192xf32>
    %447 = arith.negf %446 : vector<8x192xf32>
    %448 = math.exp %447 : vector<8x192xf32>
    %cst_153 = arith.constant 1.000000e+00 : f32
    %449 = vector.broadcast %cst_153 : f32 to vector<8x192xf32>
    %450 = arith.addf %449, %448 : vector<8x192xf32>
    %451 = arith.divf %449, %450 : vector<8x192xf32>
    %452 = vector.extract_strided_slice %445 {offsets = [0, 192], sizes = [8, 64], strides = [1, 1]} : vector<8x256xf32> to vector<8x64xf32>
    %453 = math.tanh %452 : vector<8x64xf32>
    %454 = vector.extract_strided_slice %451 {offsets = [0, 0], sizes = [8, 64], strides = [1, 1]} : vector<8x192xf32> to vector<8x64xf32>
    %455 = vector.extract_strided_slice %451 {offsets = [0, 64], sizes = [8, 64], strides = [1, 1]} : vector<8x192xf32> to vector<8x64xf32>
    %456 = vector.extract_strided_slice %451 {offsets = [0, 128], sizes = [8, 64], strides = [1, 1]} : vector<8x192xf32> to vector<8x64xf32>
    %457 = arith.mulf %455, %417 : vector<8x64xf32>
    %458 = arith.mulf %454, %453 : vector<8x64xf32>
    %459 = arith.addf %457, %458 : vector<8x64xf32>
    %460 = math.tanh %459 : vector<8x64xf32>
    %461 = arith.mulf %456, %460 : vector<8x64xf32>
    %462 = arith.truncf %461 : vector<8x64xf32> to vector<8x64xbf16>
    %cst_154 = arith.constant dense<0.000000e+00> : vector<8x256xf32>
    %463 = tpu.matmul %462, %395, %cst_154 {dimension_numbers = #tpu.dot_dimension_numbers<[1], [0], [0], [1], [0, 0, 1, 1], [], []>} : vector<8x64xbf16>, vector<64x256xbf16>, vector<8x256xf32> -> vector<8x256xf32>
    %464 = arith.truncf %441 : vector<8x64xf32> to vector<8x64xbf16>
    %cst_155 = arith.constant dense<0.000000e+00> : vector<8x256xf32>
    %465 = tpu.matmul %464, %396, %cst_155 {dimension_numbers = #tpu.dot_dimension_numbers<[1], [0], [0], [1], [0, 0, 1, 1], [], []>} : vector<8x64xbf16>, vector<64x256xbf16>, vector<8x256xf32> -> vector<8x256xf32>
    %466 = arith.addf %463, %465 : vector<8x256xf32>
    %467 = arith.addf %466, %399 : vector<8x256xf32>
    %468 = vector.extract_strided_slice %467 {offsets = [0, 0], sizes = [8, 192], strides = [1, 1]} : vector<8x256xf32> to vector<8x192xf32>
    %469 = arith.negf %468 : vector<8x192xf32>
    %470 = math.exp %469 : vector<8x192xf32>
    %cst_156 = arith.constant 1.000000e+00 : f32
    %471 = vector.broadcast %cst_156 : f32 to vector<8x192xf32>
    %472 = arith.addf %471, %470 : vector<8x192xf32>
    %473 = arith.divf %471, %472 : vector<8x192xf32>
    %474 = vector.extract_strided_slice %467 {offsets = [0, 192], sizes = [8, 64], strides = [1, 1]} : vector<8x256xf32> to vector<8x64xf32>
    %475 = math.tanh %474 : vector<8x64xf32>
    %476 = vector.extract_strided_slice %473 {offsets = [0, 0], sizes = [8, 64], strides = [1, 1]} : vector<8x192xf32> to vector<8x64xf32>
    %477 = vector.extract_strided_slice %473 {offsets = [0, 64], sizes = [8, 64], strides = [1, 1]} : vector<8x192xf32> to vector<8x64xf32>
    %478 = vector.extract_strided_slice %473 {offsets = [0, 128], sizes = [8, 64], strides = [1, 1]} : vector<8x192xf32> to vector<8x64xf32>
    %479 = arith.mulf %477, %439 : vector<8x64xf32>
    %480 = arith.mulf %476, %475 : vector<8x64xf32>
    %481 = arith.addf %479, %480 : vector<8x64xf32>
    %482 = math.tanh %481 : vector<8x64xf32>
    %483 = arith.mulf %478, %482 : vector<8x64xf32>
    %c16_157 = arith.constant 16 : index
    %c0_158 = arith.constant 0 : index
    %484 = vector.load %arg7[%c16_157, %c0_158] : memref<64x256xf32, #tpu.memory_space<vmem>>, vector<8x256xf32>
    %485 = arith.truncf %461 : vector<8x64xf32> to vector<8x64xbf16>
    %cst_159 = arith.constant dense<0.000000e+00> : vector<8x256xf32>
    %486 = tpu.matmul %485, %389, %cst_159 {dimension_numbers = #tpu.dot_dimension_numbers<[1], [0], [0], [1], [0, 0, 1, 1], [], []>} : vector<8x64xbf16>, vector<64x256xbf16>, vector<8x256xf32> -> vector<8x256xf32>
    %487 = arith.addf %484, %486 : vector<8x256xf32>
    %488 = vector.extract_strided_slice %487 {offsets = [0, 0], sizes = [8, 192], strides = [1, 1]} : vector<8x256xf32> to vector<8x192xf32>
    %489 = arith.negf %488 : vector<8x192xf32>
    %490 = math.exp %489 : vector<8x192xf32>
    %cst_160 = arith.constant 1.000000e+00 : f32
    %491 = vector.broadcast %cst_160 : f32 to vector<8x192xf32>
    %492 = arith.addf %491, %490 : vector<8x192xf32>
    %493 = arith.divf %491, %492 : vector<8x192xf32>
    %494 = vector.extract_strided_slice %487 {offsets = [0, 192], sizes = [8, 64], strides = [1, 1]} : vector<8x256xf32> to vector<8x64xf32>
    %495 = math.tanh %494 : vector<8x64xf32>
    %496 = vector.extract_strided_slice %493 {offsets = [0, 0], sizes = [8, 64], strides = [1, 1]} : vector<8x192xf32> to vector<8x64xf32>
    %497 = vector.extract_strided_slice %493 {offsets = [0, 64], sizes = [8, 64], strides = [1, 1]} : vector<8x192xf32> to vector<8x64xf32>
    %498 = vector.extract_strided_slice %493 {offsets = [0, 128], sizes = [8, 64], strides = [1, 1]} : vector<8x192xf32> to vector<8x64xf32>
    %499 = arith.mulf %497, %459 : vector<8x64xf32>
    %500 = arith.mulf %496, %495 : vector<8x64xf32>
    %501 = arith.addf %499, %500 : vector<8x64xf32>
    %502 = math.tanh %501 : vector<8x64xf32>
    %503 = arith.mulf %498, %502 : vector<8x64xf32>
    %504 = arith.truncf %503 : vector<8x64xf32> to vector<8x64xbf16>
    %cst_161 = arith.constant dense<0.000000e+00> : vector<8x256xf32>
    %505 = tpu.matmul %504, %395, %cst_161 {dimension_numbers = #tpu.dot_dimension_numbers<[1], [0], [0], [1], [0, 0, 1, 1], [], []>} : vector<8x64xbf16>, vector<64x256xbf16>, vector<8x256xf32> -> vector<8x256xf32>
    %506 = arith.truncf %483 : vector<8x64xf32> to vector<8x64xbf16>
    %cst_162 = arith.constant dense<0.000000e+00> : vector<8x256xf32>
    %507 = tpu.matmul %506, %396, %cst_162 {dimension_numbers = #tpu.dot_dimension_numbers<[1], [0], [0], [1], [0, 0, 1, 1], [], []>} : vector<8x64xbf16>, vector<64x256xbf16>, vector<8x256xf32> -> vector<8x256xf32>
    %508 = arith.addf %505, %507 : vector<8x256xf32>
    %509 = arith.addf %508, %399 : vector<8x256xf32>
    %510 = vector.extract_strided_slice %509 {offsets = [0, 0], sizes = [8, 192], strides = [1, 1]} : vector<8x256xf32> to vector<8x192xf32>
    %511 = arith.negf %510 : vector<8x192xf32>
    %512 = math.exp %511 : vector<8x192xf32>
    %cst_163 = arith.constant 1.000000e+00 : f32
    %513 = vector.broadcast %cst_163 : f32 to vector<8x192xf32>
    %514 = arith.addf %513, %512 : vector<8x192xf32>
    %515 = arith.divf %513, %514 : vector<8x192xf32>
    %516 = vector.extract_strided_slice %509 {offsets = [0, 192], sizes = [8, 64], strides = [1, 1]} : vector<8x256xf32> to vector<8x64xf32>
    %517 = math.tanh %516 : vector<8x64xf32>
    %518 = vector.extract_strided_slice %515 {offsets = [0, 0], sizes = [8, 64], strides = [1, 1]} : vector<8x192xf32> to vector<8x64xf32>
    %519 = vector.extract_strided_slice %515 {offsets = [0, 64], sizes = [8, 64], strides = [1, 1]} : vector<8x192xf32> to vector<8x64xf32>
    %520 = vector.extract_strided_slice %515 {offsets = [0, 128], sizes = [8, 64], strides = [1, 1]} : vector<8x192xf32> to vector<8x64xf32>
    %521 = arith.mulf %519, %481 : vector<8x64xf32>
    %522 = arith.mulf %518, %517 : vector<8x64xf32>
    %523 = arith.addf %521, %522 : vector<8x64xf32>
    %524 = math.tanh %523 : vector<8x64xf32>
    %525 = arith.mulf %520, %524 : vector<8x64xf32>
    %c24_164 = arith.constant 24 : index
    %c0_165 = arith.constant 0 : index
    %526 = vector.load %arg7[%c24_164, %c0_165] : memref<64x256xf32, #tpu.memory_space<vmem>>, vector<8x256xf32>
    %527 = arith.truncf %503 : vector<8x64xf32> to vector<8x64xbf16>
    %cst_166 = arith.constant dense<0.000000e+00> : vector<8x256xf32>
    %528 = tpu.matmul %527, %389, %cst_166 {dimension_numbers = #tpu.dot_dimension_numbers<[1], [0], [0], [1], [0, 0, 1, 1], [], []>} : vector<8x64xbf16>, vector<64x256xbf16>, vector<8x256xf32> -> vector<8x256xf32>
    %529 = arith.addf %526, %528 : vector<8x256xf32>
    %530 = vector.extract_strided_slice %529 {offsets = [0, 0], sizes = [8, 192], strides = [1, 1]} : vector<8x256xf32> to vector<8x192xf32>
    %531 = arith.negf %530 : vector<8x192xf32>
    %532 = math.exp %531 : vector<8x192xf32>
    %cst_167 = arith.constant 1.000000e+00 : f32
    %533 = vector.broadcast %cst_167 : f32 to vector<8x192xf32>
    %534 = arith.addf %533, %532 : vector<8x192xf32>
    %535 = arith.divf %533, %534 : vector<8x192xf32>
    %536 = vector.extract_strided_slice %529 {offsets = [0, 192], sizes = [8, 64], strides = [1, 1]} : vector<8x256xf32> to vector<8x64xf32>
    %537 = math.tanh %536 : vector<8x64xf32>
    %538 = vector.extract_strided_slice %535 {offsets = [0, 0], sizes = [8, 64], strides = [1, 1]} : vector<8x192xf32> to vector<8x64xf32>
    %539 = vector.extract_strided_slice %535 {offsets = [0, 64], sizes = [8, 64], strides = [1, 1]} : vector<8x192xf32> to vector<8x64xf32>
    %540 = vector.extract_strided_slice %535 {offsets = [0, 128], sizes = [8, 64], strides = [1, 1]} : vector<8x192xf32> to vector<8x64xf32>
    %541 = arith.mulf %539, %501 : vector<8x64xf32>
    %542 = arith.mulf %538, %537 : vector<8x64xf32>
    %543 = arith.addf %541, %542 : vector<8x64xf32>
    %544 = math.tanh %543 : vector<8x64xf32>
    %545 = arith.mulf %540, %544 : vector<8x64xf32>
    %546 = arith.truncf %545 : vector<8x64xf32> to vector<8x64xbf16>
    %cst_168 = arith.constant dense<0.000000e+00> : vector<8x256xf32>
    %547 = tpu.matmul %546, %395, %cst_168 {dimension_numbers = #tpu.dot_dimension_numbers<[1], [0], [0], [1], [0, 0, 1, 1], [], []>} : vector<8x64xbf16>, vector<64x256xbf16>, vector<8x256xf32> -> vector<8x256xf32>
    %548 = arith.truncf %525 : vector<8x64xf32> to vector<8x64xbf16>
    %cst_169 = arith.constant dense<0.000000e+00> : vector<8x256xf32>
    %549 = tpu.matmul %548, %396, %cst_169 {dimension_numbers = #tpu.dot_dimension_numbers<[1], [0], [0], [1], [0, 0, 1, 1], [], []>} : vector<8x64xbf16>, vector<64x256xbf16>, vector<8x256xf32> -> vector<8x256xf32>
    %550 = arith.addf %547, %549 : vector<8x256xf32>
    %551 = arith.addf %550, %399 : vector<8x256xf32>
    %552 = vector.extract_strided_slice %551 {offsets = [0, 0], sizes = [8, 192], strides = [1, 1]} : vector<8x256xf32> to vector<8x192xf32>
    %553 = arith.negf %552 : vector<8x192xf32>
    %554 = math.exp %553 : vector<8x192xf32>
    %cst_170 = arith.constant 1.000000e+00 : f32
    %555 = vector.broadcast %cst_170 : f32 to vector<8x192xf32>
    %556 = arith.addf %555, %554 : vector<8x192xf32>
    %557 = arith.divf %555, %556 : vector<8x192xf32>
    %558 = vector.extract_strided_slice %551 {offsets = [0, 192], sizes = [8, 64], strides = [1, 1]} : vector<8x256xf32> to vector<8x64xf32>
    %559 = math.tanh %558 : vector<8x64xf32>
    %560 = vector.extract_strided_slice %557 {offsets = [0, 0], sizes = [8, 64], strides = [1, 1]} : vector<8x192xf32> to vector<8x64xf32>
    %561 = vector.extract_strided_slice %557 {offsets = [0, 64], sizes = [8, 64], strides = [1, 1]} : vector<8x192xf32> to vector<8x64xf32>
    %562 = vector.extract_strided_slice %557 {offsets = [0, 128], sizes = [8, 64], strides = [1, 1]} : vector<8x192xf32> to vector<8x64xf32>
    %563 = arith.mulf %561, %523 : vector<8x64xf32>
    %564 = arith.mulf %560, %559 : vector<8x64xf32>
    %565 = arith.addf %563, %564 : vector<8x64xf32>
    %566 = math.tanh %565 : vector<8x64xf32>
    %567 = arith.mulf %562, %566 : vector<8x64xf32>
    %c32_171 = arith.constant 32 : index
    %c0_172 = arith.constant 0 : index
    %568 = vector.load %arg7[%c32_171, %c0_172] : memref<64x256xf32, #tpu.memory_space<vmem>>, vector<8x256xf32>
    %569 = arith.truncf %545 : vector<8x64xf32> to vector<8x64xbf16>
    %cst_173 = arith.constant dense<0.000000e+00> : vector<8x256xf32>
    %570 = tpu.matmul %569, %389, %cst_173 {dimension_numbers = #tpu.dot_dimension_numbers<[1], [0], [0], [1], [0, 0, 1, 1], [], []>} : vector<8x64xbf16>, vector<64x256xbf16>, vector<8x256xf32> -> vector<8x256xf32>
    %571 = arith.addf %568, %570 : vector<8x256xf32>
    %572 = vector.extract_strided_slice %571 {offsets = [0, 0], sizes = [8, 192], strides = [1, 1]} : vector<8x256xf32> to vector<8x192xf32>
    %573 = arith.negf %572 : vector<8x192xf32>
    %574 = math.exp %573 : vector<8x192xf32>
    %cst_174 = arith.constant 1.000000e+00 : f32
    %575 = vector.broadcast %cst_174 : f32 to vector<8x192xf32>
    %576 = arith.addf %575, %574 : vector<8x192xf32>
    %577 = arith.divf %575, %576 : vector<8x192xf32>
    %578 = vector.extract_strided_slice %571 {offsets = [0, 192], sizes = [8, 64], strides = [1, 1]} : vector<8x256xf32> to vector<8x64xf32>
    %579 = math.tanh %578 : vector<8x64xf32>
    %580 = vector.extract_strided_slice %577 {offsets = [0, 0], sizes = [8, 64], strides = [1, 1]} : vector<8x192xf32> to vector<8x64xf32>
    %581 = vector.extract_strided_slice %577 {offsets = [0, 64], sizes = [8, 64], strides = [1, 1]} : vector<8x192xf32> to vector<8x64xf32>
    %582 = vector.extract_strided_slice %577 {offsets = [0, 128], sizes = [8, 64], strides = [1, 1]} : vector<8x192xf32> to vector<8x64xf32>
    %583 = arith.mulf %581, %543 : vector<8x64xf32>
    %584 = arith.mulf %580, %579 : vector<8x64xf32>
    %585 = arith.addf %583, %584 : vector<8x64xf32>
    %586 = math.tanh %585 : vector<8x64xf32>
    %587 = arith.mulf %582, %586 : vector<8x64xf32>
    %588 = arith.truncf %587 : vector<8x64xf32> to vector<8x64xbf16>
    %cst_175 = arith.constant dense<0.000000e+00> : vector<8x256xf32>
    %589 = tpu.matmul %588, %395, %cst_175 {dimension_numbers = #tpu.dot_dimension_numbers<[1], [0], [0], [1], [0, 0, 1, 1], [], []>} : vector<8x64xbf16>, vector<64x256xbf16>, vector<8x256xf32> -> vector<8x256xf32>
    %590 = arith.truncf %567 : vector<8x64xf32> to vector<8x64xbf16>
    %cst_176 = arith.constant dense<0.000000e+00> : vector<8x256xf32>
    %591 = tpu.matmul %590, %396, %cst_176 {dimension_numbers = #tpu.dot_dimension_numbers<[1], [0], [0], [1], [0, 0, 1, 1], [], []>} : vector<8x64xbf16>, vector<64x256xbf16>, vector<8x256xf32> -> vector<8x256xf32>
    %592 = arith.addf %589, %591 : vector<8x256xf32>
    %593 = arith.addf %592, %399 : vector<8x256xf32>
    %594 = vector.extract_strided_slice %593 {offsets = [0, 0], sizes = [8, 192], strides = [1, 1]} : vector<8x256xf32> to vector<8x192xf32>
    %595 = arith.negf %594 : vector<8x192xf32>
    %596 = math.exp %595 : vector<8x192xf32>
    %cst_177 = arith.constant 1.000000e+00 : f32
    %597 = vector.broadcast %cst_177 : f32 to vector<8x192xf32>
    %598 = arith.addf %597, %596 : vector<8x192xf32>
    %599 = arith.divf %597, %598 : vector<8x192xf32>
    %600 = vector.extract_strided_slice %593 {offsets = [0, 192], sizes = [8, 64], strides = [1, 1]} : vector<8x256xf32> to vector<8x64xf32>
    %601 = math.tanh %600 : vector<8x64xf32>
    %602 = vector.extract_strided_slice %599 {offsets = [0, 0], sizes = [8, 64], strides = [1, 1]} : vector<8x192xf32> to vector<8x64xf32>
    %603 = vector.extract_strided_slice %599 {offsets = [0, 64], sizes = [8, 64], strides = [1, 1]} : vector<8x192xf32> to vector<8x64xf32>
    %604 = vector.extract_strided_slice %599 {offsets = [0, 128], sizes = [8, 64], strides = [1, 1]} : vector<8x192xf32> to vector<8x64xf32>
    %605 = arith.mulf %603, %565 : vector<8x64xf32>
    %606 = arith.mulf %602, %601 : vector<8x64xf32>
    %607 = arith.addf %605, %606 : vector<8x64xf32>
    %608 = math.tanh %607 : vector<8x64xf32>
    %609 = arith.mulf %604, %608 : vector<8x64xf32>
    %c40_178 = arith.constant 40 : index
    %c0_179 = arith.constant 0 : index
    %610 = vector.load %arg7[%c40_178, %c0_179] : memref<64x256xf32, #tpu.memory_space<vmem>>, vector<8x256xf32>
    %611 = arith.truncf %587 : vector<8x64xf32> to vector<8x64xbf16>
    %cst_180 = arith.constant dense<0.000000e+00> : vector<8x256xf32>
    %612 = tpu.matmul %611, %389, %cst_180 {dimension_numbers = #tpu.dot_dimension_numbers<[1], [0], [0], [1], [0, 0, 1, 1], [], []>} : vector<8x64xbf16>, vector<64x256xbf16>, vector<8x256xf32> -> vector<8x256xf32>
    %613 = arith.addf %610, %612 : vector<8x256xf32>
    %614 = vector.extract_strided_slice %613 {offsets = [0, 0], sizes = [8, 192], strides = [1, 1]} : vector<8x256xf32> to vector<8x192xf32>
    %615 = arith.negf %614 : vector<8x192xf32>
    %616 = math.exp %615 : vector<8x192xf32>
    %cst_181 = arith.constant 1.000000e+00 : f32
    %617 = vector.broadcast %cst_181 : f32 to vector<8x192xf32>
    %618 = arith.addf %617, %616 : vector<8x192xf32>
    %619 = arith.divf %617, %618 : vector<8x192xf32>
    %620 = vector.extract_strided_slice %613 {offsets = [0, 192], sizes = [8, 64], strides = [1, 1]} : vector<8x256xf32> to vector<8x64xf32>
    %621 = math.tanh %620 : vector<8x64xf32>
    %622 = vector.extract_strided_slice %619 {offsets = [0, 0], sizes = [8, 64], strides = [1, 1]} : vector<8x192xf32> to vector<8x64xf32>
    %623 = vector.extract_strided_slice %619 {offsets = [0, 64], sizes = [8, 64], strides = [1, 1]} : vector<8x192xf32> to vector<8x64xf32>
    %624 = vector.extract_strided_slice %619 {offsets = [0, 128], sizes = [8, 64], strides = [1, 1]} : vector<8x192xf32> to vector<8x64xf32>
    %625 = arith.mulf %623, %585 : vector<8x64xf32>
    %626 = arith.mulf %622, %621 : vector<8x64xf32>
    %627 = arith.addf %625, %626 : vector<8x64xf32>
    %628 = math.tanh %627 : vector<8x64xf32>
    %629 = arith.mulf %624, %628 : vector<8x64xf32>
    %630 = arith.truncf %629 : vector<8x64xf32> to vector<8x64xbf16>
    %cst_182 = arith.constant dense<0.000000e+00> : vector<8x256xf32>
    %631 = tpu.matmul %630, %395, %cst_182 {dimension_numbers = #tpu.dot_dimension_numbers<[1], [0], [0], [1], [0, 0, 1, 1], [], []>} : vector<8x64xbf16>, vector<64x256xbf16>, vector<8x256xf32> -> vector<8x256xf32>
    %632 = arith.truncf %609 : vector<8x64xf32> to vector<8x64xbf16>
    %cst_183 = arith.constant dense<0.000000e+00> : vector<8x256xf32>
    %633 = tpu.matmul %632, %396, %cst_183 {dimension_numbers = #tpu.dot_dimension_numbers<[1], [0], [0], [1], [0, 0, 1, 1], [], []>} : vector<8x64xbf16>, vector<64x256xbf16>, vector<8x256xf32> -> vector<8x256xf32>
    %634 = arith.addf %631, %633 : vector<8x256xf32>
    %635 = arith.addf %634, %399 : vector<8x256xf32>
    %636 = vector.extract_strided_slice %635 {offsets = [0, 0], sizes = [8, 192], strides = [1, 1]} : vector<8x256xf32> to vector<8x192xf32>
    %637 = arith.negf %636 : vector<8x192xf32>
    %638 = math.exp %637 : vector<8x192xf32>
    %cst_184 = arith.constant 1.000000e+00 : f32
    %639 = vector.broadcast %cst_184 : f32 to vector<8x192xf32>
    %640 = arith.addf %639, %638 : vector<8x192xf32>
    %641 = arith.divf %639, %640 : vector<8x192xf32>
    %642 = vector.extract_strided_slice %635 {offsets = [0, 192], sizes = [8, 64], strides = [1, 1]} : vector<8x256xf32> to vector<8x64xf32>
    %643 = math.tanh %642 : vector<8x64xf32>
    %644 = vector.extract_strided_slice %641 {offsets = [0, 0], sizes = [8, 64], strides = [1, 1]} : vector<8x192xf32> to vector<8x64xf32>
    %645 = vector.extract_strided_slice %641 {offsets = [0, 64], sizes = [8, 64], strides = [1, 1]} : vector<8x192xf32> to vector<8x64xf32>
    %646 = vector.extract_strided_slice %641 {offsets = [0, 128], sizes = [8, 64], strides = [1, 1]} : vector<8x192xf32> to vector<8x64xf32>
    %647 = arith.mulf %645, %607 : vector<8x64xf32>
    %648 = arith.mulf %644, %643 : vector<8x64xf32>
    %649 = arith.addf %647, %648 : vector<8x64xf32>
    %650 = math.tanh %649 : vector<8x64xf32>
    %651 = arith.mulf %646, %650 : vector<8x64xf32>
    %c48_185 = arith.constant 48 : index
    %c0_186 = arith.constant 0 : index
    %652 = vector.load %arg7[%c48_185, %c0_186] : memref<64x256xf32, #tpu.memory_space<vmem>>, vector<8x256xf32>
    %653 = arith.truncf %629 : vector<8x64xf32> to vector<8x64xbf16>
    %cst_187 = arith.constant dense<0.000000e+00> : vector<8x256xf32>
    %654 = tpu.matmul %653, %389, %cst_187 {dimension_numbers = #tpu.dot_dimension_numbers<[1], [0], [0], [1], [0, 0, 1, 1], [], []>} : vector<8x64xbf16>, vector<64x256xbf16>, vector<8x256xf32> -> vector<8x256xf32>
    %655 = arith.addf %652, %654 : vector<8x256xf32>
    %656 = vector.extract_strided_slice %655 {offsets = [0, 0], sizes = [8, 192], strides = [1, 1]} : vector<8x256xf32> to vector<8x192xf32>
    %657 = arith.negf %656 : vector<8x192xf32>
    %658 = math.exp %657 : vector<8x192xf32>
    %cst_188 = arith.constant 1.000000e+00 : f32
    %659 = vector.broadcast %cst_188 : f32 to vector<8x192xf32>
    %660 = arith.addf %659, %658 : vector<8x192xf32>
    %661 = arith.divf %659, %660 : vector<8x192xf32>
    %662 = vector.extract_strided_slice %655 {offsets = [0, 192], sizes = [8, 64], strides = [1, 1]} : vector<8x256xf32> to vector<8x64xf32>
    %663 = math.tanh %662 : vector<8x64xf32>
    %664 = vector.extract_strided_slice %661 {offsets = [0, 0], sizes = [8, 64], strides = [1, 1]} : vector<8x192xf32> to vector<8x64xf32>
    %665 = vector.extract_strided_slice %661 {offsets = [0, 64], sizes = [8, 64], strides = [1, 1]} : vector<8x192xf32> to vector<8x64xf32>
    %666 = vector.extract_strided_slice %661 {offsets = [0, 128], sizes = [8, 64], strides = [1, 1]} : vector<8x192xf32> to vector<8x64xf32>
    %667 = arith.mulf %665, %627 : vector<8x64xf32>
    %668 = arith.mulf %664, %663 : vector<8x64xf32>
    %669 = arith.addf %667, %668 : vector<8x64xf32>
    %670 = math.tanh %669 : vector<8x64xf32>
    %671 = arith.mulf %666, %670 : vector<8x64xf32>
    %672 = arith.truncf %671 : vector<8x64xf32> to vector<8x64xbf16>
    %cst_189 = arith.constant dense<0.000000e+00> : vector<8x256xf32>
    %673 = tpu.matmul %672, %395, %cst_189 {dimension_numbers = #tpu.dot_dimension_numbers<[1], [0], [0], [1], [0, 0, 1, 1], [], []>} : vector<8x64xbf16>, vector<64x256xbf16>, vector<8x256xf32> -> vector<8x256xf32>
    %674 = arith.truncf %651 : vector<8x64xf32> to vector<8x64xbf16>
    %cst_190 = arith.constant dense<0.000000e+00> : vector<8x256xf32>
    %675 = tpu.matmul %674, %396, %cst_190 {dimension_numbers = #tpu.dot_dimension_numbers<[1], [0], [0], [1], [0, 0, 1, 1], [], []>} : vector<8x64xbf16>, vector<64x256xbf16>, vector<8x256xf32> -> vector<8x256xf32>
    %676 = arith.addf %673, %675 : vector<8x256xf32>
    %677 = arith.addf %676, %399 : vector<8x256xf32>
    %678 = vector.extract_strided_slice %677 {offsets = [0, 0], sizes = [8, 192], strides = [1, 1]} : vector<8x256xf32> to vector<8x192xf32>
    %679 = arith.negf %678 : vector<8x192xf32>
    %680 = math.exp %679 : vector<8x192xf32>
    %cst_191 = arith.constant 1.000000e+00 : f32
    %681 = vector.broadcast %cst_191 : f32 to vector<8x192xf32>
    %682 = arith.addf %681, %680 : vector<8x192xf32>
    %683 = arith.divf %681, %682 : vector<8x192xf32>
    %684 = vector.extract_strided_slice %677 {offsets = [0, 192], sizes = [8, 64], strides = [1, 1]} : vector<8x256xf32> to vector<8x64xf32>
    %685 = math.tanh %684 : vector<8x64xf32>
    %686 = vector.extract_strided_slice %683 {offsets = [0, 0], sizes = [8, 64], strides = [1, 1]} : vector<8x192xf32> to vector<8x64xf32>
    %687 = vector.extract_strided_slice %683 {offsets = [0, 64], sizes = [8, 64], strides = [1, 1]} : vector<8x192xf32> to vector<8x64xf32>
    %688 = vector.extract_strided_slice %683 {offsets = [0, 128], sizes = [8, 64], strides = [1, 1]} : vector<8x192xf32> to vector<8x64xf32>
    %689 = arith.mulf %687, %649 : vector<8x64xf32>
    %690 = arith.mulf %686, %685 : vector<8x64xf32>
    %691 = arith.addf %689, %690 : vector<8x64xf32>
    %692 = math.tanh %691 : vector<8x64xf32>
    %693 = arith.mulf %688, %692 : vector<8x64xf32>
    %c56_192 = arith.constant 56 : index
    %c0_193 = arith.constant 0 : index
    %694 = vector.load %arg7[%c56_192, %c0_193] : memref<64x256xf32, #tpu.memory_space<vmem>>, vector<8x256xf32>
    %695 = arith.truncf %671 : vector<8x64xf32> to vector<8x64xbf16>
    %cst_194 = arith.constant dense<0.000000e+00> : vector<8x256xf32>
    %696 = tpu.matmul %695, %389, %cst_194 {dimension_numbers = #tpu.dot_dimension_numbers<[1], [0], [0], [1], [0, 0, 1, 1], [], []>} : vector<8x64xbf16>, vector<64x256xbf16>, vector<8x256xf32> -> vector<8x256xf32>
    %697 = arith.addf %694, %696 : vector<8x256xf32>
    %698 = vector.extract_strided_slice %697 {offsets = [0, 0], sizes = [8, 192], strides = [1, 1]} : vector<8x256xf32> to vector<8x192xf32>
    %699 = arith.negf %698 : vector<8x192xf32>
    %700 = math.exp %699 : vector<8x192xf32>
    %cst_195 = arith.constant 1.000000e+00 : f32
    %701 = vector.broadcast %cst_195 : f32 to vector<8x192xf32>
    %702 = arith.addf %701, %700 : vector<8x192xf32>
    %703 = arith.divf %701, %702 : vector<8x192xf32>
    %704 = vector.extract_strided_slice %697 {offsets = [0, 192], sizes = [8, 64], strides = [1, 1]} : vector<8x256xf32> to vector<8x64xf32>
    %705 = math.tanh %704 : vector<8x64xf32>
    %706 = vector.extract_strided_slice %703 {offsets = [0, 0], sizes = [8, 64], strides = [1, 1]} : vector<8x192xf32> to vector<8x64xf32>
    %707 = vector.extract_strided_slice %703 {offsets = [0, 64], sizes = [8, 64], strides = [1, 1]} : vector<8x192xf32> to vector<8x64xf32>
    %708 = vector.extract_strided_slice %703 {offsets = [0, 128], sizes = [8, 64], strides = [1, 1]} : vector<8x192xf32> to vector<8x64xf32>
    %709 = arith.mulf %707, %669 : vector<8x64xf32>
    %710 = arith.mulf %706, %705 : vector<8x64xf32>
    %711 = arith.addf %709, %710 : vector<8x64xf32>
    %712 = math.tanh %711 : vector<8x64xf32>
    %713 = arith.mulf %708, %712 : vector<8x64xf32>
    %714 = arith.truncf %713 : vector<8x64xf32> to vector<8x64xbf16>
    %cst_196 = arith.constant dense<0.000000e+00> : vector<8x256xf32>
    %715 = tpu.matmul %714, %395, %cst_196 {dimension_numbers = #tpu.dot_dimension_numbers<[1], [0], [0], [1], [0, 0, 1, 1], [], []>} : vector<8x64xbf16>, vector<64x256xbf16>, vector<8x256xf32> -> vector<8x256xf32>
    %716 = arith.truncf %693 : vector<8x64xf32> to vector<8x64xbf16>
    %cst_197 = arith.constant dense<0.000000e+00> : vector<8x256xf32>
    %717 = tpu.matmul %716, %396, %cst_197 {dimension_numbers = #tpu.dot_dimension_numbers<[1], [0], [0], [1], [0, 0, 1, 1], [], []>} : vector<8x64xbf16>, vector<64x256xbf16>, vector<8x256xf32> -> vector<8x256xf32>
    %718 = arith.addf %715, %717 : vector<8x256xf32>
    %719 = arith.addf %718, %399 : vector<8x256xf32>
    %720 = vector.extract_strided_slice %719 {offsets = [0, 0], sizes = [8, 192], strides = [1, 1]} : vector<8x256xf32> to vector<8x192xf32>
    %721 = arith.negf %720 : vector<8x192xf32>
    %722 = math.exp %721 : vector<8x192xf32>
    %cst_198 = arith.constant 1.000000e+00 : f32
    %723 = vector.broadcast %cst_198 : f32 to vector<8x192xf32>
    %724 = arith.addf %723, %722 : vector<8x192xf32>
    %725 = arith.divf %723, %724 : vector<8x192xf32>
    %726 = vector.extract_strided_slice %719 {offsets = [0, 192], sizes = [8, 64], strides = [1, 1]} : vector<8x256xf32> to vector<8x64xf32>
    %727 = math.tanh %726 : vector<8x64xf32>
    %728 = vector.extract_strided_slice %725 {offsets = [0, 0], sizes = [8, 64], strides = [1, 1]} : vector<8x192xf32> to vector<8x64xf32>
    %729 = vector.extract_strided_slice %725 {offsets = [0, 64], sizes = [8, 64], strides = [1, 1]} : vector<8x192xf32> to vector<8x64xf32>
    %730 = vector.extract_strided_slice %725 {offsets = [0, 128], sizes = [8, 64], strides = [1, 1]} : vector<8x192xf32> to vector<8x64xf32>
    %731 = arith.mulf %729, %691 : vector<8x64xf32>
    %732 = arith.mulf %728, %727 : vector<8x64xf32>
    %733 = arith.addf %731, %732 : vector<8x64xf32>
    %734 = math.tanh %733 : vector<8x64xf32>
    %735 = arith.mulf %730, %734 : vector<8x64xf32>
    %c0_199 = arith.constant 0 : index
    %c0_200 = arith.constant 0 : index
    %736 = vector.load %arg3[%c0_199, %c0_200] : memref<64x8xf32, #tpu.memory_space<vmem>>, vector<64x8xf32>
    %cst_201 = arith.constant dense<0.000000e+00> : vector<8x8xf32>
    %737 = tpu.matmul %735, %736, %cst_201 {dimension_numbers = #tpu.dot_dimension_numbers<[1], [0], [0], [1], [0, 0, 1, 1], [], []>} : vector<8x64xf32>, vector<64x8xf32>, vector<8x8xf32> -> vector<8x8xf32>
    %c0_202 = arith.constant 0 : index
    %c0_203 = arith.constant 0 : index
    %738 = vector.load %arg4[%c0_202, %c0_203] : memref<1x8xf32, #tpu.memory_space<vmem>>, vector<1x8xf32>
    %739 = vector.broadcast %738 : vector<1x8xf32> to vector<8x8xf32>
    %740 = arith.addf %737, %739 : vector<8x8xf32>
    %c0_204 = arith.constant 0 : index
    %c0_205 = arith.constant 0 : index
    %741 = vector.load %arg5[%c0_204, %c0_205] : memref<8x8xf32, #tpu.memory_space<vmem>>, vector<8x8xf32>
    tpu.vector_store %arg5[%c0_204, %c0_205], %740 {strides = array<i32>} : memref<8x8xf32, #tpu.memory_space<vmem>>, vector<8x8xf32>,
    return
  }
}

</mosaic_0001>

<bundles_post_ra>
// kernel: tpu_custom_call.1
= control target key start
LH: loop header
LB: loop body
LE: loop exit
PB: predicated region body
PF: predicated region fallthrough
CT: control target
= control target key end

     0   :  { %10 = vsyncpa [#allocation6], 0  ;;  %s6055_s0 = inlined_call_operand.vmem [shape: f32[96,64], index: 0, kind: input, shape index: {}]   ;;  %s6056_s1 = inlined_call_operand.vmem [shape: f32[8,256], index: 1, kind: input, shape index: {}]   ;;  %s6057_s2 = inlined_call_operand.hbm [shape: bf16[640,256], index: 2, kind: input, shape index: {}]   ;;  %s6058_s3 = inlined_call_operand.vmem [shape: f32[64,8], index: 3, kind: input, shape index: {}]   ;;  %s6059_s4 = inlined_call_operand.vmem [shape: f32[1,8], index: 4, kind: input, shape index: {}]   ;;  %s6060_s5 = inlined_call_operand.hbm [shape: f32[8,8], index: 5, kind: output, shape index: {}]  }
   0x1   :  { %11 = vsyncpa [#allocation7], 0  ;;  %s4911_s18 = smov [#allocation5]  }
   0x2   :  { %s21_s19 = sshll.u32 %s4911_s18, 4  ;;  %s22_s19 = int_to_ptr.vmem [resolvable:$true] %s21_s19 }
   0x3   :  { %s4875_s20 = scalar_lea.vmem %s22_s19, 10240  ;;  %p4880_p1 = scmp.lt.s32.totalorder %s22_s19, %s22_s19 }
   0x4   :  { %p4876_p0 = scmp.ne.s32.totalorder %s22_s19, %s4875_s20  ;;  %p4881_p2 = scmp.lt.s32.totalorder %s4875_s20, %s4875_s20 }
   0x6   :  { %p4882_p3 = por %p4881_p2, %p4880_p1 }
   0x8   :  { %p4883_p4 = pnand %p4882_p3, %p4876_p0 }
   0xa   :  { %4886 = shalt.err (!%p4883_p4)
}
   0xb   :  { %s4912_s21 = smov 128   ;;  %s4913_s22 = smov 8  }
   0xc   :  { %27 = dma.hbm_to_vmem [thread:$0]  %s6057_s2, 10240, %s22_s19, [#allocation6], %s4912_s21, %s4912_s21, %s4913_s22  }
   0xd   :  { %4907 = dma.done.wait [#allocation6], 10240  }
   0xe   :  { %4908 = vsyncadd [#allocation6], 4294957056  ;;  %v4914_v0 = vmov 0   ;;  %v4339_v1 = vld [vmem:[#allocation5 + $0x34] ss:$8 sps:$4 sm:$0xff]   ;;  %v36_v17 = vld [vmem:[%s6055_s0] sm:$0xff]  ;;  %v78_v39 = vlaneseq }
   0xf   :  { %173 = vmatprep.mubr.bf16.mxu0 %v4914_v0  ;;  %302 = vmatprep.mubr.bf16.mxu1 %v4914_v0  ;;  %v4341_v2 = vld [vmem:[#allocation5 + $0x74] ss:$8 sps:$4 sm:$0xff]   ;;  %v4343_v3 = vld [vmem:[#allocation5 + $0x30] ss:$8 sps:$4 sm:$0xff]   ;;  %v4345_v5 = vld [vmem:[#allocation5 + $0x24] ss:$8 sps:$4 sm:$0xff]  }
  0x10   :  { %149 = vmatprep.subr.bf16.mxu0 %v4339_v1  ;;  %v4344_v4 = vld [vmem:[#allocation5 + $0x70] ss:$8 sps:$4 sm:$0xff]   ;;  %278 = vmatprep.subr.bf16.mxu1 %v4341_v2  ;;  %v4347_v6 = vld [vmem:[#allocation5 + $0x64] ss:$8 sps:$4 sm:$0xff]   ;;  %v4349_v7 = vld [vmem:[#allocation5 + $0x20] ss:$8 sps:$4 sm:$0xff]  }
  0x11   :  { %150 = vmatpush1.bf16.msra.mxu0 %v4343_v3  ;;  %279 = vmatpush1.bf16.msra.mxu1 %v4344_v4  ;;  %v4350_v8 = vld [vmem:[#allocation5 + $0x60] ss:$8 sps:$4 sm:$0xff]   ;;  %v4351_v9 = vld [vmem:[#allocation5 + $0x14] ss:$8 sps:$4 sm:$0xff]   ;;  %v4355_v11 = vld [vmem:[#allocation5 + $0x10] ss:$8 sps:$4 sm:$0xff]  }
  0x12   :  { %151 = vmatprep.subr.bf16.mxu0 %v4345_v5  ;;  %280 = vmatprep.subr.bf16.mxu1 %v4347_v6  ;;  %v4353_v10 = vld [vmem:[#allocation5 + $0x54] ss:$8 sps:$4 sm:$0xff]   ;;  %v4356_v12 = vld [vmem:[#allocation5 + $0x50] ss:$8 sps:$4 sm:$0xff]   ;;  %v4357_v13 = vld [vmem:[#allocation5 + $0x4] ss:$8 sps:$4 sm:$0xff]  }
  0x13   :  { %v4359_v14 = vld [vmem:[#allocation5 + $0x44] ss:$8 sps:$4 sm:$0xff]   ;;  %v4361_v15 = vld [vmem:[#allocation5] ss:$8 sps:$4 sm:$0xff]   ;;  %v4960_v19 = vld [vmem:[#allocation5 + $0xb4] ss:$8 sps:$4 sm:$0xff]  }
  0x14   :  { %v4362_v16 = vld [vmem:[#allocation5 + $0x40] ss:$8 sps:$4 sm:$0xff]   ;;  %vm128_vm0 = vcmask 523264   ;;  %v4964_v21 = vld [vmem:[#allocation5 + $0xb0] ss:$8 sps:$4 sm:$0xff]   ;;  %v79_v40 = vshrl.u32 %v78_v39, 7 }
  0x15   :  { %152 = vmatpush1.bf16.msra.mxu0 %v4349_v7  ;;  %281 = vmatpush1.bf16.msra.mxu1 %v4350_v8  ;;  %v37_v18 = vld [vmem:[%s6055_s0 + $0x8] sm:$0xff]  ;;  %v38_v23 = vld [vmem:[%s6055_s0 + $0x10] sm:$0xff]  ;;  %v39_v24 = vld [vmem:[%s6055_s0 + $0x18] sm:$0xff]  ;;  %s4915_s19 = smov 64   ;;  %vm4917_vm1 = vmmov 0   ;;  %vm4077_vm2 = vcmask 64512  }
  0x16   :  { %153 = vmatprep.subr.bf16.mxu0 %v4351_v9  ;;  %282 = vmatprep.subr.bf16.mxu1 %v4353_v10  ;;  %v4962_v20 = vpack.c.bf16 %v37_v18, %v36_v17  ;;  %v4967_v22 = vld [vmem:[#allocation5 + $0xa4] ss:$8 sps:$4 sm:$0xff]   ;;  %v4976_v25 = vld [vmem:[#allocation5 + $0xa0] ss:$8 sps:$4 sm:$0xff]   ;;  %v4982_v26 = vld [vmem:[#allocation5 + $0x94] ss:$8 sps:$4 sm:$0xff]   ;;  %v4989_v27 = vpack.c.bf16 %v39_v24, %v38_v23 }
  0x17   :  { %v4991_v28 = vld [vmem:[#allocation5 + $0x90] ss:$8 sps:$4 sm:$0xff]   ;;  %v4995_v29 = vld [vmem:[#allocation5 + $0x84] ss:$8 sps:$4 sm:$0xff]   ;;  %v5009_v32 = vld [vmem:[#allocation5 + $0x80] ss:$8 sps:$4 sm:$0xff]  }
  0x18   :  { %v40_v30 = vld [vmem:[%s6055_s0 + $0x20] sm:$0xff]  ;;  %v41_v31 = vld [vmem:[%s6055_s0 + $0x28] sm:$0xff]  ;;  %v42_v34 = vld [vmem:[%s6055_s0 + $0x30] sm:$0xff]  ;;  %v5057_v41 = vsub.s32 0, %v79_v40  ;;  %v5063_v51 = vsub.s32 1, %v79_v40 }
  0x19   :  { %154 = vmatpush1.bf16.msra.mxu0 %v4355_v11  ;;  %283 = vmatpush1.bf16.msra.mxu1 %v4356_v12  ;;  %v5017_v33 = vpack.c.bf16 %v41_v31, %v40_v30  ;;  %v43_v35 = vld [vmem:[%s6055_s0 + $0x38] sm:$0xff]  ;;  %v48_v37 = vld [vmem:[%s6055_s0 + $0x40] sm:$0xff] }
  0x1a   :  { %155 = vmatprep.subr.bf16.mxu0 %v4357_v13  ;;  %284 = vmatprep.subr.bf16.mxu1 %v4359_v14  ;;  %v5036_v36 = vpack.c.bf16 %v43_v35, %v42_v34  ;;  %v365_v38 = vpack.c.bf16 %v48_v37, %v48_v37  ;;  %v76_v42 = vld [vmem:[%s6056_s1] ss:$8 sm:$0x3] }
  0x1b   :  { %v81_v43 = vrot.slane %v76_v42, %v5057_v41  ;;  %v5068_v57 = vrot.slane %v76_v42, %v5063_v51 }
  0x1d   :  { %156 = vmatpush1.bf16.msra.mxu0 %v4361_v15  ;;  %285 = vmatpush1.bf16.msra.mxu1 %v4362_v16 }
  0x1e   :  { %417 = vmatprep.subr.bf16.mxu0 %v4960_v19  ;;  %505 = vmatprep.subr.bf16.mxu1 %v4960_v19 }
  0x20   :  { %4102 = vmatmul.mubr.msk.bf16.vlgmr.msra.gmra.mxu0 %vm128_vm0, %v4962_v20  ;;  %4114 = vmatmul.mubr.msk.bf16.vlgmr.msra.gmra.mxu1 %vm128_vm0, %v4962_v20 }
  0x21   :  { %418 = vmatpush1.bf16.msra.mxu0 %v4964_v21  ;;  %183 = vmatprep.mubr.bf16.mxu0 %v4914_v0 }
  0x22   :  { %312 = vmatprep.mubr.bf16.mxu1 %v4914_v0  ;;  %419 = vmatprep.subr.bf16.mxu0 %v4967_v22 }
  0x23   :  { %506 = vmatpush1.bf16.msra.mxu1 %v4964_v21 }
  0x24   :  { %507 = vmatprep.subr.bf16.mxu1 %v4967_v22 }
  0x25   :  { %420 = vmatpush1.bf16.msra.mxu0 %v4976_v25 }
  0x26   :  { %421 = vmatprep.subr.bf16.mxu0 %v4982_v26 }
  0x27   :  { %508 = vmatpush1.bf16.msra.mxu1 %v4976_v25 }
  0x28   :  { %4103 = vmatmul.mubr.msk.bf16.gmra.mxu0 %vm128_vm0, %v4989_v27  ;;  %4115 = vmatmul.mubr.msk.bf16.gmra.mxu1 %vm128_vm0, %v4989_v27 }
  0x29   :  { %193 = vmatprep.mubr.bf16.mxu0 %v4914_v0  ;;  %322 = vmatprep.mubr.bf16.mxu1 %v4914_v0 }
  0x2a   :  { %422 = vmatpush1.bf16.msra.mxu0 %v4991_v28  ;;  %509 = vmatprep.subr.bf16.mxu1 %v4982_v26 }
  0x2b   :  { %423 = vmatprep.subr.bf16.mxu0 %v4995_v29  ;;  %510 = vmatpush1.bf16.msra.mxu1 %v4991_v28 }
  0x2c   :  { %511 = vmatprep.subr.bf16.mxu1 %v4995_v29 }
  0x2e   :  { %424 = vmatpush1.bf16.msra.mxu0 %v5009_v32 }
  0x2f   :  { %512 = vmatpush1.bf16.msra.mxu1 %v5009_v32  ;;  %589 = vmatprep.subr.bf16.mxu0 %v4960_v19 }
  0x30   :  { %4104 = vmatmul.mubr.msk.bf16.gmra.mxu0 %vm128_vm0, %v5017_v33  ;;  %4116 = vmatmul.mubr.msk.bf16.gmra.mxu1 %vm128_vm0, %v5017_v33 }
  0x31   :  { %203 = vmatprep.mubr.bf16.mxu0 %v4914_v0  ;;  %332 = vmatprep.mubr.bf16.mxu1 %v4914_v0 }
  0x32   :  { %673 = vmatprep.subr.bf16.mxu1 %v4960_v19 }
  0x38   :  { %4105 = vmatmul.mubr.msk.bf16.gmra.mxu0 %vm128_vm0, %v5036_v36  ;;  %4117 = vmatmul.mubr.msk.bf16.gmra.mxu1 %vm128_vm0, %v5036_v36 }
  0x39   :  { %441 = vmatprep.mubr.bf16.mxu0 %v4914_v0  ;;  %529 = vmatprep.mubr.bf16.mxu1 %v4914_v0 }
  0x40   :  { %4126 = vmatmul.mubr.msk.bf16.vlgmr.msra.gmra.mxu0 %vm128_vm0, %v365_v38 }
  0x41   :  { %590 = vmatpush1.bf16.msra.mxu0 %v4964_v21  ;;  %613 = vmatprep.mubr.bf16.mxu0 %v4914_v0 }
  0x42   :  { %591 = vmatprep.subr.bf16.mxu0 %v4967_v22 }
  0x45   :  { %592 = vmatpush1.bf16.msra.mxu0 %v4976_v25 }
  0x46   :  { %593 = vmatprep.subr.bf16.mxu0 %v4982_v26 }
  0x49   :  { %594 = vmatpush1.bf16.msra.mxu0 %v4991_v28 }
  0x4a   :  { %595 = vmatprep.subr.bf16.mxu0 %v4995_v29 }
  0x4d   :  { %596 = vmatpush1.bf16.msra.mxu0 %v5009_v32 }
  0x4e   :  { %757 = vmatprep.subr.bf16.mxu0 %v4960_v19 }
  0xe0   :  { %v175_v44 = vpop.f32.mrf.mxu0  ;;  %v304_v45 = vpop.f32.mrf.mxu1 }
  0xe1   :  { %v176_v46 = vadd.f32 %v175_v44, %v81_v43 }
  0xe2   :  { %v177_v47 = vpop.f32.mrf.mxu0  ;;  %v306_v48 = vpop.f32.mrf.mxu1 }
  0xe4   :  { %v179_v49 = vpop.f32.mrf.mxu0  ;;  %v308_v50 = vpop.f32.mrf.mxu1 }
  0xe5   :  { %v180_v52 = vadd.f32 %v179_v49, %v81_v43 }
  0xe6   :  { %v181_v53 = vpop.f32.mrf.mxu0  ;;  %v5065_v54 = vpop.f32.mrf.mxu1 }
  0xe7   :  { %v182_v38 = vadd.f32 %v181_v53, %v5068_v57  ;;  %v178_v53 = vadd.f32 %v177_v47, %v5068_v57 }
  0xe8   :  { %v185_v55 = vpop.f32.mrf.mxu0  ;;  %v314_v56 = vpop.f32.mrf.mxu1 }
  0xe9   :  { %v186_v58 = vadd.f32 %v185_v55, %v81_v43 }
  0xea   :  { %v187_v59 = vpop.f32.mrf.mxu0  ;;  %v316_v60 = vpop.f32.mrf.mxu1 }
  0xeb   :  { %v188_v61 = vadd.f32 %v187_v59, %v5068_v57 }
  0xec   :  { %v189_v62 = vpop.f32.mrf.mxu0  ;;  %v318_v63 = vpop.f32.mrf.mxu1 }
  0xed   :  { %v190_v1 = vadd.f32 %v189_v62, %v81_v43 }
  0xee   :  { %v191_v2 = vpop.f32.mrf.mxu0  ;;  %v320_v3 = vpop.f32.mrf.mxu1 }
  0xef   :  { %v192_v6 = vadd.f32 %v191_v2, %v5068_v57 }
  0xf0   :  { %v195_v4 = vpop.f32.mrf.mxu0  ;;  %v324_v5 = vpop.f32.mrf.mxu1 }
  0xf1   :  { %v196_v7 = vadd.f32 %v195_v4, %v81_v43  ;;  %v5072_v8 = vadd.f32 %v324_v5, %v190_v1 }
  0xf2   :  { %v197_v9 = vpop.f32.mrf.mxu0  ;;  %v326_v10 = vpop.f32.mrf.mxu1 }
  0xf3   :  { %v198_v11 = vadd.f32 %v197_v9, %v5068_v57  ;;  %v5075_v12 = vadd.f32 %v326_v10, %v192_v6  ;;  %v5077_v13 = vadd.f32 %v318_v63, %v196_v7 }
  0xf4   :  { %v199_v14 = vpop.f32.mrf.mxu0  ;;  %v328_v15 = vpop.f32.mrf.mxu1 }
  0xf5   :  { %v200_v16 = vadd.f32 %v199_v14, %v81_v43  ;;  %v5079_v17 = vadd.f32 %v328_v15, %v186_v58  ;;  %v5081_v18 = vadd.f32 %v320_v3, %v198_v11 }
  0xf6   :  { %v201_v23 = vpop.f32.mrf.mxu0  ;;  %v330_v24 = vpop.f32.mrf.mxu1 }
  0xf7   :  { %v202_v30 = vadd.f32 %v201_v23, %v5068_v57  ;;  %v5084_v31 = vadd.f32 %v330_v24, %v188_v61  ;;  %v5086_v34 = vadd.f32 %v314_v56, %v200_v16 }
  0xf8   :  { %v205_v35 = vpop.f32.mrf.mxu0  ;;  %v334_v37 = vpop.f32.mrf.mxu1 }
  0xf9   :  { %v206_v39 = vadd.f32 %v205_v35, %v81_v43  ;;  %v5089_v40 = vadd.f32 %v334_v37, %v180_v52  ;;  %v5091_v42 = vadd.f32 %v316_v60, %v202_v30 }
  0xfa   :  { %v5093_v44 = vpop.f32.mrf.mxu0  ;;  %v336_v49 = vpop.f32.mrf.mxu1 }
  0xfb   :  { %v5095_v55 = vadd.f32 %v336_v49, %v182_v38  ;;  %v5097_v58 = vadd.f32 %v308_v50, %v206_v39 }
  0xfc   :  { %v209_v59 = vpop.f32.mrf.mxu0  ;;  %v338_v61 = vpop.f32.mrf.mxu1 }
  0xfd   :  { %v210_v56 = vadd.f32 %v209_v59, %v81_v43  ;;  %v363_v62 = vadd.f32 %v338_v61, %v176_v46  ;;  %v50_v46 = vld [vmem:[%s6055_s0 + $0x50] sm:$0xff] }
  0xfe   :  { %v211_v63 = vpop.f32.mrf.mxu0  ;;  %v340_v1 = vpop.f32.mrf.mxu1 }
  0xff   :  { %v212_v52 = vadd.f32 %v211_v63, %v5068_v57  ;;  %v5101_v2 = vadd.f32 %v304_v45, %v210_v56  ;;  %v364_v3 = vadd.f32 %v340_v1, %v178_v53 }
 0x100   :  { %v443_v60 = vpop.f32.mrf.mxu0 }
 0x101   :  { %v450_v4 = vadd.f32 %v443_v60, %v363_v62  ;;  %v5103_v5 = vadd.f32 %v306_v48, %v212_v52 }
 0x102   :  { %v445_v6 = vpop.f32.mrf.mxu0 }
 0x103   :  { %v451_v50 = vadd.f32 %v445_v6, %v364_v3  ;;  %v4127_v45 = vmul.f32 -1.442695, %v450_v4 }
 0x104   :  { %v447_v7 = vpop.f32.mrf.mxu0 }
 0x105   :  { %4459 = vtanh.f32 %v451_v50  ;;  %v4128_v35 = vmul.f32 -1.442695, %v451_v50 }
 0x106   :  { %v448_v9 = vpop.f32.mrf.mxu0  ;;  %4461 = vpow2.f32 %v4127_v45 }
 0x112   :  { %v4460_v43 = vpop.eup %4459 }
 0x113   :  { %471 = vrot.lane.b32.xlu0 %v4460_v43, %s4915_s19  ;;  %v4462_v47 = vpop.eup %4461 }
 0x114   :  { %v458_v48 = vadd.f32 1.0, %v4462_v47 }
 0x116   :  { %4463 = vrcp.f32 %v458_v48 }
 0x117   :  { %466 = vrot.lane.b32.xlu0 %v50_v46, %s4915_s19 }
 0x123   :  { %v4464_v10 = vpop.eup %4463 }
 0x185   :  { %v472_v11 = vpop.permute.xlu0 %471 }
 0x186   :  { %v474_v14 = vmul.f32 %v4464_v10, %v472_v11 }
 0x188   :  { %476 = vrot.lane.b32.xlu1 %v474_v14, %s4915_s19 }
 0x189   :  { %v467_v15 = vpop.permute.xlu0 %466 }
 0x18a   :  { %v469_v16 = vmul.f32 %v4464_v10, %v467_v15 }
 0x1fa   :  { %v477_v23 = vpop.permute.xlu1 %476 }
 0x1fb   :  { %v479_v24 = vadd.f32 %v477_v23, %v469_v16 }
 0x1fd   :  { %4465 = vtanh.f32 %v479_v24 }
 0x1fe   :  { %4467 = vpow2.f32 %v4128_v35 }
 0x20a   :  { %v4466_v30 = vpop.eup %4465 }
 0x20b   :  { %482 = vrot.lane.b32.xlu1 %v4466_v30, %s4915_s19  ;;  %v4468_v37 = vpop.eup %4467 }
 0x20c   :  { %v459_v38 = vadd.f32 1.0, %v4468_v37 }
 0x20e   :  { %4469 = vrcp.f32 %v459_v38 }
 0x21b   :  { %v4470_v39 = vpop.eup %4469 }
 0x27d   :  { %v483_v49 = vpop.permute.xlu1 %482 }
 0x27e   :  { %v485_v59 = vmul.f32 %v4470_v39, %v483_v49 }
 0x280   :  { %486 = vst.msk [vmem:[#allocation2] sm:$0xff] %vm128_vm0, %v485_v59  ;;  %v493_v61 = vpack.c.bf16 %v485_v59, %v485_v59 }
 0x282   :  { %4129 = vmatmul.mubr.msk.bf16.vlgmr.msra.gmra.mxu1 %vm128_vm0, %v493_v61 }
 0x283   :  { %674 = vmatpush1.bf16.msra.mxu1 %v4964_v21  ;;  %697 = vmatprep.mubr.bf16.mxu1 %v4914_v0 }
 0x284   :  { %675 = vmatprep.subr.bf16.mxu1 %v4967_v22 }
 0x287   :  { %676 = vmatpush1.bf16.msra.mxu1 %v4976_v25 }
 0x288   :  { %677 = vmatprep.subr.bf16.mxu1 %v4982_v26 }
 0x28b   :  { %678 = vmatpush1.bf16.msra.mxu1 %v4991_v28 }
 0x28c   :  { %679 = vmatprep.subr.bf16.mxu1 %v4995_v29 }
 0x28f   :  { %680 = vmatpush1.bf16.msra.mxu1 %v5009_v32 }
 0x290   :  { %841 = vmatprep.subr.bf16.mxu1 %v4960_v19 }
 0x342   :  { %v531_v56 = vpop.f32.mrf.mxu1 }
 0x343   :  { %v538_v62 = vadd.f32 %v531_v56, %v5089_v40 }
 0x344   :  { %v533_v63 = vpop.f32.mrf.mxu1 }
 0x345   :  { %v539_v1 = vadd.f32 %v533_v63, %v5095_v55  ;;  %v4130_v3 = vmul.f32 -1.442695, %v538_v62 }
 0x346   :  { %v535_v53 = vpop.f32.mrf.mxu1 }
 0x347   :  { %4471 = vtanh.f32 %v539_v1  ;;  %v4131_v45 = vmul.f32 -1.442695, %v539_v1 }
 0x348   :  { %v536_v52 = vpop.f32.mrf.mxu1  ;;  %4473 = vpow2.f32 %v4130_v3 }
 0x354   :  { %v4472_v60 = vpop.eup %4471 }
 0x355   :  { %555 = vrot.lane.b32.xlu0 %v4472_v60, %s4915_s19  ;;  %v4474_v4 = vpop.eup %4473 }
 0x356   :  { %v546_v6 = vadd.f32 1.0, %v4474_v4 }
 0x358   :  { %4475 = vrcp.f32 %v546_v6 }
 0x365   :  { %v4476_v50 = vpop.eup %4475 }
 0x366   :  { %v553_v40 = vmul.f32 %v4476_v50, %v479_v24 }
 0x3c7   :  { %v556_v7 = vpop.permute.xlu0 %555 }
 0x3c8   :  { %v558_v9 = vmul.f32 %v4476_v50, %v556_v7 }
 0x3ca   :  { %560 = vrot.lane.b32.xlu1 %v558_v9, %s4915_s19 }
 0x43c   :  { %v561_v43 = vpop.permute.xlu1 %560 }
 0x43d   :  { %v563_v46 = vadd.f32 %v561_v43, %v553_v40 }
 0x43f   :  { %4477 = vtanh.f32 %v563_v46 }
 0x440   :  { %4479 = vpow2.f32 %v4131_v45 }
 0x44c   :  { %v4478_v55 = vpop.eup %4477 }
 0x44d   :  { %566 = vrot.lane.b32.xlu0 %v4478_v55, %s4915_s19  ;;  %v4480_v47 = vpop.eup %4479 }
 0x44e   :  { %v547_v48 = vadd.f32 1.0, %v4480_v47 }
 0x450   :  { %4481 = vrcp.f32 %v547_v48 }
 0x45d   :  { %v4482_v10 = vpop.eup %4481 }
 0x4bf   :  { %v567_v11 = vpop.permute.xlu0 %566 }
 0x4c0   :  { %v569_v14 = vmul.f32 %v4482_v10, %v567_v11 }
 0x4c2   :  { %570 = vst.msk [vmem:[#allocation2 + $0x8] sm:$0xff] %vm128_vm0, %v569_v14  ;;  %v577_v15 = vpack.c.bf16 %v569_v14, %v569_v14 }
 0x4c4   :  { %4132 = vmatmul.mubr.msk.bf16.vlgmr.msra.gmra.mxu0 %vm128_vm0, %v577_v15 }
 0x4c5   :  { %758 = vmatpush1.bf16.msra.mxu0 %v4964_v21  ;;  %781 = vmatprep.mubr.bf16.mxu0 %v4914_v0 }
 0x4c6   :  { %759 = vmatprep.subr.bf16.mxu0 %v4967_v22 }
 0x4c9   :  { %760 = vmatpush1.bf16.msra.mxu0 %v4976_v25 }
 0x4ca   :  { %761 = vmatprep.subr.bf16.mxu0 %v4982_v26 }
 0x4cd   :  { %762 = vmatpush1.bf16.msra.mxu0 %v4991_v28 }
 0x4ce   :  { %763 = vmatprep.subr.bf16.mxu0 %v4995_v29 }
 0x4d1   :  { %764 = vmatpush1.bf16.msra.mxu0 %v5009_v32 }
 0x4d2   :  { %925 = vmatprep.subr.bf16.mxu0 %v4960_v19 }
 0x584   :  { %v615_v16 = vpop.f32.mrf.mxu0 }
 0x585   :  { %v622_v23 = vadd.f32 %v615_v16, %v5079_v17 }
 0x586   :  { %v617_v24 = vpop.f32.mrf.mxu0 }
 0x587   :  { %v623_v30 = vadd.f32 %v617_v24, %v5084_v31  ;;  %v4133_v39 = vmul.f32 -1.442695, %v622_v23 }
 0x588   :  { %v619_v35 = vpop.f32.mrf.mxu0 }
 0x589   :  { %4483 = vtanh.f32 %v623_v30  ;;  %v4134_v53 = vmul.f32 -1.442695, %v623_v30 }
 0x58a   :  { %v620_v37 = vpop.f32.mrf.mxu0  ;;  %4485 = vpow2.f32 %v4133_v39 }
 0x596   :  { %v4484_v38 = vpop.eup %4483 }
 0x597   :  { %639 = vrot.lane.b32.xlu1 %v4484_v38, %s4915_s19  ;;  %v4486_v49 = vpop.eup %4485 }
 0x598   :  { %v630_v59 = vadd.f32 1.0, %v4486_v49 }
 0x59a   :  { %4487 = vrcp.f32 %v630_v59 }
 0x5a7   :  { %v4488_v61 = vpop.eup %4487 }
 0x5a8   :  { %v637_v17 = vmul.f32 %v4488_v61, %v563_v46 }
 0x609   :  { %v640_v56 = vpop.permute.xlu1 %639 }
 0x60a   :  { %v642_v62 = vmul.f32 %v4488_v61, %v640_v56 }
 0x60c   :  { %644 = vrot.lane.b32.xlu0 %v642_v62, %s4915_s19 }
 0x67e   :  { %v645_v63 = vpop.permute.xlu0 %644 }
 0x67f   :  { %v647_v1 = vadd.f32 %v645_v63, %v637_v17 }
 0x681   :  { %4489 = vtanh.f32 %v647_v1 }
 0x682   :  { %4491 = vpow2.f32 %v4134_v53 }
 0x68e   :  { %v4490_v31 = vpop.eup %4489 }
 0x68f   :  { %650 = vrot.lane.b32.xlu1 %v4490_v31, %s4915_s19  ;;  %v4492_v52 = vpop.eup %4491 }
 0x690   :  { %v631_v60 = vadd.f32 1.0, %v4492_v52 }
 0x692   :  { %4493 = vrcp.f32 %v631_v60 }
 0x69f   :  { %v4494_v3 = vpop.eup %4493 }
 0x701   :  { %v651_v4 = vpop.permute.xlu1 %650 }
 0x702   :  { %v653_v6 = vmul.f32 %v4494_v3, %v651_v4 }
 0x704   :  { %654 = vst.msk [vmem:[#allocation2 + $0x10] sm:$0xff] %vm128_vm0, %v653_v6  ;;  %v661_v50 = vpack.c.bf16 %v653_v6, %v653_v6 }
 0x706   :  { %4135 = vmatmul.mubr.msk.bf16.vlgmr.msra.gmra.mxu1 %vm128_vm0, %v661_v50 }
 0x707   :  { %842 = vmatpush1.bf16.msra.mxu1 %v4964_v21  ;;  %865 = vmatprep.mubr.bf16.mxu1 %v4914_v0 }
 0x708   :  { %843 = vmatprep.subr.bf16.mxu1 %v4967_v22 }
 0x70b   :  { %844 = vmatpush1.bf16.msra.mxu1 %v4976_v25 }
 0x70c   :  { %845 = vmatprep.subr.bf16.mxu1 %v4982_v26 }
 0x70f   :  { %846 = vmatpush1.bf16.msra.mxu1 %v4991_v28 }
 0x710   :  { %847 = vmatprep.subr.bf16.mxu1 %v4995_v29 }
 0x713   :  { %848 = vmatpush1.bf16.msra.mxu1 %v5009_v32 }
 0x714   :  { %1009 = vmatprep.subr.bf16.mxu1 %v4960_v19 }
 0x7c6   :  { %v699_v7 = vpop.f32.mrf.mxu1 }
 0x7c7   :  { %v706_v9 = vadd.f32 %v699_v7, %v5072_v8 }
 0x7c8   :  { %v701_v40 = vpop.f32.mrf.mxu1 }
 0x7c9   :  { %v707_v43 = vadd.f32 %v701_v40, %v5075_v12  ;;  %v4136_v47 = vmul.f32 -1.442695, %v706_v9 }
 0x7ca   :  { %v703_v46 = vpop.f32.mrf.mxu1 }
 0x7cb   :  { %4495 = vtanh.f32 %v707_v43  ;;  %v4137_v23 = vmul.f32 -1.442695, %v707_v43 }
 0x7cc   :  { %v704_v55 = vpop.f32.mrf.mxu1  ;;  %4497 = vpow2.f32 %v4136_v47 }
 0x7d8   :  { %v4496_v45 = vpop.eup %4495 }
 0x7d9   :  { %723 = vrot.lane.b32.xlu0 %v4496_v45, %s4915_s19  ;;  %v4498_v48 = vpop.eup %4497 }
 0x7da   :  { %v714_v10 = vadd.f32 1.0, %v4498_v48 }
 0x7dc   :  { %4499 = vrcp.f32 %v714_v10 }
 0x7e9   :  { %v4500_v11 = vpop.eup %4499 }
 0x7ea   :  { %v721_v8 = vmul.f32 %v4500_v11, %v647_v1 }
 0x84b   :  { %v724_v14 = vpop.permute.xlu0 %723 }
 0x84c   :  { %v726_v19 = vmul.f32 %v4500_v11, %v724_v14 }
 0x84e   :  { %728 = vrot.lane.b32.xlu1 %v726_v19, %s4915_s19 }
 0x8c0   :  { %v729_v15 = vpop.permute.xlu1 %728 }
 0x8c1   :  { %v731_v16 = vadd.f32 %v729_v15, %v721_v8 }
 0x8c3   :  { %4501 = vtanh.f32 %v731_v16 }
 0x8c4   :  { %4503 = vpow2.f32 %v4137_v23 }
 0x8d0   :  { %v4502_v12 = vpop.eup %4501 }
 0x8d1   :  { %734 = vrot.lane.b32.xlu0 %v4502_v12, %s4915_s19  ;;  %v4504_v24 = vpop.eup %4503 }
 0x8d2   :  { %v715_v30 = vadd.f32 1.0, %v4504_v24 }
 0x8d4   :  { %4505 = vrcp.f32 %v715_v30 }
 0x8e1   :  { %v4506_v35 = vpop.eup %4505 }
 0x943   :  { %v735_v37 = vpop.permute.xlu0 %734 }
 0x944   :  { %v737_v38 = vmul.f32 %v4506_v35, %v735_v37  ;;  %v4375_v37 = vld [vmem:[#allocation5 + $0xf0] ss:$8 sps:$4 sm:$0xff]  }
 0x946   :  { %738 = vst.msk [vmem:[#allocation2 + $0x18] sm:$0xff] %vm128_vm0, %v737_v38  ;;  %v745_v39 = vpack.c.bf16 %v737_v38, %v737_v38 }
 0x948   :  { %4138 = vmatmul.mubr.msk.bf16.vlgmr.msra.gmra.mxu0 %vm128_vm0, %v745_v39  ;;  %v4380_v39 = vld [vmem:[#allocation5 + $0xe4] ss:$8 sps:$4 sm:$0xff]  }
 0x949   :  { %926 = vmatpush1.bf16.msra.mxu0 %v4964_v21  ;;  %949 = vmatprep.mubr.bf16.mxu0 %v4914_v0 }
 0x94a   :  { %927 = vmatprep.subr.bf16.mxu0 %v4967_v22 }
 0x94d   :  { %928 = vmatpush1.bf16.msra.mxu0 %v4976_v25 }
 0x94e   :  { %929 = vmatprep.subr.bf16.mxu0 %v4982_v26 }
 0x951   :  { %930 = vmatpush1.bf16.msra.mxu0 %v4991_v28 }
 0x952   :  { %931 = vmatprep.subr.bf16.mxu0 %v4995_v29 }
 0x955   :  { %932 = vmatpush1.bf16.msra.mxu0 %v5009_v32 }
 0xa08   :  { %v783_v49 = vpop.f32.mrf.mxu0 }
 0xa09   :  { %v790_v59 = vadd.f32 %v783_v49, %v5077_v13  ;;  %v4378_v49 = vld [vmem:[#allocation5 + $0xe0] ss:$8 sps:$4 sm:$0xff]  }
 0xa0a   :  { %v785_v61 = vpop.f32.mrf.mxu0 }
 0xa0b   :  { %v791_v56 = vadd.f32 %v785_v61, %v5081_v18  ;;  %v4139_v1 = vmul.f32 -1.442695, %v790_v59  ;;  %v4383_v59 = vld [vmem:[#allocation5 + $0xd4] ss:$8 sps:$4 sm:$0xff]   ;;  %v4381_v61 = vld [vmem:[#allocation5 + $0xd0] ss:$8 sps:$4 sm:$0xff]  }
 0xa0c   :  { %v787_v62 = vpop.f32.mrf.mxu0 }
 0xa0d   :  { %4507 = vtanh.f32 %v791_v56  ;;  %v4140_v50 = vmul.f32 -1.442695, %v791_v56  ;;  %v4386_v56 = vld [vmem:[#allocation5 + $0xc4] ss:$8 sps:$4 sm:$0xff]   ;;  %v4384_v62 = vld [vmem:[#allocation5 + $0xc0] ss:$8 sps:$4 sm:$0xff]  }
 0xa0e   :  { %v788_v17 = vpop.f32.mrf.mxu0  ;;  %4509 = vpow2.f32 %v4139_v1 }
 0xa0f   :  { %v1100_v17 = vld [vmem:[#allocation2 + $0x8] sm:$0xff] }
 0xa1a   :  { %v4508_v63 = vpop.eup %4507 }
 0xa1b   :  { %807 = vrot.lane.b32.xlu1 %v4508_v63, %s4915_s19  ;;  %v4510_v31 = vpop.eup %4509  ;;  %v1099_v63 = vld [vmem:[#allocation2] sm:$0xff] }
 0xa1c   :  { %v798_v53 = vadd.f32 1.0, %v4510_v31  ;;  %v5196_v1 = vpack.c.bf16 %v1100_v17, %v1099_v63  ;;  %v1102_v31 = vld [vmem:[#allocation2 + $0x18] sm:$0xff] }
 0xa1e   :  { %4511 = vrcp.f32 %v798_v53  ;;  %v1101_v53 = vld [vmem:[#allocation2 + $0x10] sm:$0xff] }
 0xa2b   :  { %v4512_v52 = vpop.eup %4511 }
 0xa2c   :  { %v805_v13 = vmul.f32 %v4512_v52, %v731_v16 }
 0xa8d   :  { %v808_v60 = vpop.permute.xlu1 %807 }
 0xa8e   :  { %v810_v3 = vmul.f32 %v4512_v52, %v808_v60  ;;  %v5201_v52 = vpack.c.bf16 %v1102_v31, %v1101_v53 }
 0xa90   :  { %812 = vrot.lane.b32.xlu0 %v810_v3, %s4915_s19 }
 0xb02   :  { %v813_v4 = vpop.permute.xlu0 %812 }
 0xb03   :  { %v815_v6 = vadd.f32 %v813_v4, %v805_v13  ;;  %v208_v4 = vadd.f32 %v5093_v44, %v5068_v57 }
 0xb05   :  { %4513 = vtanh.f32 %v815_v6 }
 0xb06   :  { %4515 = vpow2.f32 %v4140_v50  ;;  %v912_v50 = vadd.f32 %v5065_v54, %v208_v4 }
 0xb12   :  { %v4514_v18 = vpop.eup %4513 }
 0xb13   :  { %818 = vrot.lane.b32.xlu1 %v4514_v18, %s4915_s19  ;;  %v4516_v7 = vpop.eup %4515 }
 0xb14   :  { %v799_v9 = vadd.f32 1.0, %v4516_v7 }
 0xb16   :  { %4517 = vrcp.f32 %v799_v9 }
 0xb23   :  { %v4518_v40 = vpop.eup %4517 }
 0xb85   :  { %v819_v43 = vpop.permute.xlu1 %818 }
 0xb86   :  { %v821_v46 = vmul.f32 %v4518_v40, %v819_v43 }
 0xb88   :  { %822 = vst.msk [vmem:[#allocation2 + $0x20] sm:$0xff] %vm128_vm0, %v821_v46  ;;  %v829_v55 = vpack.c.bf16 %v821_v46, %v821_v46 }
 0xb8a   :  { %4141 = vmatmul.mubr.msk.bf16.vlgmr.msra.gmra.mxu1 %vm128_vm0, %v829_v55 }
 0xb8b   :  { %1010 = vmatpush1.bf16.msra.mxu1 %v4964_v21  ;;  %1033 = vmatprep.mubr.bf16.mxu1 %v4914_v0 }
 0xb8c   :  { %1011 = vmatprep.subr.bf16.mxu1 %v4967_v22 }
 0xb8f   :  { %1012 = vmatpush1.bf16.msra.mxu1 %v4976_v25  ;;  %v1103_v3 = vld [vmem:[#allocation2 + $0x20] sm:$0xff] }
 0xb90   :  { %1013 = vmatprep.subr.bf16.mxu1 %v4982_v26 }
 0xb93   :  { %1014 = vmatpush1.bf16.msra.mxu1 %v4991_v28 }
 0xb94   :  { %1015 = vmatprep.subr.bf16.mxu1 %v4995_v29 }
 0xb97   :  { %1016 = vmatpush1.bf16.msra.mxu1 %v5009_v32 }
 0xc4a   :  { %v867_v45 = vpop.f32.mrf.mxu1 }
 0xc4b   :  { %v874_v47 = vadd.f32 %v867_v45, %v5086_v34 }
 0xc4c   :  { %v869_v48 = vpop.f32.mrf.mxu1 }
 0xc4d   :  { %v875_v21 = vadd.f32 %v869_v48, %v5091_v42  ;;  %v4142_v25 = vmul.f32 -1.442695, %v874_v47  ;;  %v4377_v42 = vld [vmem:[#allocation5 + $0xf4] ss:$8 sps:$4 sm:$0xff]  }
 0xc4e   :  { %v871_v10 = vpop.f32.mrf.mxu1  ;;  %1184 = vmatprep.subr.bf16.mxu0 %v4377_v42  ;;  %v4395_v42 = vld [vmem:[#allocation5 + $0x114] ss:$8 sps:$4 sm:$0xff]  }
 0xc4f   :  { %4519 = vtanh.f32 %v875_v21  ;;  %v4143_v16 = vmul.f32 -1.442695, %v875_v21  ;;  %v4389_v10 = vld [vmem:[#allocation5 + $0x134] ss:$8 sps:$4 sm:$0xff]  }
 0xc50   :  { %v872_v11 = vpop.f32.mrf.mxu1  ;;  %4521 = vpow2.f32 %v4142_v25  ;;  %1313 = vmatprep.subr.bf16.mxu1 %v4389_v10 }
 0xc5c   :  { %v4520_v22 = vpop.eup %4519 }
 0xc5d   :  { %891 = vrot.lane.b32.xlu0 %v4520_v22, %s4915_s19  ;;  %v4522_v26 = vpop.eup %4521 }
 0xc5e   :  { %v882_v28 = vadd.f32 1.0, %v4522_v26 }
 0xc60   :  { %4523 = vrcp.f32 %v882_v28 }
 0xc6d   :  { %v4524_v29 = vpop.eup %4523 }
 0xc6e   :  { %v889_v34 = vmul.f32 %v4524_v29, %v815_v6 }
 0xccf   :  { %v892_v14 = vpop.permute.xlu0 %891 }
 0xcd0   :  { %v894_v32 = vmul.f32 %v4524_v29, %v892_v14 }
 0xcd2   :  { %896 = vrot.lane.b32.xlu1 %v894_v32, %s4915_s19  ;;  %v4387_v32 = vld [vmem:[#allocation5 + $0x130] ss:$8 sps:$4 sm:$0xff]  }
 0xd44   :  { %v897_v19 = vpop.permute.xlu1 %896 }
 0xd45   :  { %v5189_v8 = vadd.f32 %v897_v19, %v889_v34  ;;  %v4392_v19 = vld [vmem:[#allocation5 + $0x124] ss:$8 sps:$4 sm:$0xff]  }
 0xd47   :  { %4525 = vtanh.f32 %v5189_v8 }
 0xd48   :  { %4527 = vpow2.f32 %v4143_v16  ;;  %v4398_v16 = vld [vmem:[#allocation5 + $0x104] ss:$8 sps:$4 sm:$0xff]  }
 0xd54   :  { %v4526_v15 = vpop.eup %4525 }
 0xd55   :  { %902 = vrot.lane.b32.xlu0 %v4526_v15, %s4915_s19  ;;  %v4528_v12 = vpop.eup %4527  ;;  %v4393_v15 = vld [vmem:[#allocation5 + $0x110] ss:$8 sps:$4 sm:$0xff]  }
 0xd56   :  { %v883_v23 = vadd.f32 1.0, %v4528_v12  ;;  %v4396_v12 = vld [vmem:[#allocation5 + $0x100] ss:$8 sps:$4 sm:$0xff]  }
 0xd58   :  { %4529 = vrcp.f32 %v883_v23 }
 0xd65   :  { %v4530_v24 = vpop.eup %4529 }
 0xdc7   :  { %v903_v30 = vpop.permute.xlu0 %902 }
 0xdc8   :  { %v905_v35 = vmul.f32 %v4530_v24, %v903_v30 }
 0xdca   :  { %906 = vst.msk [vmem:[#allocation2 + $0x28] sm:$0xff] %vm128_vm0, %v905_v35  ;;  %v913_v38 = vpack.c.bf16 %v905_v35, %v905_v35 }
 0xdcc   :  { %4144 = vmatmul.mubr.msk.bf16.vlgmr.msra.gmra.mxu0 %vm128_vm0, %v913_v38 }
 0xdcd   :  { %1185 = vmatpush1.bf16.msra.mxu0 %v4375_v37  ;;  %1208 = vmatprep.mubr.bf16.mxu0 %v4914_v0 }
 0xdce   :  { %1186 = vmatprep.subr.bf16.mxu0 %v4380_v39 }
 0xdd1   :  { %1187 = vmatpush1.bf16.msra.mxu0 %v4378_v49  ;;  %v1104_v60 = vld [vmem:[#allocation2 + $0x28] sm:$0xff] }
 0xdd2   :  { %1188 = vmatprep.subr.bf16.mxu0 %v4383_v59  ;;  %v1109_v13 = vpack.c.bf16 %v1104_v60, %v1103_v3 }
 0xdd5   :  { %1189 = vmatpush1.bf16.msra.mxu0 %v4381_v61 }
 0xdd6   :  { %1190 = vmatprep.subr.bf16.mxu0 %v4386_v56 }
 0xdd9   :  { %1191 = vmatpush1.bf16.msra.mxu0 %v4384_v62 }
 0xddc   :  { %4159 = vmatmul.mubr.msk.bf16.vlgmr.msra.gmra.mxu0 %vm128_vm0, %v5196_v1 }
 0xddd   :  { %1218 = vmatprep.mubr.bf16.mxu0 %v4914_v0 }
 0xde4   :  { %4160 = vmatmul.mubr.msk.bf16.gmra.mxu0 %vm128_vm0, %v5201_v52 }
 0xde5   :  { %1228 = vmatprep.mubr.bf16.mxu0 %v4914_v0 }
 0xdec   :  { %4161 = vmatmul.mubr.msk.bf16.gmra.mxu0 %vm128_vm0, %v1109_v13 }
 0xded   :  { %1238 = vmatprep.mubr.bf16.mxu0 %v4914_v0 }
 0xe8c   :  { %v951_v6 = vpop.f32.mrf.mxu0 }
 0xe8d   :  { %v958_v18 = vadd.f32 %v951_v6, %v5097_v58 }
 0xe8e   :  { %v953_v7 = vpop.f32.mrf.mxu0 }
 0xe8f   :  { %v959_v9 = vadd.f32 %v953_v7, %v912_v50  ;;  %v4145_v55 = vmul.f32 -1.442695, %v958_v18 }
 0xe90   :  { %v955_v40 = vpop.f32.mrf.mxu0 }
 0xe91   :  { %4531 = vtanh.f32 %v959_v9  ;;  %v4146_v22 = vmul.f32 -1.442695, %v959_v9 }
 0xe92   :  { %v956_v43 = vpop.f32.mrf.mxu0  ;;  %4533 = vpow2.f32 %v4145_v55 }
 0xe9c   :  { %v5230_v23 = vpop.f32.mrf.mxu0 }
 0xe9e   :  { %v4532_v46 = vpop.eup %4531  ;;  %v5232_v24 = vpop.f32.mrf.mxu0 }
 0xe9f   :  { %975 = vrot.lane.b32.xlu1 %v4532_v46, %s4915_s19  ;;  %v4534_v45 = vpop.eup %4533 }
 0xea0   :  { %v966_v47 = vadd.f32 1.0, %v4534_v45  ;;  %v5234_v30 = vpop.f32.mrf.mxu0 }
 0xea2   :  { %4535 = vrcp.f32 %v966_v47  ;;  %v5236_v35 = vpop.f32.mrf.mxu0 }
 0xea4   :  { %v1220_v37 = vpop.f32.mrf.mxu0 }
 0xea6   :  { %v5238_v38 = vpop.f32.mrf.mxu0 }
 0xea8   :  { %v1224_v56 = vpop.f32.mrf.mxu0 }
 0xeaa   :  { %v1226_v63 = vpop.f32.mrf.mxu0 }
 0xeaf   :  { %v4536_v48 = vpop.eup %4535 }
 0xeb0   :  { %v973_v54 = vmul.f32 %v4536_v48, %v5189_v8  ;;  %v4390_v8 = vld [vmem:[#allocation5 + $0x120] ss:$8 sps:$4 sm:$0xff]  }
 0xf11   :  { %v976_v57 = vpop.permute.xlu1 %975 }
 0xf12   :  { %v978_v44 = vmul.f32 %v4536_v48, %v976_v57 }
 0xf14   :  { %980 = vrot.lane.b32.xlu0 %v978_v44, %s4915_s19 }
 0xf86   :  { %v981_v58 = vpop.permute.xlu0 %980 }
 0xf87   :  { %v5215_v21 = vadd.f32 %v981_v58, %v973_v54 }
 0xf89   :  { %4537 = vtanh.f32 %v5215_v21 }
 0xf8a   :  { %4539 = vpow2.f32 %v4146_v22 }
 0xf96   :  { %v4538_v11 = vpop.eup %4537 }
 0xf97   :  { %986 = vrot.lane.b32.xlu1 %v4538_v11, %s4915_s19  ;;  %v4540_v25 = vpop.eup %4539 }
 0xf98   :  { %v967_v26 = vadd.f32 1.0, %v4540_v25 }
 0xf9a   :  { %4541 = vrcp.f32 %v967_v26 }
 0xfa7   :  { %v4542_v28 = vpop.eup %4541 }
0x1009   :  { %v987_v29 = vpop.permute.xlu1 %986 }
0x100a   :  { %v989_v14 = vmul.f32 %v4542_v28, %v987_v29 }
0x100c   :  { %990 = vst.msk [vmem:[#allocation2 + $0x30] sm:$0xff] %vm128_vm0, %v989_v14  ;;  %v997_v34 = vpack.c.bf16 %v989_v14, %v989_v14 }
0x100e   :  { %4147 = vmatmul.mubr.msk.bf16.vlgmr.msra.gmra.mxu1 %vm128_vm0, %v997_v34 }
0x100f   :  { %1314 = vmatpush1.bf16.msra.mxu1 %v4387_v32  ;;  %1337 = vmatprep.mubr.bf16.mxu1 %v4914_v0 }
0x1010   :  { %1315 = vmatprep.subr.bf16.mxu1 %v4392_v19  ;;  %v5284_v19 = vld [vmem:[#allocation5 + $0x174] ss:$8 sps:$4 sm:$0xff]  }
0x1011   :  { %1452 = vmatprep.subr.bf16.mxu0 %v5284_v19 }
0x1013   :  { %1316 = vmatpush1.bf16.msra.mxu1 %v4390_v8  ;;  %v5286_v8 = vld [vmem:[#allocation5 + $0x170] ss:$8 sps:$4 sm:$0xff]  }
0x1014   :  { %1317 = vmatprep.subr.bf16.mxu1 %v4395_v42  ;;  %v5288_v42 = vld [vmem:[#allocation5 + $0x164] ss:$8 sps:$4 sm:$0xff]   ;;  %1453 = vmatpush1.bf16.msra.mxu0 %v5286_v8 }
0x1015   :  { %1454 = vmatprep.subr.bf16.mxu0 %v5288_v42 }
0x1017   :  { %1318 = vmatpush1.bf16.msra.mxu1 %v4393_v15  ;;  %v5293_v15 = vld [vmem:[#allocation5 + $0x160] ss:$8 sps:$4 sm:$0xff]  }
0x1018   :  { %1319 = vmatprep.subr.bf16.mxu1 %v4398_v16  ;;  %1455 = vmatpush1.bf16.msra.mxu0 %v5293_v15 }
0x101b   :  { %1320 = vmatpush1.bf16.msra.mxu1 %v4396_v12 }
0x101c   :  { %1539 = vmatprep.subr.bf16.mxu1 %v5284_v19 }
0x101e   :  { %4171 = vmatmul.mubr.msk.bf16.vlgmr.msra.gmra.mxu1 %vm128_vm0, %v5196_v1  ;;  %v1230_v1 = vpop.f32.mrf.mxu0 }
0x101f   :  { %1347 = vmatprep.mubr.bf16.mxu1 %v4914_v0  ;;  %1540 = vmatpush1.bf16.msra.mxu1 %v5286_v8 }
0x1020   :  { %v1232_v31 = vpop.f32.mrf.mxu0  ;;  %1541 = vmatprep.subr.bf16.mxu1 %v5288_v42 }
0x1022   :  { %v1234_v3 = vpop.f32.mrf.mxu0 }
0x1023   :  { %1542 = vmatpush1.bf16.msra.mxu1 %v5293_v15 }
0x1026   :  { %4172 = vmatmul.mubr.msk.bf16.gmra.mxu1 %vm128_vm0, %v5201_v52  ;;  %v4150_v52 = vld [vmem:[%s6056_s1 + $0x1] ss:$8 sm:$0x3] }
0x1027   :  { %1357 = vmatprep.mubr.bf16.mxu1 %v4914_v0  ;;  %v5266_v9 = vrot.slane %v4150_v52, %v5063_v51 }
0x1029   :  { %v1233_v46 = vadd.f32 %v1232_v31, %v5266_v9  ;;  %v1227_v44 = vadd.f32 %v1226_v63, %v5266_v9 }
0x102e   :  { %4173 = vmatmul.mubr.msk.bf16.gmra.mxu1 %vm128_vm0, %v1109_v13  ;;  %v5256_v13 = vrot.slane %v4150_v52, %v5057_v41 }
0x102f   :  { %1367 = vmatprep.mubr.bf16.mxu1 %v4914_v0 }
0x1030   :  { %v1235_v6 = vadd.f32 %v1234_v3, %v5256_v13  ;;  %v1231_v40 = vadd.f32 %v1230_v1, %v5256_v13  ;;  %v1225_v47 = vadd.f32 %v1224_v56, %v5256_v13  ;;  %v1221_v10 = vadd.f32 %v1220_v37, %v5256_v13  ;;  %v5312_v56 = vld [vmem:[#allocation5 + $0x144] ss:$8 sps:$4 sm:$0xff]   ;;  %v1105_v3 = vld [vmem:[#allocation2 + $0x30] sm:$0xff] }
0x10ce   :  { %v1035_v39 = vpop.f32.mrf.mxu1 }
0x10cf   :  { %v1042_v49 = vadd.f32 %v1035_v39, %v5101_v2  ;;  %v5304_v39 = vld [vmem:[#allocation5 + $0x154] ss:$8 sps:$4 sm:$0xff]  }
0x10d0   :  { %v1037_v59 = vpop.f32.mrf.mxu1  ;;  %1456 = vmatprep.subr.bf16.mxu0 %v5304_v39  ;;  %1543 = vmatprep.subr.bf16.mxu1 %v5304_v39 }
0x10d1   :  { %v5242_v61 = vadd.f32 %v1037_v59, %v5103_v5  ;;  %v4148_v26 = vmul.f32 -1.442695, %v1042_v49  ;;  %v5306_v49 = vld [vmem:[#allocation5 + $0x150] ss:$8 sps:$4 sm:$0xff]  }
0x10d2   :  { %v1039_v62 = vpop.f32.mrf.mxu1  ;;  %1457 = vmatpush1.bf16.msra.mxu0 %v5306_v49  ;;  %1544 = vmatpush1.bf16.msra.mxu1 %v5306_v49 }
0x10d3   :  { %4543 = vtanh.f32 %v5242_v61  ;;  %1458 = vmatprep.subr.bf16.mxu0 %v5312_v56  ;;  %1545 = vmatprep.subr.bf16.mxu1 %v5312_v56  ;;  %v51_v62 = vld [vmem:[%s6055_s0 + $0x58] sm:$0xff] }
0x10d4   :  { %v1040_v17 = vpop.f32.mrf.mxu1  ;;  %4545 = vpow2.f32 %v4148_v26  ;;  %v1211_v26 = vadd.f32 %v5230_v23, %v5256_v13 }
0x10d5   :  { %v4149_v17 = vmul.f32 -1.442695, %v5242_v61  ;;  %v49_v61 = vld [vmem:[%s6055_s0 + $0x48] sm:$0xff] }
0x10de   :  { %v5245_v53 = vpop.f32.mrf.mxu1 }
0x10e0   :  { %v5250_v60 = vpop.f32.mrf.mxu1  ;;  %v4544_v2 = vpop.eup %4543 }
0x10e1   :  { %1059 = vrot.lane.b32.xlu0 %v4544_v2, %s4915_s19  ;;  %v4546_v28 = vpop.eup %4545 }
0x10e2   :  { %v5253_v5 = vpop.f32.mrf.mxu1  ;;  %v1050_v29 = vadd.f32 1.0, %v4546_v28 }
0x10e4   :  { %v5258_v4 = vpop.f32.mrf.mxu1  ;;  %4547 = vrcp.f32 %v1050_v29 }
0x10e6   :  { %v1349_v18 = vpop.f32.mrf.mxu1 }
0x10e7   :  { %v5261_v50 = vadd.f32 %v1349_v18, %v1235_v6 }
0x10e8   :  { %v5263_v7 = vpop.f32.mrf.mxu1 }
0x10ea   :  { %v1353_v43 = vpop.f32.mrf.mxu1 }
0x10eb   :  { %v5270_v55 = vadd.f32 %v1353_v43, %v1231_v40  ;;  %v1400_v40 = vpack.c.bf16 %v49_v61, %v49_v61  ;;  %v5349_v43 = vpop.f32.mrf.mxu0 }
0x10ec   :  { %v1355_v45 = vpop.f32.mrf.mxu1 }
0x10ed   :  { %v5273_v48 = vadd.f32 %v1355_v45, %v1233_v46  ;;  %v1215_v45 = vadd.f32 %v5234_v30, %v5256_v13 }
0x10ee   :  { %v1359_v57 = vpop.f32.mrf.mxu1 }
0x10ef   :  { %v5276_v54 = vadd.f32 %v1359_v57, %v1225_v47 }
0x10f0   :  { %v1361_v58 = vpop.f32.mrf.mxu1 }
0x10f1   :  { %v5279_v11 = vadd.f32 %v1361_v58, %v1227_v44  ;;  %v4548_v14 = vpop.eup %4547  ;;  %v1217_v44 = vadd.f32 %v5236_v35, %v5266_v9 }
0x10f2   :  { %v1363_v22 = vpop.f32.mrf.mxu1  ;;  %v1057_v16 = vmul.f32 %v4548_v14, %v5215_v21  ;;  %v5314_v21 = vld [vmem:[#allocation5 + $0x140] ss:$8 sps:$4 sm:$0xff]  }
0x10f3   :  { %v5281_v25 = vadd.f32 %v1363_v22, %v1221_v10  ;;  %1459 = vmatpush1.bf16.msra.mxu0 %v5314_v21  ;;  %1546 = vmatpush1.bf16.msra.mxu1 %v5314_v21 }
0x10f4   :  { %1622 = vmatprep.subr.bf16.mxu0 %v5284_v19  ;;  %1705 = vmatprep.subr.bf16.mxu1 %v5284_v19  ;;  %v5351_v46 = vpop.f32.mrf.mxu1 }
0x1153   :  { %v1060_v32 = vpop.permute.xlu0 %1059 }
0x1154   :  { %v1062_v34 = vmul.f32 %v4548_v14, %v1060_v32 }
0x1156   :  { %1064 = vrot.lane.b32.xlu1 %v1062_v34, %s4915_s19 }
0x11c8   :  { %v1065_v12 = vpop.permute.xlu1 %1064 }
0x11c9   :  { %v5301_v37 = vadd.f32 %v1065_v12, %v1057_v16  ;;  %v1213_v16 = vadd.f32 %v5232_v24, %v5266_v9 }
0x11cb   :  { %4549 = vtanh.f32 %v5301_v37 }
0x11cc   :  { %4551 = vpow2.f32 %v4149_v17 }
0x11d8   :  { %v4550_v59 = vpop.eup %4549 }
0x11d9   :  { %1070 = vrot.lane.b32.xlu0 %v4550_v59, %s4915_s19  ;;  %v4552_v63 = vpop.eup %4551 }
0x11da   :  { %v1051_v1 = vadd.f32 1.0, %v4552_v63 }
0x11dc   :  { %4553 = vrcp.f32 %v1051_v1 }
0x11dd   :  { %1501 = vrot.lane.b32.xlu0 %v51_v62, %s4915_s19 }
0x11e9   :  { %v4554_v31 = vpop.eup %4553 }
0x124b   :  { %v1071_v52 = vpop.permute.xlu0 %1070 }
0x124c   :  { %v5328_v2 = vmul.f32 %v4554_v31, %v1071_v52 }
0x124e   :  { %1074 = vst.msk [vmem:[#allocation2 + $0x38] sm:$0xff] %vm128_vm0, %v5328_v2 }
0x124f   :  { %v1502_v24 = vpop.permute.xlu0 %1501 }
0x1255   :  { %v1106_v6 = vld [vmem:[#allocation2 + $0x38] sm:$0xff] }
0x1256   :  { %v1110_v18 = vpack.c.bf16 %v1106_v6, %v1105_v3 }
0x1258   :  { %4162 = vmatmul.mubr.msk.bf16.gmra.mxu0 %vm128_vm0, %v1110_v18  ;;  %4174 = vmatmul.mubr.msk.bf16.gmra.mxu1 %vm128_vm0, %v1110_v18 }
0x1259   :  { %1476 = vmatprep.mubr.bf16.mxu0 %v4914_v0  ;;  %1563 = vmatprep.mubr.bf16.mxu1 %v4914_v0 }
0x1260   :  { %4183 = vmatmul.mubr.msk.bf16.vlgmr.msra.gmra.mxu0 %vm128_vm0, %v1400_v40 }
0x1261   :  { %1623 = vmatpush1.bf16.msra.mxu0 %v5286_v8  ;;  %1646 = vmatprep.mubr.bf16.mxu0 %v4914_v0 }
0x1262   :  { %1624 = vmatprep.subr.bf16.mxu0 %v5288_v42 }
0x1265   :  { %1625 = vmatpush1.bf16.msra.mxu0 %v5293_v15 }
0x1266   :  { %1626 = vmatprep.subr.bf16.mxu0 %v5304_v39 }
0x1269   :  { %1627 = vmatpush1.bf16.msra.mxu0 %v5306_v49 }
0x126a   :  { %1628 = vmatprep.subr.bf16.mxu0 %v5312_v56 }
0x126d   :  { %1629 = vmatpush1.bf16.msra.mxu0 %v5314_v21 }
0x126e   :  { %1788 = vmatprep.subr.bf16.mxu0 %v5284_v19 }
0x1318   :  { %v5355_v47 = vpop.f32.mrf.mxu0  ;;  %v1369_v57 = vpop.f32.mrf.mxu1 }
0x1319   :  { %v1525_v58 = vadd.f32 %v1369_v57, %v1215_v45 }
0x131a   :  { %v5359_v10 = vpop.f32.mrf.mxu0  ;;  %v1371_v22 = vpop.f32.mrf.mxu1 }
0x131b   :  { %v1526_v28 = vadd.f32 %v1371_v22, %v1217_v44 }
0x131c   :  { %v5363_v29 = vpop.f32.mrf.mxu0  ;;  %v1373_v14 = vpop.f32.mrf.mxu1 }
0x131d   :  { %v1398_v32 = vadd.f32 %v1373_v14, %v1211_v26 }
0x131e   :  { %v5365_v34 = vpop.f32.mrf.mxu0  ;;  %v1375_v30 = vpop.f32.mrf.mxu1 }
0x131f   :  { %v1399_v35 = vadd.f32 %v1375_v30, %v1213_v16 }
0x1320   :  { %v1478_v12 = vpop.f32.mrf.mxu0 }
0x1321   :  { %v1485_v59 = vadd.f32 %v1478_v12, %v1398_v32 }
0x1322   :  { %v1480_v62 = vpop.f32.mrf.mxu0 }
0x1323   :  { %v1486_v17 = vadd.f32 %v1480_v62, %v1399_v35  ;;  %v4184_v31 = vmul.f32 -1.442695, %v1485_v59 }
0x1324   :  { %v1482_v63 = vpop.f32.mrf.mxu0 }
0x1325   :  { %4555 = vtanh.f32 %v1486_v17  ;;  %v4185_v22 = vmul.f32 -1.442695, %v1486_v17 }
0x1326   :  { %v1483_v1 = vpop.f32.mrf.mxu0  ;;  %4557 = vpow2.f32 %v4184_v31 }
0x1332   :  { %v4556_v23 = vpop.eup %4555 }
0x1333   :  { %1506 = vrot.lane.b32.xlu1 %v4556_v23, %s4915_s19  ;;  %v4558_v52 = vpop.eup %4557 }
0x1334   :  { %v1493_v3 = vadd.f32 1.0, %v4558_v52 }
0x1336   :  { %4559 = vrcp.f32 %v1493_v3 }
0x1343   :  { %v4560_v6 = vpop.eup %4559 }
0x1344   :  { %v1504_v40 = vmul.f32 %v4560_v6, %v1502_v24 }
0x13a5   :  { %v1507_v18 = vpop.permute.xlu1 %1506 }
0x13a6   :  { %v1509_v61 = vmul.f32 %v4560_v6, %v1507_v18 }
0x13a8   :  { %1511 = vrot.lane.b32.xlu1 %v1509_v61, %s4915_s19 }
0x141a   :  { %v1512_v45 = vpop.permute.xlu1 %1511 }
0x141b   :  { %v1514_v57 = vadd.f32 %v1512_v45, %v1504_v40 }
0x141d   :  { %4561 = vtanh.f32 %v1514_v57 }
0x141e   :  { %4563 = vpow2.f32 %v4185_v22 }
0x142a   :  { %v4562_v44 = vpop.eup %4561 }
0x142b   :  { %1517 = vrot.lane.b32.xlu0 %v4562_v44, %s4915_s19  ;;  %v4564_v26 = vpop.eup %4563 }
0x142c   :  { %v1494_v14 = vadd.f32 1.0, %v4564_v26 }
0x142e   :  { %4565 = vrcp.f32 %v1494_v14 }
0x143b   :  { %v4566_v32 = vpop.eup %4565 }
0x149d   :  { %v1518_v30 = vpop.permute.xlu0 %1517 }
0x149e   :  { %v1520_v16 = vmul.f32 %v4566_v32, %v1518_v30 }
0x14a0   :  { %v1527_v12 = vpack.c.bf16 %v1520_v16, %v1520_v16 }
0x14a2   :  { %4186 = vmatmul.mubr.msk.bf16.vlgmr.msra.gmra.mxu1 %vm128_vm0, %v1527_v12 }
0x14a3   :  { %1706 = vmatpush1.bf16.msra.mxu1 %v5286_v8  ;;  %1729 = vmatprep.mubr.bf16.mxu1 %v4914_v0 }
0x14a4   :  { %1707 = vmatprep.subr.bf16.mxu1 %v5288_v42 }
0x14a7   :  { %1708 = vmatpush1.bf16.msra.mxu1 %v5293_v15 }
0x14a8   :  { %1709 = vmatprep.subr.bf16.mxu1 %v5304_v39 }
0x14ab   :  { %1710 = vmatpush1.bf16.msra.mxu1 %v5306_v49 }
0x14ac   :  { %1711 = vmatprep.subr.bf16.mxu1 %v5312_v56 }
0x14af   :  { %1712 = vmatpush1.bf16.msra.mxu1 %v5314_v21 }
0x14b0   :  { %1871 = vmatprep.subr.bf16.mxu1 %v5284_v19 }
0x1562   :  { %v1565_v35 = vpop.f32.mrf.mxu1 }
0x1563   :  { %v1572_v59 = vadd.f32 %v1565_v35, %v1525_v58 }
0x1564   :  { %v1567_v62 = vpop.f32.mrf.mxu1 }
0x1565   :  { %v1573_v17 = vadd.f32 %v1567_v62, %v1526_v28  ;;  %v4187_v31 = vmul.f32 -1.442695, %v1572_v59 }
0x1566   :  { %v1569_v63 = vpop.f32.mrf.mxu1 }
0x1567   :  { %4567 = vtanh.f32 %v1573_v17  ;;  %v4188_v45 = vmul.f32 -1.442695, %v1573_v17 }
0x1568   :  { %v1570_v1 = vpop.f32.mrf.mxu1  ;;  %4569 = vpow2.f32 %v4187_v31 }
0x1574   :  { %v4568_v23 = vpop.eup %4567 }
0x1575   :  { %1589 = vrot.lane.b32.xlu1 %v4568_v23, %s4915_s19  ;;  %v4570_v52 = vpop.eup %4569 }
0x1576   :  { %v1580_v3 = vadd.f32 1.0, %v4570_v52 }
0x1578   :  { %4571 = vrcp.f32 %v1580_v3 }
0x1585   :  { %v4572_v6 = vpop.eup %4571 }
0x1586   :  { %v1587_v24 = vmul.f32 %v4572_v6, %v1514_v57  ;;  %v1223_v57 = vadd.f32 %v5238_v38, %v5266_v9 }
0x1588   :  { %v1609_v12 = vadd.f32 %v5351_v46, %v1223_v57 }
0x15e7   :  { %v1590_v18 = vpop.permute.xlu1 %1589 }
0x15e8   :  { %v1592_v61 = vmul.f32 %v4572_v6, %v1590_v18 }
0x15ea   :  { %1594 = vrot.lane.b32.xlu0 %v1592_v61, %s4915_s19 }
0x165c   :  { %v1595_v58 = vpop.permute.xlu0 %1594 }
0x165d   :  { %v1597_v40 = vadd.f32 %v1595_v58, %v1587_v24 }
0x165f   :  { %4573 = vtanh.f32 %v1597_v40 }
0x1660   :  { %4575 = vpow2.f32 %v4188_v45 }
0x166c   :  { %v4574_v28 = vpop.eup %4573 }
0x166d   :  { %1600 = vrot.lane.b32.xlu1 %v4574_v28, %s4915_s19  ;;  %v4576_v44 = vpop.eup %4575 }
0x166e   :  { %v1581_v22 = vadd.f32 1.0, %v4576_v44 }
0x1670   :  { %4577 = vrcp.f32 %v1581_v22 }
0x167d   :  { %v4578_v26 = vpop.eup %4577 }
0x16df   :  { %v1601_v14 = vpop.permute.xlu1 %1600 }
0x16e0   :  { %v1603_v32 = vmul.f32 %v4578_v26, %v1601_v14 }
0x16e2   :  { %v1610_v30 = vpack.c.bf16 %v1603_v32, %v1603_v32 }
0x16e4   :  { %4189 = vmatmul.mubr.msk.bf16.vlgmr.msra.gmra.mxu0 %vm128_vm0, %v1610_v30 }
0x16e5   :  { %1789 = vmatpush1.bf16.msra.mxu0 %v5286_v8  ;;  %1812 = vmatprep.mubr.bf16.mxu0 %v4914_v0 }
0x16e6   :  { %1790 = vmatprep.subr.bf16.mxu0 %v5288_v42 }
0x16e9   :  { %1791 = vmatpush1.bf16.msra.mxu0 %v5293_v15 }
0x16ea   :  { %1792 = vmatprep.subr.bf16.mxu0 %v5304_v39 }
0x16ed   :  { %1793 = vmatpush1.bf16.msra.mxu0 %v5306_v49 }
0x16ee   :  { %1794 = vmatprep.subr.bf16.mxu0 %v5312_v56 }
0x16f1   :  { %1795 = vmatpush1.bf16.msra.mxu0 %v5314_v21 }
0x16f2   :  { %1954 = vmatprep.subr.bf16.mxu0 %v5284_v19 }
0x17a4   :  { %v1648_v16 = vpop.f32.mrf.mxu0 }
0x17a5   :  { %v1655_v35 = vadd.f32 %v1648_v16, %v5281_v25 }
0x17a6   :  { %v1650_v59 = vpop.f32.mrf.mxu0 }
0x17a7   :  { %v1656_v62 = vadd.f32 %v1650_v59, %v1609_v12  ;;  %v4190_v23 = vmul.f32 -1.442695, %v1655_v35 }
0x17a8   :  { %v1652_v17 = vpop.f32.mrf.mxu0 }
0x17a9   :  { %4579 = vtanh.f32 %v1656_v62  ;;  %v4191_v24 = vmul.f32 -1.442695, %v1656_v62 }
0x17aa   :  { %v1653_v63 = vpop.f32.mrf.mxu0  ;;  %4581 = vpow2.f32 %v4190_v23 }
0x17b6   :  { %v4580_v1 = vpop.eup %4579 }
0x17b7   :  { %1672 = vrot.lane.b32.xlu0 %v4580_v1, %s4915_s19  ;;  %v4582_v31 = vpop.eup %4581 }
0x17b8   :  { %v1663_v52 = vadd.f32 1.0, %v4582_v31 }
0x17ba   :  { %4583 = vrcp.f32 %v1663_v52 }
0x17c7   :  { %v4584_v3 = vpop.eup %4583 }
0x17c8   :  { %v1670_v46 = vmul.f32 %v4584_v3, %v1597_v40 }
0x1829   :  { %v1673_v38 = vpop.permute.xlu0 %1672 }
0x182a   :  { %v1675_v6 = vmul.f32 %v4584_v3, %v1673_v38 }
0x182c   :  { %1677 = vrot.lane.b32.xlu1 %v1675_v6, %s4915_s19 }
0x189e   :  { %v1678_v25 = vpop.permute.xlu1 %1677 }
0x189f   :  { %v1680_v18 = vadd.f32 %v1678_v25, %v1670_v46 }
0x18a1   :  { %4585 = vtanh.f32 %v1680_v18 }
0x18a2   :  { %4587 = vpow2.f32 %v4191_v24 }
0x18ae   :  { %v4586_v61 = vpop.eup %4585 }
0x18af   :  { %1683 = vrot.lane.b32.xlu0 %v4586_v61, %s4915_s19  ;;  %v4588_v58 = vpop.eup %4587 }
0x18b0   :  { %v1664_v28 = vadd.f32 1.0, %v4588_v58 }
0x18b2   :  { %4589 = vrcp.f32 %v1664_v28 }
0x18bf   :  { %v4590_v45 = vpop.eup %4589 }
0x1921   :  { %v1684_v44 = vpop.permute.xlu0 %1683 }
0x1922   :  { %v1686_v22 = vmul.f32 %v4590_v45, %v1684_v44 }
0x1924   :  { %v1693_v26 = vpack.c.bf16 %v1686_v22, %v1686_v22 }
0x1926   :  { %4192 = vmatmul.mubr.msk.bf16.vlgmr.msra.gmra.mxu1 %vm128_vm0, %v1693_v26 }
0x1927   :  { %1872 = vmatpush1.bf16.msra.mxu1 %v5286_v8  ;;  %1895 = vmatprep.mubr.bf16.mxu1 %v4914_v0 }
0x1928   :  { %1873 = vmatprep.subr.bf16.mxu1 %v5288_v42 }
0x192b   :  { %1874 = vmatpush1.bf16.msra.mxu1 %v5293_v15 }
0x192c   :  { %1875 = vmatprep.subr.bf16.mxu1 %v5304_v39 }
0x192f   :  { %1876 = vmatpush1.bf16.msra.mxu1 %v5306_v49 }
0x1930   :  { %1877 = vmatprep.subr.bf16.mxu1 %v5312_v56 }
0x1933   :  { %1878 = vmatpush1.bf16.msra.mxu1 %v5314_v21 }
0x1934   :  { %2037 = vmatprep.subr.bf16.mxu1 %v5284_v19 }
0x19e6   :  { %v1731_v40 = vpop.f32.mrf.mxu1 }
0x19e7   :  { %v1738_v14 = vadd.f32 %v1731_v40, %v5276_v54 }
0x19e8   :  { %v1733_v32 = vpop.f32.mrf.mxu1 }
0x19e9   :  { %v1739_v30 = vadd.f32 %v1733_v32, %v5279_v11  ;;  %v4193_v35 = vmul.f32 -1.442695, %v1738_v14 }
0x19ea   :  { %v1735_v57 = vpop.f32.mrf.mxu1 }
0x19eb   :  { %4591 = vtanh.f32 %v1739_v30  ;;  %v4194_v31 = vmul.f32 -1.442695, %v1739_v30 }
0x19ec   :  { %v1736_v16 = vpop.f32.mrf.mxu1  ;;  %4593 = vpow2.f32 %v4193_v35 }
0x19f8   :  { %v4592_v12 = vpop.eup %4591 }
0x19f9   :  { %1755 = vrot.lane.b32.xlu1 %v4592_v12, %s4915_s19  ;;  %v4594_v59 = vpop.eup %4593 }
0x19fa   :  { %v1746_v62 = vadd.f32 1.0, %v4594_v59 }
0x19fc   :  { %4595 = vrcp.f32 %v1746_v62 }
0x1a09   :  { %v4596_v17 = vpop.eup %4595 }
0x1a0a   :  { %v1753_v54 = vmul.f32 %v4596_v17, %v1680_v18 }
0x1a6b   :  { %v1756_v63 = vpop.permute.xlu1 %1755 }
0x1a6c   :  { %v1758_v19 = vmul.f32 %v4596_v17, %v1756_v63 }
0x1a6e   :  { %1760 = vrot.lane.b32.xlu0 %v1758_v19, %s4915_s19 }
0x1ae0   :  { %v1761_v1 = vpop.permute.xlu0 %1760 }
0x1ae1   :  { %v1763_v23 = vadd.f32 %v1761_v1, %v1753_v54  ;;  %v1237_v54 = vadd.f32 %v5349_v43, %v5266_v9 }
0x1ae3   :  { %4597 = vtanh.f32 %v1763_v23 }
0x1ae4   :  { %4599 = vpow2.f32 %v4194_v31 }
0x1af0   :  { %v4598_v11 = vpop.eup %4597 }
0x1af1   :  { %1766 = vrot.lane.b32.xlu1 %v4598_v11, %s4915_s19  ;;  %v4600_v52 = vpop.eup %4599 }
0x1af2   :  { %v1747_v3 = vadd.f32 1.0, %v4600_v52 }
0x1af4   :  { %4601 = vrcp.f32 %v1747_v3 }
0x1b01   :  { %v4602_v38 = vpop.eup %4601 }
0x1b63   :  { %v1767_v6 = vpop.permute.xlu1 %1766 }
0x1b64   :  { %v1769_v46 = vmul.f32 %v4602_v38, %v1767_v6 }
0x1b66   :  { %v1776_v25 = vpack.c.bf16 %v1769_v46, %v1769_v46 }
0x1b68   :  { %4195 = vmatmul.mubr.msk.bf16.vlgmr.msra.gmra.mxu0 %vm128_vm0, %v1776_v25 }
0x1b69   :  { %1955 = vmatpush1.bf16.msra.mxu0 %v5286_v8  ;;  %1978 = vmatprep.mubr.bf16.mxu0 %v4914_v0 }
0x1b6a   :  { %1956 = vmatprep.subr.bf16.mxu0 %v5288_v42 }
0x1b6d   :  { %1957 = vmatpush1.bf16.msra.mxu0 %v5293_v15 }
0x1b6e   :  { %1958 = vmatprep.subr.bf16.mxu0 %v5304_v39 }
0x1b71   :  { %1959 = vmatpush1.bf16.msra.mxu0 %v5306_v49 }
0x1b72   :  { %1960 = vmatprep.subr.bf16.mxu0 %v5312_v56 }
0x1b75   :  { %1961 = vmatpush1.bf16.msra.mxu0 %v5314_v21 }
0x1c28   :  { %v1814_v18 = vpop.f32.mrf.mxu0 }
0x1c29   :  { %v1821_v61 = vadd.f32 %v1814_v18, %v5270_v55 }
0x1c2a   :  { %v1816_v24 = vpop.f32.mrf.mxu0 }
0x1c2b   :  { %v1822_v58 = vadd.f32 %v1816_v24, %v5273_v48  ;;  %v4196_v22 = vmul.f32 -1.442695, %v1821_v61 }
0x1c2c   :  { %v1818_v28 = vpop.f32.mrf.mxu0 }
0x1c2d   :  { %4603 = vtanh.f32 %v1822_v58  ;;  %v4197_v12 = vmul.f32 -1.442695, %v1822_v58 }
0x1c2e   :  { %v1819_v45 = vpop.f32.mrf.mxu0  ;;  %4605 = vpow2.f32 %v4196_v22 }
0x1c2f   :  { %v1241_v45 = vadd.f32 %v5355_v47, %v5256_v13 }
0x1c31   :  { %v1940_v22 = vadd.f32 %v5253_v5, %v1241_v45 }
0x1c3a   :  { %v4604_v44 = vpop.eup %4603 }
0x1c3b   :  { %1838 = vrot.lane.b32.xlu0 %v4604_v44, %s4915_s19  ;;  %v4606_v26 = vpop.eup %4605  ;;  %v1243_v44 = vadd.f32 %v5359_v10, %v5266_v9 }
0x1c3c   :  { %v1829_v40 = vadd.f32 1.0, %v4606_v26 }
0x1c3e   :  { %4607 = vrcp.f32 %v1829_v40 }
0x1c4b   :  { %v4608_v14 = vpop.eup %4607 }
0x1c4c   :  { %v1836_v55 = vmul.f32 %v4608_v14, %v1763_v23 }
0x1cad   :  { %v1839_v32 = vpop.permute.xlu0 %1838 }
0x1cae   :  { %v1841_v30 = vmul.f32 %v4608_v14, %v1839_v32  ;;  %v1941_v14 = vadd.f32 %v5258_v4, %v1243_v44  ;;  %v4413_v4 = vld [vmem:[#allocation5 + $0x1b4] ss:$8 sps:$4 sm:$0xff]  }
0x1caf   :  { %2179 = vmatprep.subr.bf16.mxu0 %v4413_v4 }
0x1cb0   :  { %1843 = vrot.lane.b32.xlu1 %v1841_v30, %s4915_s19 }
0x1d22   :  { %v1844_v57 = vpop.permute.xlu1 %1843 }
0x1d23   :  { %v1846_v16 = vadd.f32 %v1844_v57, %v1836_v55 }
0x1d25   :  { %4609 = vtanh.f32 %v1846_v16 }
0x1d26   :  { %4611 = vpow2.f32 %v4197_v12 }
0x1d32   :  { %v4610_v48 = vpop.eup %4609 }
0x1d33   :  { %1849 = vrot.lane.b32.xlu0 %v4610_v48, %s4915_s19  ;;  %v4612_v35 = vpop.eup %4611 }
0x1d34   :  { %v1830_v59 = vadd.f32 1.0, %v4612_v35 }
0x1d36   :  { %4613 = vrcp.f32 %v1830_v59  ;;  %v4411_v59 = vld [vmem:[#allocation5 + $0x1b0] ss:$8 sps:$4 sm:$0xff]  }
0x1d43   :  { %v4614_v62 = vpop.eup %4613 }
0x1da5   :  { %v1850_v17 = vpop.permute.xlu0 %1849 }
0x1da6   :  { %v1852_v63 = vmul.f32 %v4614_v62, %v1850_v17 }
0x1da8   :  { %v1859_v19 = vpack.c.bf16 %v1852_v63, %v1852_v63 }
0x1daa   :  { %4198 = vmatmul.mubr.msk.bf16.vlgmr.msra.gmra.mxu1 %vm128_vm0, %v1859_v19  ;;  %v4416_v19 = vld [vmem:[#allocation5 + $0x1a4] ss:$8 sps:$4 sm:$0xff]  }
0x1dab   :  { %2038 = vmatpush1.bf16.msra.mxu1 %v5286_v8  ;;  %2061 = vmatprep.mubr.bf16.mxu1 %v4914_v0  ;;  %v1858_v8 = vadd.f32 %v5263_v7, %v1237_v54  ;;  %v4414_v54 = vld [vmem:[#allocation5 + $0x1a0] ss:$8 sps:$4 sm:$0xff]  }
0x1dac   :  { %2039 = vmatprep.subr.bf16.mxu1 %v5288_v42 }
0x1daf   :  { %2040 = vmatpush1.bf16.msra.mxu1 %v5293_v15 }
0x1db0   :  { %2041 = vmatprep.subr.bf16.mxu1 %v5304_v39 }
0x1db3   :  { %2042 = vmatpush1.bf16.msra.mxu1 %v5306_v49 }
0x1db4   :  { %2043 = vmatprep.subr.bf16.mxu1 %v5312_v56 }
0x1db7   :  { %2044 = vmatpush1.bf16.msra.mxu1 %v5314_v21 }
0x1e6a   :  { %v1897_v1 = vpop.f32.mrf.mxu1 }
0x1e6b   :  { %v1904_v23 = vadd.f32 %v1897_v1, %v5261_v50  ;;  %v5460_v1 = vld [vmem:[#allocation5 + $0x1f4] ss:$8 sps:$4 sm:$0xff]  }
0x1e6c   :  { %v1899_v11 = vpop.f32.mrf.mxu1  ;;  %2343 = vmatprep.subr.bf16.mxu1 %v5460_v1 }
0x1e6d   :  { %v1905_v42 = vadd.f32 %v1899_v11, %v1858_v8  ;;  %v4199_v49 = vmul.f32 -1.442695, %v1904_v23  ;;  %v4421_v8 = vld [vmem:[#allocation5 + $0x194] ss:$8 sps:$4 sm:$0xff]   ;;  %v4419_v23 = vld [vmem:[#allocation5 + $0x190] ss:$8 sps:$4 sm:$0xff]  }
0x1e6e   :  { %v1901_v31 = vpop.f32.mrf.mxu1  ;;  %v4425_v11 = vld [vmem:[#allocation5 + $0x180] ss:$8 sps:$4 sm:$0xff]  }
0x1e6f   :  { %4615 = vtanh.f32 %v1905_v42  ;;  %v4200_v46 = vmul.f32 -1.442695, %v1905_v42  ;;  %v4427_v42 = vld [vmem:[#allocation5 + $0x184] ss:$8 sps:$4 sm:$0xff]  }
0x1e70   :  { %v1902_v15 = vpop.f32.mrf.mxu1  ;;  %4617 = vpow2.f32 %v4199_v49 }
0x1e7c   :  { %v4616_v39 = vpop.eup %4615 }
0x1e7d   :  { %1921 = vrot.lane.b32.xlu1 %v4616_v39, %s4915_s19  ;;  %v4618_v56 = vpop.eup %4617 }
0x1e7e   :  { %v1912_v21 = vadd.f32 1.0, %v4618_v56 }
0x1e80   :  { %4619 = vrcp.f32 %v1912_v21  ;;  %v5476_v21 = vld [vmem:[#allocation5 + $0x1f0] ss:$8 sps:$4 sm:$0xff]  }
0x1e8d   :  { %v4620_v52 = vpop.eup %4619 }
0x1e8e   :  { %v1919_v7 = vmul.f32 %v4620_v52, %v1846_v16 }
0x1eef   :  { %v1922_v43 = vpop.permute.xlu1 %1921 }
0x1ef0   :  { %v1924_v3 = vmul.f32 %v4620_v52, %v1922_v43  ;;  %v5478_v43 = vld [vmem:[#allocation5 + $0x1e4] ss:$8 sps:$4 sm:$0xff]  }
0x1ef2   :  { %1926 = vrot.lane.b32.xlu0 %v1924_v3, %s4915_s19  ;;  %v5489_v3 = vld [vmem:[#allocation5 + $0x1d0] ss:$8 sps:$4 sm:$0xff]  }
0x1f64   :  { %v1927_v50 = vpop.permute.xlu0 %1926 }
0x1f65   :  { %v1929_v38 = vadd.f32 %v1927_v50, %v1919_v7  ;;  %v5492_v7 = vld [vmem:[#allocation5 + $0x1c4] ss:$8 sps:$4 sm:$0xff]   ;;  %v5495_v50 = vld [vmem:[#allocation5 + $0x1c0] ss:$8 sps:$4 sm:$0xff]  }
0x1f67   :  { %4621 = vtanh.f32 %v1929_v38 }
0x1f68   :  { %4623 = vpow2.f32 %v4200_v46  ;;  %v1247_v46 = vadd.f32 %v5365_v34, %v5266_v9 }
0x1f74   :  { %v4622_v6 = vpop.eup %4621 }
0x1f75   :  { %1932 = vrot.lane.b32.xlu1 %v4622_v6, %s4915_s19  ;;  %v4624_v25 = vpop.eup %4623  ;;  %v1245_v6 = vadd.f32 %v5363_v29, %v5256_v13  ;;  %v4207_v13 = vld [vmem:[%s6056_s1 + $0x2] ss:$8 sm:$0x3] }
0x1f76   :  { %v1913_v18 = vadd.f32 1.0, %v4624_v25  ;;  %v5516_v29 = vrot.slane %v4207_v13, %v5057_v41  ;;  %v5520_v34 = vrot.slane %v4207_v13, %v5063_v51 }
0x1f77   :  { %v2023_v25 = vadd.f32 %v5245_v53, %v1245_v6  ;;  %v5567_v6 = vld [vmem:[#allocation5 + $0x240] ss:$8 sps:$4 sm:$0xff]  }
0x1f78   :  { %4625 = vrcp.f32 %v1913_v18 }
0x1f85   :  { %v4626_v61 = vpop.eup %4625 }
0x1fe7   :  { %v1933_v24 = vpop.permute.xlu1 %1932 }
0x1fe8   :  { %v1935_v58 = vmul.f32 %v4626_v61, %v1933_v24  ;;  %v2024_v24 = vadd.f32 %v5250_v60, %v1247_v46  ;;  %v5569_v46 = vld [vmem:[#allocation5 + $0x214] ss:$8 sps:$4 sm:$0xff]  }
0x1fea   :  { %v1942_v28 = vpack.c.bf16 %v1935_v58, %v1935_v58 }
0x1fec   :  { %4201 = vmatmul.mubr.msk.bf16.vlgmr.msra.gmra.mxu0 %vm128_vm0, %v1942_v28 }
0x1fed   :  { %2203 = vmatprep.mubr.bf16.mxu0 %v4914_v0  ;;  %2180 = vmatpush1.bf16.msra.mxu0 %v4411_v59 }
0x1fee   :  { %2181 = vmatprep.subr.bf16.mxu0 %v4416_v19 }
0x1ff1   :  { %2182 = vmatpush1.bf16.msra.mxu0 %v4414_v54  ;;  %v5530_v54 = vld [vmem:[#allocation5 + $0x274] ss:$8 sps:$4 sm:$0xff]  }
0x1ff2   :  { %2183 = vmatprep.subr.bf16.mxu0 %v4421_v8  ;;  %v5532_v8 = vld [vmem:[#allocation5 + $0x234] ss:$8 sps:$4 sm:$0xff]  }
0x1ff5   :  { %2184 = vmatpush1.bf16.msra.mxu0 %v4419_v23  ;;  %v5534_v23 = vld [vmem:[#allocation5 + $0x270] ss:$8 sps:$4 sm:$0xff]  }
0x1ff6   :  { %2185 = vmatprep.subr.bf16.mxu0 %v4427_v42  ;;  %v5538_v42 = vld [vmem:[#allocation5 + $0x264] ss:$8 sps:$4 sm:$0xff]  }
0x1ff9   :  { %2186 = vmatpush1.bf16.msra.mxu0 %v4425_v11  ;;  %v5536_v11 = vld [vmem:[#allocation5 + $0x230] ss:$8 sps:$4 sm:$0xff]  }
0x1ffa   :  { %2545 = vmatprep.subr.bf16.mxu0 %v5532_v8 }
0x1ffc   :  { %4216 = vmatmul.mubr.msk.bf16.vlgmr.msra.gmra.mxu0 %vm128_vm0, %v4962_v20 }
0x1ffd   :  { %2213 = vmatprep.mubr.bf16.mxu0 %v4914_v0  ;;  %2546 = vmatpush1.bf16.msra.mxu0 %v5536_v11 }
0x2004   :  { %4217 = vmatmul.mubr.msk.bf16.gmra.mxu0 %vm128_vm0, %v4989_v27 }
0x2005   :  { %2223 = vmatprep.mubr.bf16.mxu0 %v4914_v0 }
0x200c   :  { %4218 = vmatmul.mubr.msk.bf16.gmra.mxu0 %vm128_vm0, %v5017_v33  ;;  %v5482_v33 = vld [vmem:[#allocation5 + $0x1e0] ss:$8 sps:$4 sm:$0xff]  }
0x200d   :  { %2233 = vmatprep.mubr.bf16.mxu0 %v4914_v0 }
0x2014   :  { %4219 = vmatmul.mubr.msk.bf16.gmra.mxu0 %vm128_vm0, %v5036_v36  ;;  %v5486_v36 = vld [vmem:[#allocation5 + $0x1d4] ss:$8 sps:$4 sm:$0xff]  }
0x2015   :  { %2569 = vmatprep.mubr.bf16.mxu0 %v4914_v0 }
0x20ac   :  { %v1980_v26 = vpop.f32.mrf.mxu0 }
0x20ad   :  { %v1987_v40 = vadd.f32 %v1980_v26, %v1940_v22 }
0x20ae   :  { %v1982_v32 = vpop.f32.mrf.mxu0 }
0x20af   :  { %v1988_v30 = vadd.f32 %v1982_v32, %v1941_v14  ;;  %v4202_v48 = vmul.f32 -1.442695, %v1987_v40 }
0x20b0   :  { %v1984_v55 = vpop.f32.mrf.mxu0 }
0x20b1   :  { %4627 = vtanh.f32 %v1988_v30  ;;  %v4203_v20 = vmul.f32 -1.442695, %v1988_v30 }
0x20b2   :  { %v1985_v57 = vpop.f32.mrf.mxu0  ;;  %4629 = vpow2.f32 %v4202_v48 }
0x20bc   :  { %v2205_v9 = vpop.f32.mrf.mxu0 }
0x20bd   :  { %v2206_v53 = vadd.f32 %v2205_v9, %v5516_v29 }
0x20be   :  { %v4628_v16 = vpop.eup %4627  ;;  %v2207_v22 = vpop.f32.mrf.mxu0 }
0x20bf   :  { %2004 = vrot.lane.b32.xlu0 %v4628_v16, %s4915_s19  ;;  %v4630_v47 = vpop.eup %4629  ;;  %v2208_v14 = vadd.f32 %v2207_v22, %v5520_v34 }
0x20c0   :  { %v1995_v12 = vadd.f32 1.0, %v4630_v47 }
0x20c2   :  { %4631 = vrcp.f32 %v1995_v12 }
0x20cf   :  { %v4632_v10 = vpop.eup %4631 }
0x20d0   :  { %v2002_v62 = vmul.f32 %v4632_v10, %v1929_v38  ;;  %v2291_v38 = vpack.c.bf16 %v5328_v2, %v5328_v2 }
0x2131   :  { %v2005_v35 = vpop.permute.xlu0 %2004 }
0x2132   :  { %v2007_v5 = vmul.f32 %v4632_v10, %v2005_v35 }
0x2134   :  { %2009 = vrot.lane.b32.xlu1 %v2007_v5, %s4915_s19 }
0x21a6   :  { %v2010_v17 = vpop.permute.xlu1 %2009 }
0x21a7   :  { %v5457_v63 = vadd.f32 %v2010_v17, %v2002_v62 }
0x21a9   :  { %4633 = vtanh.f32 %v5457_v63 }
0x21aa   :  { %4635 = vpow2.f32 %v4203_v20  ;;  %v5546_v20 = vld [vmem:[#allocation5 + $0x260] ss:$8 sps:$4 sm:$0xff]  }
0x21b6   :  { %v4634_v31 = vpop.eup %4633 }
0x21b7   :  { %2015 = vrot.lane.b32.xlu0 %v4634_v31, %s4915_s19  ;;  %v4636_v15 = vpop.eup %4635  ;;  %v5542_v31 = vld [vmem:[#allocation5 + $0x224] ss:$8 sps:$4 sm:$0xff]  }
0x21b8   :  { %v1996_v39 = vadd.f32 1.0, %v4636_v15  ;;  %v5548_v15 = vld [vmem:[#allocation5 + $0x220] ss:$8 sps:$4 sm:$0xff]   ;;  %2547 = vmatprep.subr.bf16.mxu0 %v5542_v31 }
0x21b9   :  { %2548 = vmatpush1.bf16.msra.mxu0 %v5548_v15 }
0x21ba   :  { %4637 = vrcp.f32 %v1996_v39  ;;  %v5551_v39 = vld [vmem:[#allocation5 + $0x254] ss:$8 sps:$4 sm:$0xff]   ;;  %2549 = vmatprep.subr.bf16.mxu0 %v5569_v46 }
0x21c7   :  { %v4638_v49 = vpop.eup %4637 }
0x2229   :  { %v2016_v56 = vpop.permute.xlu0 %2015 }
0x222a   :  { %v2018_v27 = vmul.f32 %v4638_v49, %v2016_v56  ;;  %v5555_v49 = vld [vmem:[#allocation5 + $0x250] ss:$8 sps:$4 sm:$0xff]   ;;  %v5559_v56 = vld [vmem:[#allocation5 + $0x244] ss:$8 sps:$4 sm:$0xff]  }
0x222c   :  { %v2025_v52 = vpack.c.bf16 %v2018_v27, %v2018_v27 }
0x222e   :  { %4204 = vmatmul.mubr.msk.bf16.vlgmr.msra.gmra.mxu1 %vm128_vm0, %v2025_v52 }
0x222f   :  { %2344 = vmatpush1.bf16.msra.mxu1 %v5476_v21  ;;  %2367 = vmatprep.mubr.bf16.mxu1 %v4914_v0 }
0x2230   :  { %2345 = vmatprep.subr.bf16.mxu1 %v5478_v43 }
0x2233   :  { %2346 = vmatpush1.bf16.msra.mxu1 %v5482_v33 }
0x2234   :  { %2347 = vmatprep.subr.bf16.mxu1 %v5486_v36 }
0x2237   :  { %2348 = vmatpush1.bf16.msra.mxu1 %v5489_v3 }
0x2238   :  { %2349 = vmatprep.subr.bf16.mxu1 %v5492_v7 }
0x223b   :  { %2350 = vmatpush1.bf16.msra.mxu1 %v5495_v50 }
0x223c   :  { %2461 = vmatprep.subr.bf16.mxu1 %v5530_v54 }
0x223e   :  { %4229 = vmatmul.mubr.msk.bf16.vlgmr.msra.gmra.mxu1 %vm128_vm0, %v2291_v38 }
0x223f   :  { %2485 = vmatprep.mubr.bf16.mxu1 %v4914_v0  ;;  %2462 = vmatpush1.bf16.msra.mxu1 %v5534_v23 }
0x2240   :  { %2463 = vmatprep.subr.bf16.mxu1 %v5538_v42 }
0x2243   :  { %2464 = vmatpush1.bf16.msra.mxu1 %v5546_v20 }
0x2244   :  { %2465 = vmatprep.subr.bf16.mxu1 %v5551_v39 }
0x2247   :  { %2466 = vmatpush1.bf16.msra.mxu1 %v5555_v49 }
0x2248   :  { %2467 = vmatprep.subr.bf16.mxu1 %v5559_v56 }
0x224b   :  { %2468 = vmatpush1.bf16.msra.mxu1 %v5567_v6 }
0x224c   :  { %2620 = vmatprep.subr.bf16.mxu1 %v5460_v1 }
0x22ee   :  { %v2063_v18 = vpop.f32.mrf.mxu1 }
0x22ef   :  { %v2070_v61 = vadd.f32 %v2063_v18, %v2023_v25  ;;  %v5573_v25 = vld [vmem:[#allocation5 + $0x210] ss:$8 sps:$4 sm:$0xff]   ;;  %v5579_v18 = vld [vmem:[#allocation5 + $0x200] ss:$8 sps:$4 sm:$0xff]  }
0x22f0   :  { %v2065_v58 = vpop.f32.mrf.mxu1  ;;  %2550 = vmatpush1.bf16.msra.mxu0 %v5573_v25 }
0x22f1   :  { %v5509_v28 = vadd.f32 %v2065_v58, %v2024_v24  ;;  %v4205_v16 = vmul.f32 -1.442695, %v2070_v61 }
0x22f2   :  { %v2067_v2 = vpop.f32.mrf.mxu1 }
0x22f3   :  { %4639 = vtanh.f32 %v5509_v28  ;;  %v4206_v13 = vmul.f32 -1.442695, %v5509_v28 }
0x22f4   :  { %v2068_v45 = vpop.f32.mrf.mxu1 }
0x22fe   :  { %v2369_v60 = vpop.f32.mrf.mxu1 }
0x22ff   :  { %v2376_v44 = vadd.f32 %v2369_v60, %v2206_v53 }
0x2300   :  { %v2371_v26 = vpop.f32.mrf.mxu1  ;;  %v4640_v40 = vpop.eup %4639 }
0x2301   :  { %2087 = vrot.lane.b32.xlu1 %v4640_v40, %s4915_s19  ;;  %v5524_v30 = vadd.f32 %v2371_v26, %v2208_v14  ;;  %v4230_v47 = vmul.f32 -1.442695, %v2376_v44 }
0x2302   :  { %v2373_v32 = vpop.f32.mrf.mxu1 }
0x2303   :  { %4641 = vtanh.f32 %v5524_v30  ;;  %v4231_v53 = vmul.f32 -1.442695, %v5524_v30 }
0x2304   :  { %v2374_v55 = vpop.f32.mrf.mxu1  ;;  %4643 = vpow2.f32 %v4205_v16 }
0x2305   :  { %4645 = vpow2.f32 %v4230_v47 }
0x2310   :  { %v4642_v57 = vpop.eup %4641 }
0x2311   :  { %2393 = vrot.lane.b32.xlu0 %v4642_v57, %s4915_s19  ;;  %v4644_v48 = vpop.eup %4643  ;;  %v2209_v57 = vpop.f32.mrf.mxu0 }
0x2312   :  { %v2078_v12 = vadd.f32 1.0, %v4644_v48  ;;  %v4646_v10 = vpop.eup %4645 }
0x2313   :  { %v2384_v4 = vadd.f32 1.0, %v4646_v10  ;;  %v2211_v16 = vpop.f32.mrf.mxu0 }
0x2314   :  { %4647 = vrcp.f32 %v2078_v12 }
0x2315   :  { %4649 = vrcp.f32 %v2384_v4  ;;  %v5622_v48 = vpop.f32.mrf.mxu0 }
0x2317   :  { %v5624_v47 = vpop.f32.mrf.mxu0 }
0x2319   :  { %v5626_v12 = vpop.f32.mrf.mxu0 }
0x231b   :  { %v5628_v10 = vpop.f32.mrf.mxu0 }
0x2321   :  { %v4648_v35 = vpop.eup %4647 }
0x2322   :  { %v4650_v62 = vpop.eup %4649  ;;  %v2085_v27 = vmul.f32 %v4648_v35, %v5457_v63  ;;  %v5577_v63 = vld [vmem:[#allocation5 + $0x204] ss:$8 sps:$4 sm:$0xff]  }
0x2323   :  { %2551 = vmatprep.subr.bf16.mxu0 %v5577_v63  ;;  %v2391_v24 = vmul.f32 %v4650_v62, %v5301_v37 }
0x2324   :  { %2552 = vmatpush1.bf16.msra.mxu0 %v5579_v18 }
0x2325   :  { %2698 = vmatprep.subr.bf16.mxu0 %v5530_v54 }
0x2373   :  { %v2088_v5 = vpop.permute.xlu1 %2087 }
0x2374   :  { %v2090_v59 = vmul.f32 %v4648_v35, %v2088_v5  ;;  %v5630_v35 = vpop.f32.mrf.mxu0 }
0x2376   :  { %2092 = vrot.lane.b32.xlu1 %v2090_v59, %s4915_s19  ;;  %v5632_v5 = vpop.f32.mrf.mxu0 }
0x2378   :  { %v5634_v59 = vpop.f32.mrf.mxu0 }
0x2383   :  { %v2394_v17 = vpop.permute.xlu0 %2393 }
0x2384   :  { %v2396_v19 = vmul.f32 %v4650_v62, %v2394_v17  ;;  %v5636_v62 = vpop.f32.mrf.mxu0 }
0x2386   :  { %2398 = vrot.lane.b32.xlu0 %v2396_v19, %s4915_s19 }
0x23e8   :  { %v2093_v52 = vpop.permute.xlu1 %2092 }
0x23e9   :  { %v5564_v38 = vadd.f32 %v2093_v52, %v2085_v27  ;;  %v5638_v27 = vpop.f32.mrf.mxu0 }
0x23eb   :  { %4651 = vtanh.f32 %v5564_v38 }
0x23f8   :  { %v4652_v61 = vpop.eup %4651  ;;  %v2399_v58 = vpop.permute.xlu0 %2398 }
0x23f9   :  { %2098 = vrot.lane.b32.xlu1 %v4652_v61, %s4915_s19  ;;  %v5586_v2 = vadd.f32 %v2399_v58, %v2391_v24  ;;  %v5640_v61 = vpop.f32.mrf.mxu0 }
0x23fb   :  { %4653 = vtanh.f32 %v5586_v2  ;;  %v5642_v24 = vpop.f32.mrf.mxu0 }
0x23fc   :  { %4655 = vpow2.f32 %v4206_v13  ;;  %v4220_v13 = vld [vmem:[%s6056_s1 + $0x3] ss:$8 sm:$0x3] }
0x23fd   :  { %4657 = vpow2.f32 %v4231_v53  ;;  %v5644_v58 = vpop.f32.mrf.mxu0 }
0x2408   :  { %v4654_v45 = vpop.eup %4653 }
0x2409   :  { %2404 = vrot.lane.b32.xlu0 %v4654_v45, %s4915_s19  ;;  %v4656_v9 = vpop.eup %4655  ;;  %v2210_v45 = vadd.f32 %v2209_v57, %v5516_v29 }
0x240a   :  { %v2079_v60 = vadd.f32 1.0, %v4656_v9  ;;  %v4658_v44 = vpop.eup %4657 }
0x240b   :  { %v2385_v40 = vadd.f32 1.0, %v4658_v44 }
0x240c   :  { %4659 = vrcp.f32 %v2079_v60  ;;  %v2212_v60 = vadd.f32 %v2211_v16, %v5520_v34 }
0x240d   :  { %4661 = vrcp.f32 %v2385_v40 }
0x2419   :  { %v4660_v22 = vpop.eup %4659 }
0x241a   :  { %v4662_v28 = vpop.eup %4661 }
0x246b   :  { %v2099_v37 = vpop.permute.xlu1 %2098 }
0x246c   :  { %v2101_v26 = vmul.f32 %v4660_v22, %v2099_v37  ;;  %v5652_v37 = vrot.slane %v4220_v13, %v5063_v51  ;;  %v5658_v51 = vrot.slane %v4220_v13, %v5057_v41 }
0x246e   :  { %v2409_v14 = vpack.c.bf16 %v2101_v26, %v2101_v26 }
0x2470   :  { %4240 = vmatmul.mubr.msk.bf16.vlgmr.msra.gmra.mxu1 %vm128_vm0, %v2409_v14 }
0x2471   :  { %2621 = vmatpush1.bf16.msra.mxu1 %v5476_v21  ;;  %2644 = vmatprep.mubr.bf16.mxu1 %v4914_v0 }
0x2472   :  { %2622 = vmatprep.subr.bf16.mxu1 %v5478_v43 }
0x2475   :  { %2623 = vmatpush1.bf16.msra.mxu1 %v5482_v33 }
0x2476   :  { %2624 = vmatprep.subr.bf16.mxu1 %v5486_v36 }
0x2479   :  { %2625 = vmatpush1.bf16.msra.mxu1 %v5489_v3 }
0x247a   :  { %2626 = vmatprep.subr.bf16.mxu1 %v5492_v7 }
0x247b   :  { %v2405_v32 = vpop.permute.xlu0 %2404 }
0x247c   :  { %v2407_v30 = vmul.f32 %v4662_v28, %v2405_v32 }
0x247d   :  { %2627 = vmatpush1.bf16.msra.mxu1 %v5495_v50 }
0x247e   :  { %2742 = vmatprep.subr.bf16.mxu1 %v5532_v8  ;;  %v2408_v55 = vpack.c.bf16 %v2407_v30, %v2407_v30 }
0x2480   :  { %4249 = vmatmul.mubr.msk.bf16.vlgmr.msra.gmra.mxu0 %vm128_vm0, %v2408_v55  ;;  %4252 = vmatmul.mubr.msk.bf16.vlgmr.msra.gmra.mxu1 %vm128_vm0, %v2408_v55 }
0x2481   :  { %2743 = vmatpush1.bf16.msra.mxu1 %v5536_v11  ;;  %2699 = vmatpush1.bf16.msra.mxu0 %v5534_v23 }
0x2482   :  { %2744 = vmatprep.subr.bf16.mxu1 %v5542_v31  ;;  %2700 = vmatprep.subr.bf16.mxu0 %v5538_v42 }
0x2483   :  { %2766 = vmatprep.mubr.bf16.mxu1 %v4914_v0  ;;  %2722 = vmatprep.mubr.bf16.mxu0 %v4914_v0 }
0x2485   :  { %2745 = vmatpush1.bf16.msra.mxu1 %v5548_v15  ;;  %2701 = vmatpush1.bf16.msra.mxu0 %v5546_v20 }
0x2486   :  { %2746 = vmatprep.subr.bf16.mxu1 %v5569_v46  ;;  %2702 = vmatprep.subr.bf16.mxu0 %v5551_v39 }
0x2489   :  { %2747 = vmatpush1.bf16.msra.mxu1 %v5573_v25  ;;  %2703 = vmatpush1.bf16.msra.mxu0 %v5555_v49 }
0x248a   :  { %2748 = vmatprep.subr.bf16.mxu1 %v5577_v63  ;;  %2704 = vmatprep.subr.bf16.mxu0 %v5559_v56 }
0x248d   :  { %2749 = vmatpush1.bf16.msra.mxu1 %v5579_v18  ;;  %2705 = vmatpush1.bf16.msra.mxu0 %v5567_v6 }
0x248e   :  { %2817 = vmatprep.subr.bf16.mxu0 %v5460_v1  ;;  %2895 = vmatprep.subr.bf16.mxu1 %v5530_v54 }
0x2530   :  { %v2487_v4 = vpop.f32.mrf.mxu1 }
0x2532   :  { %v2489_v17 = vpop.f32.mrf.mxu1 }
0x2534   :  { %v2491_v19 = vpop.f32.mrf.mxu1 }
0x2536   :  { %v2492_v52 = vpop.f32.mrf.mxu1 }
0x2540   :  { %v2571_v9 = vpop.f32.mrf.mxu0  ;;  %v2646_v53 = vpop.f32.mrf.mxu1 }
0x2541   :  { %v2572_v44 = vadd.f32 %v2571_v9, %v2487_v4  ;;  %v2653_v22 = vadd.f32 %v2646_v53, %v2210_v45 }
0x2542   :  { %v2573_v26 = vpop.f32.mrf.mxu0  ;;  %v2648_v40 = vpop.f32.mrf.mxu1 }
0x2543   :  { %v2574_v14 = vadd.f32 %v2573_v26, %v2489_v17  ;;  %v2654_v28 = vadd.f32 %v2648_v40, %v2212_v60  ;;  %v2578_v4 = vadd.f32 %v2572_v44, %v5658_v51  ;;  %v4253_v17 = vmul.f32 -1.442695, %v2653_v22 }
0x2544   :  { %v2575_v32 = vpop.f32.mrf.mxu0  ;;  %v2650_v30 = vpop.f32.mrf.mxu1 }
0x2545   :  { %v2579_v55 = vadd.f32 %v2574_v14, %v5652_v37  ;;  %4663 = vtanh.f32 %v2654_v28  ;;  %v4250_v45 = vmul.f32 -1.442695, %v2578_v4 }
0x2546   :  { %v2576_v57 = vpop.f32.mrf.mxu0  ;;  %v2651_v19 = vpop.f32.mrf.mxu1 }
0x2547   :  { %4665 = vtanh.f32 %v2579_v55 }
0x2548   :  { %4667 = vpow2.f32 %v4253_v17 }
0x2549   :  { %4669 = vpow2.f32 %v4250_v45  ;;  %v4254_v45 = vmul.f32 -1.442695, %v2654_v28 }
0x2552   :  { %v4664_v52 = vpop.eup %4663 }
0x2553   :  { %2670 = vrot.lane.b32.xlu0 %v4664_v52, %s4915_s19 }
0x2554   :  { %v4666_v16 = vpop.eup %4665 }
0x2555   :  { %2595 = vrot.lane.b32.xlu1 %v4666_v16, %s4915_s19  ;;  %v4668_v9 = vpop.eup %4667 }
0x2556   :  { %v4670_v53 = vpop.eup %4669  ;;  %v2661_v60 = vadd.f32 1.0, %v4668_v9 }
0x2557   :  { %v2586_v26 = vadd.f32 1.0, %v4670_v53 }
0x2558   :  { %4671 = vrcp.f32 %v2661_v60 }
0x2559   :  { %4673 = vrcp.f32 %v2586_v26 }
0x2565   :  { %v4672_v40 = vpop.eup %4671 }
0x2566   :  { %v4674_v30 = vpop.eup %4673  ;;  %v2668_v41 = vmul.f32 %v4672_v40, %v5586_v2  ;;  %v4251_v2 = vmul.f32 -1.442695, %v2579_v55 }
0x2567   :  { %v2593_v22 = vmul.f32 %v4674_v30, %v5564_v38 }
0x25c5   :  { %v2671_v14 = vpop.permute.xlu0 %2670 }
0x25c6   :  { %v2673_v32 = vmul.f32 %v4672_v40, %v2671_v14 }
0x25c7   :  { %v2596_v57 = vpop.permute.xlu1 %2595 }
0x25c8   :  { %v2598_v19 = vmul.f32 %v4674_v30, %v2596_v57  ;;  %2675 = vrot.lane.b32.xlu0 %v2673_v32, %s4915_s19 }
0x25ca   :  { %2600 = vrot.lane.b32.xlu1 %v2598_v19, %s4915_s19 }
0x263a   :  { %v2676_v13 = vpop.permute.xlu0 %2675 }
0x263b   :  { %v5664_v44 = vadd.f32 %v2676_v13, %v2668_v41 }
0x263c   :  { %v2601_v52 = vpop.permute.xlu1 %2600 }
0x263d   :  { %4675 = vtanh.f32 %v5664_v44  ;;  %v5668_v16 = vadd.f32 %v2601_v52, %v2593_v22 }
0x263f   :  { %4677 = vtanh.f32 %v5668_v16 }
0x2640   :  { %4679 = vpow2.f32 %v4254_v45 }
0x2641   :  { %4681 = vpow2.f32 %v4251_v2 }
0x264a   :  { %v4676_v4 = vpop.eup %4675 }
0x264b   :  { %2681 = vrot.lane.b32.xlu0 %v4676_v4, %s4915_s19 }
0x264c   :  { %v4678_v17 = vpop.eup %4677 }
0x264d   :  { %2606 = vrot.lane.b32.xlu1 %v4678_v17, %s4915_s19  ;;  %v4680_v9 = vpop.eup %4679 }
0x264e   :  { %v4682_v53 = vpop.eup %4681  ;;  %v2662_v38 = vadd.f32 1.0, %v4680_v9 }
0x264f   :  { %v2587_v60 = vadd.f32 1.0, %v4682_v53 }
0x2650   :  { %4683 = vrcp.f32 %v2662_v38  ;;  %v2216_v38 = vadd.f32 %v5622_v48, %v5516_v29 }
0x2651   :  { %4685 = vrcp.f32 %v2587_v60 }
0x265d   :  { %v4684_v26 = vpop.eup %4683 }
0x265e   :  { %v4686_v32 = vpop.eup %4685 }
0x26bd   :  { %v2682_v40 = vpop.permute.xlu0 %2681 }
0x26be   :  { %v2684_v14 = vmul.f32 %v4684_v26, %v2682_v40  ;;  %v2218_v26 = vadd.f32 %v5624_v47, %v5520_v34 }
0x26bf   :  { %v2607_v30 = vpop.permute.xlu1 %2606 }
0x26c0   :  { %v2685_v57 = vpack.c.bf16 %v2684_v14, %v2684_v14  ;;  %v2609_v19 = vmul.f32 %v4686_v32, %v2607_v30 }
0x26c2   :  { %v2686_v41 = vpack.c.bf16 %v2609_v19, %v2609_v19  ;;  %4256 = vmatmul.mubr.msk.bf16.vlgmr.msra.gmra.mxu1 %vm128_vm0, %v2685_v57 }
0x26c3   :  { %2896 = vmatpush1.bf16.msra.mxu1 %v5534_v23  ;;  %2919 = vmatprep.mubr.bf16.mxu1 %v4914_v0 }
0x26c4   :  { %4255 = vmatmul.mubr.msk.bf16.vlgmr.msra.gmra.mxu0 %vm128_vm0, %v2686_v41  ;;  %2897 = vmatprep.subr.bf16.mxu1 %v5538_v42 }
0x26c5   :  { %2818 = vmatpush1.bf16.msra.mxu0 %v5476_v21  ;;  %2841 = vmatprep.mubr.bf16.mxu0 %v4914_v0 }
0x26c6   :  { %2819 = vmatprep.subr.bf16.mxu0 %v5478_v43 }
0x26c7   :  { %2898 = vmatpush1.bf16.msra.mxu1 %v5546_v20 }
0x26c8   :  { %2899 = vmatprep.subr.bf16.mxu1 %v5551_v39 }
0x26c9   :  { %2820 = vmatpush1.bf16.msra.mxu0 %v5482_v33 }
0x26ca   :  { %2821 = vmatprep.subr.bf16.mxu0 %v5486_v36 }
0x26cb   :  { %2900 = vmatpush1.bf16.msra.mxu1 %v5555_v49 }
0x26cc   :  { %2901 = vmatprep.subr.bf16.mxu1 %v5559_v56 }
0x26cd   :  { %2822 = vmatpush1.bf16.msra.mxu0 %v5489_v3 }
0x26ce   :  { %2823 = vmatprep.subr.bf16.mxu0 %v5492_v7 }
0x26cf   :  { %2902 = vmatpush1.bf16.msra.mxu1 %v5567_v6 }
0x26d0   :  { %3014 = vmatprep.subr.bf16.mxu1 %v5460_v1 }
0x26d1   :  { %2824 = vmatpush1.bf16.msra.mxu0 %v5495_v50 }
0x26d2   :  { %2939 = vmatprep.subr.bf16.mxu0 %v5532_v8 }
0x26d4   :  { %4259 = vmatmul.mubr.msk.bf16.vlgmr.msra.gmra.mxu0 %vm128_vm0, %v2685_v57 }
0x26d5   :  { %2940 = vmatpush1.bf16.msra.mxu0 %v5536_v11  ;;  %2963 = vmatprep.mubr.bf16.mxu0 %v4914_v0 }
0x26d6   :  { %2941 = vmatprep.subr.bf16.mxu0 %v5542_v31 }
0x26d9   :  { %2942 = vmatpush1.bf16.msra.mxu0 %v5548_v15 }
0x26da   :  { %2943 = vmatprep.subr.bf16.mxu0 %v5569_v46 }
0x26dd   :  { %2944 = vmatpush1.bf16.msra.mxu0 %v5573_v25 }
0x26de   :  { %2945 = vmatprep.subr.bf16.mxu0 %v5577_v63 }
0x26e1   :  { %2946 = vmatpush1.bf16.msra.mxu0 %v5579_v18 }
0x26e2   :  { %3092 = vmatprep.subr.bf16.mxu0 %v5530_v54 }
0x2782   :  { %v2768_v28 = vpop.f32.mrf.mxu1 }
0x2784   :  { %v2724_v55 = vpop.f32.mrf.mxu0  ;;  %v2770_v13 = vpop.f32.mrf.mxu1 }
0x2785   :  { %v2769_v22 = vadd.f32 %v2768_v28, %v2724_v55 }
0x2786   :  { %v2726_v52 = vpop.f32.mrf.mxu0  ;;  %v2772_v4 = vpop.f32.mrf.mxu1 }
0x2787   :  { %v2771_v17 = vadd.f32 %v2770_v13, %v2726_v52  ;;  %v2775_v28 = vadd.f32 %v2769_v22, %v5658_v51 }
0x2788   :  { %v2728_v45 = vpop.f32.mrf.mxu0  ;;  %v2773_v2 = vpop.f32.mrf.mxu1 }
0x2789   :  { %v2776_v9 = vadd.f32 %v2771_v17, %v5652_v37  ;;  %v4257_v55 = vmul.f32 -1.442695, %v2775_v28 }
0x278a   :  { %v2729_v53 = vpop.f32.mrf.mxu0 }
0x278b   :  { %4687 = vtanh.f32 %v2776_v9  ;;  %v4258_v28 = vmul.f32 -1.442695, %v2776_v9 }
0x2794   :  { %v2843_v60 = vpop.f32.mrf.mxu0 }
0x2795   :  { %v2850_v40 = vadd.f32 %v2843_v60, %v2216_v38 }
0x2796   :  { %v2845_v14 = vpop.f32.mrf.mxu0 }
0x2797   :  { %v2851_v32 = vadd.f32 %v2845_v14, %v2218_v26  ;;  %v4260_v48 = vmul.f32 -1.442695, %v2850_v40 }
0x2798   :  { %v2847_v30 = vpop.f32.mrf.mxu0  ;;  %v4688_v57 = vpop.eup %4687 }
0x2799   :  { %4689 = vtanh.f32 %v2851_v32  ;;  %2792 = vrot.lane.b32.xlu1 %v4688_v57, %s4915_s19 }
0x279a   :  { %v2848_v19 = vpop.f32.mrf.mxu0  ;;  %4691 = vpow2.f32 %v4257_v55 }
0x279b   :  { %4693 = vpow2.f32 %v4260_v48 }
0x27a6   :  { %v4690_v41 = vpop.eup %4689 }
0x27a7   :  { %2867 = vrot.lane.b32.xlu0 %v4690_v41, %s4915_s19  ;;  %v4692_v13 = vpop.eup %4691 }
0x27a8   :  { %v2783_v47 = vadd.f32 1.0, %v4692_v13  ;;  %v4694_v52 = vpop.eup %4693 }
0x27a9   :  { %v2858_v4 = vadd.f32 1.0, %v4694_v52 }
0x27aa   :  { %4695 = vrcp.f32 %v2783_v47 }
0x27ab   :  { %4697 = vrcp.f32 %v2858_v4 }
0x27b7   :  { %v4696_v17 = vpop.eup %4695 }
0x27b8   :  { %v4698_v53 = vpop.eup %4697  ;;  %v2790_v22 = vmul.f32 %v4696_v17, %v5668_v16  ;;  %v4261_v16 = vmul.f32 -1.442695, %v2851_v32 }
0x27b9   :  { %v2865_v14 = vmul.f32 %v4698_v53, %v5664_v44 }
0x280b   :  { %v2793_v45 = vpop.permute.xlu1 %2792 }
0x280c   :  { %v2795_v2 = vmul.f32 %v4696_v17, %v2793_v45 }
0x280e   :  { %2797 = vrot.lane.b32.xlu1 %v2795_v2, %s4915_s19 }
0x2819   :  { %v2868_v38 = vpop.permute.xlu0 %2867 }
0x281a   :  { %v2870_v60 = vmul.f32 %v4698_v53, %v2868_v38 }
0x281c   :  { %2872 = vrot.lane.b32.xlu0 %v2870_v60, %s4915_s19 }
0x2880   :  { %v2798_v26 = vpop.permute.xlu1 %2797 }
0x2881   :  { %v5714_v40 = vadd.f32 %v2798_v26, %v2790_v22 }
0x2883   :  { %4699 = vtanh.f32 %v5714_v40 }
0x288e   :  { %v2873_v30 = vpop.permute.xlu0 %2872 }
0x288f   :  { %v5718_v57 = vadd.f32 %v2873_v30, %v2865_v14  ;;  %v2220_v14 = vadd.f32 %v5626_v12, %v5516_v29 }
0x2890   :  { %v4700_v19 = vpop.eup %4699 }
0x2891   :  { %4701 = vtanh.f32 %v5718_v57  ;;  %2803 = vrot.lane.b32.xlu1 %v4700_v19, %s4915_s19 }
0x2892   :  { %4703 = vpow2.f32 %v4258_v28 }
0x2893   :  { %4705 = vpow2.f32 %v4261_v16 }
0x289e   :  { %v4702_v41 = vpop.eup %4701 }
0x289f   :  { %2878 = vrot.lane.b32.xlu0 %v4702_v41, %s4915_s19  ;;  %v4704_v55 = vpop.eup %4703 }
0x28a0   :  { %v2784_v48 = vadd.f32 1.0, %v4704_v55  ;;  %v4706_v13 = vpop.eup %4705 }
0x28a1   :  { %v2859_v44 = vadd.f32 1.0, %v4706_v13 }
0x28a2   :  { %4707 = vrcp.f32 %v2784_v48 }
0x28a3   :  { %4709 = vrcp.f32 %v2859_v44  ;;  %v2222_v44 = vadd.f32 %v5628_v10, %v5520_v34 }
0x28af   :  { %v4708_v47 = vpop.eup %4707 }
0x28b0   :  { %v4710_v9 = vpop.eup %4709 }
0x2903   :  { %v2804_v52 = vpop.permute.xlu1 %2803 }
0x2904   :  { %v2806_v4 = vmul.f32 %v4708_v47, %v2804_v52 }
0x2906   :  { %v2883_v17 = vpack.c.bf16 %v2806_v4, %v2806_v4 }
0x2908   :  { %4262 = vmatmul.mubr.msk.bf16.vlgmr.msra.gmra.mxu1 %vm128_vm0, %v2883_v17 }
0x2909   :  { %3015 = vmatpush1.bf16.msra.mxu1 %v5476_v21  ;;  %3038 = vmatprep.mubr.bf16.mxu1 %v4914_v0 }
0x290a   :  { %3016 = vmatprep.subr.bf16.mxu1 %v5478_v43 }
0x290d   :  { %3017 = vmatpush1.bf16.msra.mxu1 %v5482_v33 }
0x290e   :  { %3018 = vmatprep.subr.bf16.mxu1 %v5486_v36 }
0x2911   :  { %v2879_v32 = vpop.permute.xlu0 %2878  ;;  %3019 = vmatpush1.bf16.msra.mxu1 %v5489_v3 }
0x2912   :  { %v2881_v45 = vmul.f32 %v4710_v9, %v2879_v32  ;;  %3020 = vmatprep.subr.bf16.mxu1 %v5492_v7 }
0x2914   :  { %v2882_v2 = vpack.c.bf16 %v2881_v45, %v2881_v45 }
0x2915   :  { %3021 = vmatpush1.bf16.msra.mxu1 %v5495_v50 }
0x2916   :  { %4263 = vmatmul.mubr.msk.bf16.vlgmr.msra.gmra.mxu0 %vm128_vm0, %v2882_v2  ;;  %3136 = vmatprep.subr.bf16.mxu1 %v5532_v8 }
0x2917   :  { %3093 = vmatpush1.bf16.msra.mxu0 %v5534_v23  ;;  %3116 = vmatprep.mubr.bf16.mxu0 %v4914_v0 }
0x2918   :  { %4266 = vmatmul.mubr.msk.bf16.vlgmr.msra.gmra.mxu1 %vm128_vm0, %v2882_v2  ;;  %3094 = vmatprep.subr.bf16.mxu0 %v5538_v42 }
0x2919   :  { %3137 = vmatpush1.bf16.msra.mxu1 %v5536_v11  ;;  %3160 = vmatprep.mubr.bf16.mxu1 %v4914_v0 }
0x291a   :  { %3138 = vmatprep.subr.bf16.mxu1 %v5542_v31 }
0x291b   :  { %3095 = vmatpush1.bf16.msra.mxu0 %v5546_v20 }
0x291c   :  { %3096 = vmatprep.subr.bf16.mxu0 %v5551_v39 }
0x291d   :  { %3139 = vmatpush1.bf16.msra.mxu1 %v5548_v15 }
0x291e   :  { %3140 = vmatprep.subr.bf16.mxu1 %v5569_v46 }
0x291f   :  { %3097 = vmatpush1.bf16.msra.mxu0 %v5555_v49 }
0x2920   :  { %3098 = vmatprep.subr.bf16.mxu0 %v5559_v56 }
0x2921   :  { %3141 = vmatpush1.bf16.msra.mxu1 %v5573_v25 }
0x2922   :  { %3142 = vmatprep.subr.bf16.mxu1 %v5577_v63 }
0x2923   :  { %3099 = vmatpush1.bf16.msra.mxu0 %v5567_v6 }
0x2924   :  { %3211 = vmatprep.subr.bf16.mxu0 %v5460_v1 }
0x2925   :  { %3143 = vmatpush1.bf16.msra.mxu1 %v5579_v18 }
0x2926   :  { %3289 = vmatprep.subr.bf16.mxu1 %v5530_v54 }
0x29c8   :  { %v2921_v53 = vpop.f32.mrf.mxu1 }
0x29ca   :  { %v2923_v38 = vpop.f32.mrf.mxu1 }
0x29cc   :  { %v2925_v60 = vpop.f32.mrf.mxu1 }
0x29ce   :  { %v2926_v22 = vpop.f32.mrf.mxu1 }
0x29d6   :  { %v2965_v26 = vpop.f32.mrf.mxu0 }
0x29d7   :  { %v2966_v30 = vadd.f32 %v2965_v26, %v2921_v53 }
0x29d8   :  { %v2967_v19 = vpop.f32.mrf.mxu0  ;;  %v3040_v41 = vpop.f32.mrf.mxu1 }
0x29d9   :  { %v2968_v28 = vadd.f32 %v2967_v19, %v2923_v38  ;;  %v3047_v16 = vadd.f32 %v3040_v41, %v2220_v14  ;;  %v2972_v32 = vadd.f32 %v2966_v30, %v5658_v51 }
0x29da   :  { %v2969_v55 = vpop.f32.mrf.mxu0  ;;  %v3042_v48 = vpop.f32.mrf.mxu1 }
0x29db   :  { %v2973_v13 = vadd.f32 %v2968_v28, %v5652_v37  ;;  %v3048_v4 = vadd.f32 %v3042_v48, %v2222_v44  ;;  %v4264_v45 = vmul.f32 -1.442695, %v2972_v32  ;;  %v4267_v2 = vmul.f32 -1.442695, %v3047_v16 }
0x29dc   :  { %v2970_v47 = vpop.f32.mrf.mxu0  ;;  %v3044_v52 = vpop.f32.mrf.mxu1 }
0x29dd   :  { %4711 = vtanh.f32 %v2973_v13 }
0x29de   :  { %v3045_v17 = vpop.f32.mrf.mxu1  ;;  %4713 = vtanh.f32 %v3048_v4 }
0x29df   :  { %4715 = vpow2.f32 %v4264_v45 }
0x29e0   :  { %4717 = vpow2.f32 %v4267_v2 }
0x29ea   :  { %v4712_v9 = vpop.eup %4711 }
0x29eb   :  { %2989 = vrot.lane.b32.xlu1 %v4712_v9, %s4915_s19  ;;  %v4714_v12 = vpop.eup %4713  ;;  %v4265_v9 = vmul.f32 -1.442695, %v2973_v13 }
0x29ec   :  { %3064 = vrot.lane.b32.xlu0 %v4714_v12, %s4915_s19  ;;  %v4716_v53 = vpop.eup %4715 }
0x29ed   :  { %v2980_v10 = vadd.f32 1.0, %v4716_v53  ;;  %v4718_v38 = vpop.eup %4717 }
0x29ee   :  { %v3055_v60 = vadd.f32 1.0, %v4718_v38 }
0x29ef   :  { %4719 = vrcp.f32 %v2980_v10 }
0x29f0   :  { %4721 = vrcp.f32 %v3055_v60 }
0x29fc   :  { %v4720_v22 = vpop.eup %4719 }
0x29fd   :  { %v4722_v19 = vpop.eup %4721  ;;  %v2987_v30 = vmul.f32 %v4720_v22, %v5714_v40  ;;  %v4268_v40 = vmul.f32 -1.442695, %v3048_v4 }
0x29fe   :  { %v3062_v48 = vmul.f32 %v4722_v19, %v5718_v57 }
0x2a5d   :  { %v2990_v26 = vpop.permute.xlu1 %2989 }
0x2a5e   :  { %v2992_v14 = vmul.f32 %v4720_v22, %v2990_v26  ;;  %v3065_v41 = vpop.permute.xlu0 %3064 }
0x2a5f   :  { %v3067_v28 = vmul.f32 %v4722_v19, %v3065_v41  ;;  %v2226_v41 = vadd.f32 %v5630_v35, %v5516_v29 }
0x2a60   :  { %2994 = vrot.lane.b32.xlu1 %v2992_v14, %s4915_s19 }
0x2a61   :  { %3069 = vrot.lane.b32.xlu0 %v3067_v28, %s4915_s19 }
0x2ad2   :  { %v2995_v16 = vpop.permute.xlu1 %2994 }
0x2ad3   :  { %v5764_v55 = vadd.f32 %v2995_v16, %v2987_v30  ;;  %v3070_v44 = vpop.permute.xlu0 %3069 }
0x2ad4   :  { %v5768_v47 = vadd.f32 %v3070_v44, %v3062_v48 }
0x2ad5   :  { %4723 = vtanh.f32 %v5764_v55 }
0x2ad6   :  { %4725 = vtanh.f32 %v5768_v47 }
0x2ad7   :  { %4727 = vpow2.f32 %v4265_v9 }
0x2ad8   :  { %4729 = vpow2.f32 %v4268_v40 }
0x2ae2   :  { %v4724_v52 = vpop.eup %4723 }
0x2ae3   :  { %3000 = vrot.lane.b32.xlu1 %v4724_v52, %s4915_s19  ;;  %v4726_v17 = vpop.eup %4725 }
0x2ae4   :  { %3075 = vrot.lane.b32.xlu0 %v4726_v17, %s4915_s19  ;;  %v4728_v12 = vpop.eup %4727 }
0x2ae5   :  { %v2981_v32 = vadd.f32 1.0, %v4728_v12  ;;  %v4730_v45 = vpop.eup %4729 }
0x2ae6   :  { %v3056_v57 = vadd.f32 1.0, %v4730_v45 }
0x2ae7   :  { %4731 = vrcp.f32 %v2981_v32 }
0x2ae8   :  { %4733 = vrcp.f32 %v3056_v57 }
0x2af4   :  { %v4732_v2 = vpop.eup %4731 }
0x2af5   :  { %v4734_v60 = vpop.eup %4733 }
0x2b55   :  { %v3001_v53 = vpop.permute.xlu1 %3000 }
0x2b56   :  { %v3003_v10 = vmul.f32 %v4732_v2, %v3001_v53  ;;  %v3076_v22 = vpop.permute.xlu0 %3075 }
0x2b57   :  { %v3078_v26 = vmul.f32 %v4734_v60, %v3076_v22 }
0x2b58   :  { %v3080_v38 = vpack.c.bf16 %v3003_v10, %v3003_v10 }
0x2b59   :  { %v3079_v13 = vpack.c.bf16 %v3078_v26, %v3078_v26 }
0x2b5a   :  { %4269 = vmatmul.mubr.msk.bf16.vlgmr.msra.gmra.mxu0 %vm128_vm0, %v3080_v38 }
0x2b5b   :  { %3212 = vmatpush1.bf16.msra.mxu0 %v5476_v21  ;;  %3235 = vmatprep.mubr.bf16.mxu0 %v4914_v0 }
0x2b5c   :  { %3213 = vmatprep.subr.bf16.mxu0 %v5478_v43  ;;  %4270 = vmatmul.mubr.msk.bf16.vlgmr.msra.gmra.mxu1 %vm128_vm0, %v3079_v13 }
0x2b5d   :  { %3290 = vmatpush1.bf16.msra.mxu1 %v5534_v23  ;;  %3313 = vmatprep.mubr.bf16.mxu1 %v4914_v0 }
0x2b5e   :  { %3291 = vmatprep.subr.bf16.mxu1 %v5538_v42 }
0x2b5f   :  { %3214 = vmatpush1.bf16.msra.mxu0 %v5482_v33 }
0x2b60   :  { %3215 = vmatprep.subr.bf16.mxu0 %v5486_v36 }
0x2b61   :  { %3292 = vmatpush1.bf16.msra.mxu1 %v5546_v20 }
0x2b62   :  { %3293 = vmatprep.subr.bf16.mxu1 %v5551_v39 }
0x2b63   :  { %3216 = vmatpush1.bf16.msra.mxu0 %v5489_v3 }
0x2b64   :  { %3217 = vmatprep.subr.bf16.mxu0 %v5492_v7 }
0x2b65   :  { %3294 = vmatpush1.bf16.msra.mxu1 %v5555_v49 }
0x2b66   :  { %3295 = vmatprep.subr.bf16.mxu1 %v5559_v56 }
0x2b67   :  { %3218 = vmatpush1.bf16.msra.mxu0 %v5495_v50 }
0x2b68   :  { %3333 = vmatprep.subr.bf16.mxu0 %v5532_v8 }
0x2b69   :  { %3296 = vmatpush1.bf16.msra.mxu1 %v5567_v6 }
0x2b6a   :  { %4273 = vmatmul.mubr.msk.bf16.vlgmr.msra.gmra.mxu0 %vm128_vm0, %v3079_v13  ;;  %3408 = vmatprep.subr.bf16.mxu1 %v5460_v1 }
0x2b6b   :  { %3334 = vmatpush1.bf16.msra.mxu0 %v5536_v11  ;;  %3357 = vmatprep.mubr.bf16.mxu0 %v4914_v0 }
0x2b6c   :  { %3335 = vmatprep.subr.bf16.mxu0 %v5542_v31 }
0x2b6f   :  { %3336 = vmatpush1.bf16.msra.mxu0 %v5548_v15 }
0x2b70   :  { %3337 = vmatprep.subr.bf16.mxu0 %v5569_v46 }
0x2b73   :  { %3338 = vmatpush1.bf16.msra.mxu0 %v5573_v25 }
0x2b74   :  { %3339 = vmatprep.subr.bf16.mxu0 %v5577_v63 }
0x2b77   :  { %3340 = vmatpush1.bf16.msra.mxu0 %v5579_v18 }
0x2b78   :  { %3486 = vmatprep.subr.bf16.mxu0 %v5530_v54  ;;  %v2228_v54 = vadd.f32 %v5632_v5, %v5520_v34 }
0x2c1a   :  { %v3118_v21 = vpop.f32.mrf.mxu0 }
0x2c1c   :  { %v3120_v43 = vpop.f32.mrf.mxu0  ;;  %v3162_v33 = vpop.f32.mrf.mxu1 }
0x2c1d   :  { %v3163_v36 = vadd.f32 %v3162_v33, %v3118_v21 }
0x2c1e   :  { %v3122_v1 = vpop.f32.mrf.mxu0  ;;  %v3164_v3 = vpop.f32.mrf.mxu1 }
0x2c1f   :  { %v3165_v50 = vadd.f32 %v3164_v3, %v3120_v43  ;;  %v3169_v40 = vadd.f32 %v3163_v36, %v5658_v51 }
0x2c20   :  { %v3123_v7 = vpop.f32.mrf.mxu0  ;;  %v3166_v4 = vpop.f32.mrf.mxu1 }
0x2c21   :  { %v3170_v14 = vadd.f32 %v3165_v50, %v5652_v37  ;;  %v4271_v12 = vmul.f32 -1.442695, %v3169_v40 }
0x2c22   :  { %v3167_v19 = vpop.f32.mrf.mxu1 }
0x2c23   :  { %4735 = vtanh.f32 %v3170_v14  ;;  %v4272_v7 = vmul.f32 -1.442695, %v3170_v14  ;;  %v5828_v14 = vld [vmem:[#allocation5 + $0x1e4] ss:$8 sps:$4 sm:$0xff]  }
0x2c2a   :  { %v3237_v28 = vpop.f32.mrf.mxu0 }
0x2c2b   :  { %v3244_v30 = vadd.f32 %v3237_v28, %v2226_v41 }
0x2c2c   :  { %v3239_v16 = vpop.f32.mrf.mxu0 }
0x2c2d   :  { %v3245_v48 = vadd.f32 %v3239_v16, %v2228_v54  ;;  %v4274_v35 = vmul.f32 -1.442695, %v3244_v30  ;;  %v5824_v16 = vld [vmem:[#allocation5 + $0x1f0] ss:$8 sps:$4 sm:$0xff]  }
0x2c2e   :  { %v3241_v44 = vpop.f32.mrf.mxu0 }
0x2c2f   :  { %4737 = vtanh.f32 %v3245_v48  ;;  %v5831_v44 = vld [vmem:[#allocation5 + $0x1e0] ss:$8 sps:$4 sm:$0xff]  }
0x2c30   :  { %v3242_v52 = vpop.f32.mrf.mxu0  ;;  %v4736_v17 = vpop.eup %4735  ;;  %4739 = vpow2.f32 %v4271_v12  ;;  %v5837_v12 = vld [vmem:[#allocation5 + $0x1d0] ss:$8 sps:$4 sm:$0xff]  }
0x2c31   :  { %3186 = vrot.lane.b32.xlu1 %v4736_v17, %s4915_s19  ;;  %4741 = vpow2.f32 %v4274_v35  ;;  %v5834_v17 = vld [vmem:[#allocation5 + $0x1d4] ss:$8 sps:$4 sm:$0xff]   ;;  %v5840_v35 = vld [vmem:[#allocation5 + $0x1c4] ss:$8 sps:$4 sm:$0xff]  }
0x2c3c   :  { %v4738_v9 = vpop.eup %4737 }
0x2c3d   :  { %3261 = vrot.lane.b32.xlu0 %v4738_v9, %s4915_s19  ;;  %v4740_v32 = vpop.eup %4739 }
0x2c3e   :  { %v3177_v5 = vadd.f32 1.0, %v4740_v32  ;;  %v4742_v45 = vpop.eup %4741  ;;  %v5847_v32 = vld [vmem:[#allocation5 + $0x1c0] ss:$8 sps:$4 sm:$0xff]  }
0x2c3f   :  { %v3252_v57 = vadd.f32 1.0, %v4742_v45 }
0x2c40   :  { %4743 = vrcp.f32 %v3177_v5  ;;  %v2232_v5 = vadd.f32 %v5636_v62, %v5520_v34 }
0x2c41   :  { %4745 = vrcp.f32 %v3252_v57 }
0x2c4d   :  { %v4744_v2 = vpop.eup %4743 }
0x2c4e   :  { %v4746_v38 = vpop.eup %4745  ;;  %v3184_v26 = vmul.f32 %v4744_v2, %v5764_v55  ;;  %v4275_v55 = vmul.f32 -1.442695, %v3245_v48 }
0x2c4f   :  { %v3259_v43 = vmul.f32 %v4746_v38, %v5768_v47 }
0x2ca3   :  { %v3187_v53 = vpop.permute.xlu1 %3186 }
0x2ca4   :  { %v3189_v10 = vmul.f32 %v4744_v2, %v3187_v53 }
0x2ca6   :  { %3191 = vrot.lane.b32.xlu1 %v3189_v10, %s4915_s19 }
0x2caf   :  { %v3262_v60 = vpop.permute.xlu0 %3261 }
0x2cb0   :  { %v3264_v22 = vmul.f32 %v4746_v38, %v3262_v60 }
0x2cb2   :  { %3266 = vrot.lane.b32.xlu0 %v3264_v22, %s4915_s19 }
0x2d18   :  { %v3192_v13 = vpop.permute.xlu1 %3191 }
0x2d19   :  { %v5814_v21 = vadd.f32 %v3192_v13, %v3184_v26 }
0x2d1b   :  { %4747 = vtanh.f32 %v5814_v21 }
0x2d24   :  { %v3267_v33 = vpop.permute.xlu0 %3266 }
0x2d25   :  { %v5818_v1 = vadd.f32 %v3267_v33, %v3259_v43 }
0x2d27   :  { %4749 = vtanh.f32 %v5818_v1 }
0x2d28   :  { %v4748_v36 = vpop.eup %4747  ;;  %4751 = vpow2.f32 %v4272_v7 }
0x2d29   :  { %3197 = vrot.lane.b32.xlu1 %v4748_v36, %s4915_s19  ;;  %4753 = vpow2.f32 %v4275_v55 }
0x2d34   :  { %v4750_v3 = vpop.eup %4749 }
0x2d35   :  { %3272 = vrot.lane.b32.xlu0 %v4750_v3, %s4915_s19  ;;  %v4752_v50 = vpop.eup %4751 }
0x2d36   :  { %v3178_v4 = vadd.f32 1.0, %v4752_v50  ;;  %v4754_v19 = vpop.eup %4753 }
0x2d37   :  { %v3253_v47 = vadd.f32 1.0, %v4754_v19 }
0x2d38   :  { %4755 = vrcp.f32 %v3178_v4 }
0x2d39   :  { %4757 = vrcp.f32 %v3253_v47 }
0x2d45   :  { %v4756_v41 = vpop.eup %4755 }
0x2d46   :  { %v4758_v48 = vpop.eup %4757 }
0x2d9b   :  { %v3198_v28 = vpop.permute.xlu1 %3197 }
0x2d9c   :  { %v3200_v54 = vmul.f32 %v4756_v41, %v3198_v28 }
0x2d9e   :  { %v3277_v30 = vpack.c.bf16 %v3200_v54, %v3200_v54 }
0x2da0   :  { %4276 = vmatmul.mubr.msk.bf16.vlgmr.msra.gmra.mxu1 %vm128_vm0, %v3277_v30 }
0x2da1   :  { %3409 = vmatpush1.bf16.msra.mxu1 %v5824_v16  ;;  %3432 = vmatprep.mubr.bf16.mxu1 %v4914_v0 }
0x2da2   :  { %3410 = vmatprep.subr.bf16.mxu1 %v5828_v14 }
0x2da5   :  { %3411 = vmatpush1.bf16.msra.mxu1 %v5831_v44 }
0x2da6   :  { %3412 = vmatprep.subr.bf16.mxu1 %v5834_v17 }
0x2da7   :  { %v3273_v52 = vpop.permute.xlu0 %3272 }
0x2da8   :  { %v3275_v9 = vmul.f32 %v4758_v48, %v3273_v52 }
0x2da9   :  { %3413 = vmatpush1.bf16.msra.mxu1 %v5837_v12 }
0x2daa   :  { %v3276_v40 = vpack.c.bf16 %v3275_v9, %v3275_v9  ;;  %3414 = vmatprep.subr.bf16.mxu1 %v5840_v35 }
0x2dac   :  { %4277 = vmatmul.mubr.msk.bf16.vlgmr.msra.gmra.mxu0 %vm128_vm0, %v3276_v40 }
0x2dad   :  { %3487 = vmatpush1.bf16.msra.mxu0 %v5534_v23  ;;  %3510 = vmatprep.mubr.bf16.mxu0 %v4914_v0  ;;  %v5868_v23 = vld [vmem:[#allocation5 + $0x274] ss:$8 sps:$4 sm:$0xff]  }
0x2dae   :  { %3488 = vmatprep.subr.bf16.mxu0 %v5538_v42  ;;  %3415 = vmatpush1.bf16.msra.mxu1 %v5847_v32 }
0x2daf   :  { %3530 = vmatprep.subr.bf16.mxu1 %v5532_v8  ;;  %v5862_v8 = vld [vmem:[#allocation5 + $0x1f4] ss:$8 sps:$4 sm:$0xff]  }
0x2db1   :  { %3489 = vmatpush1.bf16.msra.mxu0 %v5546_v20  ;;  %4280 = vmatmul.mubr.msk.bf16.vlgmr.msra.gmra.mxu1 %vm128_vm0, %v3276_v40 }
0x2db2   :  { %3490 = vmatprep.subr.bf16.mxu0 %v5551_v39  ;;  %3531 = vmatpush1.bf16.msra.mxu1 %v5536_v11 }
0x2db3   :  { %3554 = vmatprep.mubr.bf16.mxu1 %v4914_v0  ;;  %3532 = vmatprep.subr.bf16.mxu1 %v5542_v31 }
0x2db5   :  { %3491 = vmatpush1.bf16.msra.mxu0 %v5555_v49 }
0x2db6   :  { %3492 = vmatprep.subr.bf16.mxu0 %v5559_v56  ;;  %3533 = vmatpush1.bf16.msra.mxu1 %v5548_v15 }
0x2db7   :  { %3534 = vmatprep.subr.bf16.mxu1 %v5569_v46  ;;  %v2230_v46 = vadd.f32 %v5634_v59, %v5516_v29 }
0x2db9   :  { %3493 = vmatpush1.bf16.msra.mxu0 %v5567_v6 }
0x2dba   :  { %3605 = vmatprep.subr.bf16.mxu0 %v5862_v8  ;;  %3535 = vmatpush1.bf16.msra.mxu1 %v5573_v25 }
0x2dbb   :  { %3536 = vmatprep.subr.bf16.mxu1 %v5577_v63 }
0x2dbe   :  { %3537 = vmatpush1.bf16.msra.mxu1 %v5579_v18 }
0x2dbf   :  { %3683 = vmatprep.subr.bf16.mxu1 %v5868_v23 }
0x2e60   :  { %v3315_v11 = vpop.f32.mrf.mxu1 }
0x2e62   :  { %v3317_v42 = vpop.f32.mrf.mxu1 }
0x2e64   :  { %v3319_v31 = vpop.f32.mrf.mxu1 }
0x2e66   :  { %v3320_v20 = vpop.f32.mrf.mxu1 }
0x2e6c   :  { %v3359_v15 = vpop.f32.mrf.mxu0 }
0x2e6d   :  { %v3360_v39 = vadd.f32 %v3359_v15, %v3315_v11 }
0x2e6e   :  { %v3361_v49 = vpop.f32.mrf.mxu0 }
0x2e6f   :  { %v3362_v56 = vadd.f32 %v3361_v49, %v3317_v42  ;;  %v3366_v59 = vadd.f32 %v3360_v39, %v5658_v51 }
0x2e70   :  { %v3363_v6 = vpop.f32.mrf.mxu0 }
0x2e71   :  { %v3367_v25 = vadd.f32 %v3362_v56, %v5652_v37  ;;  %v3434_v63 = vpop.f32.mrf.mxu1  ;;  %v4278_v22 = vmul.f32 -1.442695, %v3366_v59  ;;  %v5938_v59 = vld [vmem:[#allocation5 + $0x214] ss:$8 sps:$4 sm:$0xff]  }
0x2e72   :  { %v3364_v18 = vpop.f32.mrf.mxu0  ;;  %v3441_v45 = vadd.f32 %v3434_v63, %v2230_v46  ;;  %v5901_v63 = vld [vmem:[#allocation5 + $0x264] ss:$8 sps:$4 sm:$0xff]  }
0x2e73   :  { %4759 = vtanh.f32 %v3367_v25  ;;  %v3436_v57 = vpop.f32.mrf.mxu1  ;;  %v4279_v9 = vmul.f32 -1.442695, %v3367_v25  ;;  %v5897_v25 = vld [vmem:[#allocation5 + $0x270] ss:$8 sps:$4 sm:$0xff]   ;;  %v5906_v18 = vld [vmem:[#allocation5 + $0x260] ss:$8 sps:$4 sm:$0xff]  }
0x2e74   :  { %v3442_v2 = vadd.f32 %v3436_v57, %v2232_v5  ;;  %v4281_v26 = vmul.f32 -1.442695, %v3441_v45  ;;  %v5910_v5 = vld [vmem:[#allocation5 + $0x254] ss:$8 sps:$4 sm:$0xff]   ;;  %v5914_v45 = vld [vmem:[#allocation5 + $0x250] ss:$8 sps:$4 sm:$0xff]  }
0x2e75   :  { %v3438_v53 = vpop.f32.mrf.mxu1  ;;  %v5917_v57 = vld [vmem:[#allocation5 + $0x244] ss:$8 sps:$4 sm:$0xff]  }
0x2e76   :  { %4761 = vtanh.f32 %v3442_v2  ;;  %v5924_v53 = vld [vmem:[#allocation5 + $0x240] ss:$8 sps:$4 sm:$0xff]  }
0x2e77   :  { %v3439_v10 = vpop.f32.mrf.mxu1  ;;  %4763 = vpow2.f32 %v4278_v22  ;;  %v5941_v22 = vld [vmem:[#allocation5 + $0x210] ss:$8 sps:$4 sm:$0xff]  }
0x2e78   :  { %4765 = vpow2.f32 %v4281_v26  ;;  %v5927_v10 = vld [vmem:[#allocation5 + $0x230] ss:$8 sps:$4 sm:$0xff]   ;;  %v5944_v26 = vld [vmem:[#allocation5 + $0x204] ss:$8 sps:$4 sm:$0xff]  }
0x2e80   :  { %v4760_v38 = vpop.eup %4759 }
0x2e81   :  { %3383 = vrot.lane.b32.xlu1 %v4760_v38, %s4915_s19  ;;  %v5931_v38 = vld [vmem:[#allocation5 + $0x224] ss:$8 sps:$4 sm:$0xff]  }
0x2e83   :  { %v4762_v60 = vpop.eup %4761 }
0x2e84   :  { %3458 = vrot.lane.b32.xlu0 %v4762_v60, %s4915_s19  ;;  %v4764_v62 = vpop.eup %4763  ;;  %v5935_v60 = vld [vmem:[#allocation5 + $0x220] ss:$8 sps:$4 sm:$0xff]  }
0x2e85   :  { %v3374_v13 = vadd.f32 1.0, %v4764_v62  ;;  %v4766_v43 = vpop.eup %4765 }
0x2e86   :  { %v3449_v33 = vadd.f32 1.0, %v4766_v43 }
0x2e87   :  { %4767 = vrcp.f32 %v3374_v13 }
0x2e88   :  { %4769 = vrcp.f32 %v3449_v33 }
0x2e94   :  { %v4768_v36 = vpop.eup %4767 }
0x2e95   :  { %v4770_v55 = vpop.eup %4769  ;;  %v3381_v19 = vmul.f32 %v4768_v36, %v5814_v21  ;;  %v4282_v21 = vmul.f32 -1.442695, %v3442_v2  ;;  %v5920_v2 = vld [vmem:[#allocation5 + $0x234] ss:$8 sps:$4 sm:$0xff]  }
0x2e96   :  { %v3456_v28 = vmul.f32 %v4770_v55, %v5818_v1 }
0x2ef3   :  { %v3384_v3 = vpop.permute.xlu1 %3383 }
0x2ef4   :  { %v3386_v7 = vmul.f32 %v4768_v36, %v3384_v3 }
0x2ef6   :  { %3388 = vrot.lane.b32.xlu1 %v3386_v7, %s4915_s19  ;;  %v3459_v50 = vpop.permute.xlu0 %3458 }
0x2ef7   :  { %v3461_v4 = vmul.f32 %v4770_v55, %v3459_v50 }
0x2ef9   :  { %3463 = vrot.lane.b32.xlu0 %v3461_v4, %s4915_s19 }
0x2f68   :  { %v3389_v47 = vpop.permute.xlu1 %3388 }
0x2f69   :  { %v5882_v41 = vadd.f32 %v3389_v47, %v3381_v19  ;;  %v2236_v47 = vadd.f32 %v5638_v27, %v5516_v29 }
0x2f6b   :  { %4771 = vtanh.f32 %v5882_v41  ;;  %v3464_v54 = vpop.permute.xlu0 %3463 }
0x2f6c   :  { %v5886_v30 = vadd.f32 %v3464_v54, %v3456_v28 }
0x2f6e   :  { %4773 = vtanh.f32 %v5886_v30 }
0x2f6f   :  { %4775 = vpow2.f32 %v4279_v9 }
0x2f70   :  { %4777 = vpow2.f32 %v4282_v21 }
0x2f78   :  { %v4772_v48 = vpop.eup %4771 }
0x2f79   :  { %3394 = vrot.lane.b32.xlu1 %v4772_v48, %s4915_s19 }
0x2f7b   :  { %v4774_v52 = vpop.eup %4773 }
0x2f7c   :  { %3469 = vrot.lane.b32.xlu0 %v4774_v52, %s4915_s19  ;;  %v4776_v40 = vpop.eup %4775 }
0x2f7d   :  { %v3375_v11 = vadd.f32 1.0, %v4776_v40  ;;  %v4778_v42 = vpop.eup %4777 }
0x2f7e   :  { %v3450_v1 = vadd.f32 1.0, %v4778_v42 }
0x2f7f   :  { %4779 = vrcp.f32 %v3375_v11 }
0x2f80   :  { %4781 = vrcp.f32 %v3450_v1 }
0x2f8c   :  { %v4780_v31 = vpop.eup %4779 }
0x2f8d   :  { %v4782_v49 = vpop.eup %4781 }
0x2feb   :  { %v3395_v20 = vpop.permute.xlu1 %3394 }
0x2fec   :  { %v3397_v15 = vmul.f32 %v4780_v31, %v3395_v20 }
0x2fee   :  { %v3474_v39 = vpack.c.bf16 %v3397_v15, %v3397_v15  ;;  %v3470_v56 = vpop.permute.xlu0 %3469 }
0x2fef   :  { %v3472_v6 = vmul.f32 %v4782_v49, %v3470_v56 }
0x2ff0   :  { %4283 = vmatmul.mubr.msk.bf16.vlgmr.msra.gmra.mxu0 %vm128_vm0, %v3474_v39 }
0x2ff1   :  { %3606 = vmatpush1.bf16.msra.mxu0 %v5824_v16  ;;  %3629 = vmatprep.mubr.bf16.mxu0 %v4914_v0  ;;  %v3473_v46 = vpack.c.bf16 %v3472_v6, %v3472_v6 }
0x2ff2   :  { %3607 = vmatprep.subr.bf16.mxu0 %v5828_v14 }
0x2ff3   :  { %4284 = vmatmul.mubr.msk.bf16.vlgmr.msra.gmra.mxu1 %vm128_vm0, %v3473_v46 }
0x2ff4   :  { %3684 = vmatpush1.bf16.msra.mxu1 %v5897_v25  ;;  %3707 = vmatprep.mubr.bf16.mxu1 %v4914_v0 }
0x2ff5   :  { %3608 = vmatpush1.bf16.msra.mxu0 %v5831_v44  ;;  %3685 = vmatprep.subr.bf16.mxu1 %v5901_v63 }
0x2ff6   :  { %3609 = vmatprep.subr.bf16.mxu0 %v5834_v17 }
0x2ff8   :  { %3686 = vmatpush1.bf16.msra.mxu1 %v5906_v18 }
0x2ff9   :  { %3610 = vmatpush1.bf16.msra.mxu0 %v5837_v12  ;;  %3687 = vmatprep.subr.bf16.mxu1 %v5910_v5 }
0x2ffa   :  { %3611 = vmatprep.subr.bf16.mxu0 %v5840_v35 }
0x2ffc   :  { %3688 = vmatpush1.bf16.msra.mxu1 %v5914_v45 }
0x2ffd   :  { %3612 = vmatpush1.bf16.msra.mxu0 %v5847_v32  ;;  %3689 = vmatprep.subr.bf16.mxu1 %v5917_v57 }
0x2ffe   :  { %3727 = vmatprep.subr.bf16.mxu0 %v5920_v2 }
0x3000   :  { %4287 = vmatmul.mubr.msk.bf16.vlgmr.msra.gmra.mxu0 %vm128_vm0, %v3473_v46  ;;  %3690 = vmatpush1.bf16.msra.mxu1 %v5924_v53 }
0x3001   :  { %3728 = vmatpush1.bf16.msra.mxu0 %v5927_v10  ;;  %3802 = vmatprep.subr.bf16.mxu1 %v5862_v8  ;;  %v5947_v8 = vld [vmem:[#allocation5 + $0x200] ss:$8 sps:$4 sm:$0xff]  }
0x3002   :  { %3729 = vmatprep.subr.bf16.mxu0 %v5931_v38  ;;  %3751 = vmatprep.mubr.bf16.mxu0 %v4914_v0 }
0x3005   :  { %3730 = vmatpush1.bf16.msra.mxu0 %v5935_v60 }
0x3006   :  { %3731 = vmatprep.subr.bf16.mxu0 %v5938_v59 }
0x3009   :  { %3732 = vmatpush1.bf16.msra.mxu0 %v5941_v22 }
0x300a   :  { %3733 = vmatprep.subr.bf16.mxu0 %v5944_v26 }
0x300d   :  { %3734 = vmatpush1.bf16.msra.mxu0 %v5947_v8 }
0x300e   :  { %3880 = vmatprep.subr.bf16.mxu0 %v5868_v23  ;;  %v2238_v23 = vadd.f32 %v5640_v61, %v5520_v34 }
0x30b0   :  { %v3512_v62 = vpop.f32.mrf.mxu0 }
0x30b2   :  { %v3514_v13 = vpop.f32.mrf.mxu0 }
0x30b3   :  { %v3556_v43 = vpop.f32.mrf.mxu1 }
0x30b4   :  { %v3516_v33 = vpop.f32.mrf.mxu0  ;;  %v3557_v36 = vadd.f32 %v3556_v43, %v3512_v62 }
0x30b5   :  { %v3558_v3 = vpop.f32.mrf.mxu1 }
0x30b6   :  { %v3517_v7 = vpop.f32.mrf.mxu0  ;;  %v3559_v55 = vadd.f32 %v3558_v3, %v3514_v13  ;;  %v3563_v42 = vadd.f32 %v3557_v36, %v5658_v51 }
0x30b7   :  { %v3560_v50 = vpop.f32.mrf.mxu1 }
0x30b8   :  { %v3564_v4 = vadd.f32 %v3559_v55, %v5652_v37  ;;  %v4285_v1 = vmul.f32 -1.442695, %v3563_v42 }
0x30b9   :  { %v3561_v19 = vpop.f32.mrf.mxu1 }
0x30ba   :  { %4783 = vtanh.f32 %v3564_v4  ;;  %v4286_v19 = vmul.f32 -1.442695, %v3564_v4 }
0x30c0   :  { %v3631_v28 = vpop.f32.mrf.mxu0 }
0x30c1   :  { %v3638_v54 = vadd.f32 %v3631_v28, %v2236_v47 }
0x30c2   :  { %v3633_v48 = vpop.f32.mrf.mxu0 }
0x30c3   :  { %v3639_v52 = vadd.f32 %v3633_v48, %v2238_v23  ;;  %v4288_v27 = vmul.f32 -1.442695, %v3638_v54 }
0x30c4   :  { %v3635_v9 = vpop.f32.mrf.mxu0 }
0x30c5   :  { %4785 = vtanh.f32 %v3639_v52 }
0x30c6   :  { %v3636_v21 = vpop.f32.mrf.mxu0  ;;  %4787 = vpow2.f32 %v4285_v1 }
0x30c7   :  { %v4784_v40 = vpop.eup %4783  ;;  %4789 = vpow2.f32 %v4288_v27 }
0x30c8   :  { %3580 = vrot.lane.b32.xlu1 %v4784_v40, %s4915_s19 }
0x30d2   :  { %v4786_v11 = vpop.eup %4785 }
0x30d3   :  { %3655 = vrot.lane.b32.xlu0 %v4786_v11, %s4915_s19  ;;  %v4788_v31 = vpop.eup %4787 }
0x30d4   :  { %v3571_v61 = vadd.f32 1.0, %v4788_v31  ;;  %v4790_v20 = vpop.eup %4789 }
0x30d5   :  { %v3646_v15 = vadd.f32 1.0, %v4790_v20 }
0x30d6   :  { %4791 = vrcp.f32 %v3571_v61 }
0x30d7   :  { %4793 = vrcp.f32 %v3646_v15 }
0x30e3   :  { %v4792_v39 = vpop.eup %4791 }
0x30e4   :  { %v4794_v6 = vpop.eup %4793  ;;  %v3578_v13 = vmul.f32 %v4792_v39, %v5882_v41  ;;  %v4289_v41 = vmul.f32 -1.442695, %v3639_v52 }
0x30e5   :  { %v3653_v36 = vmul.f32 %v4794_v6, %v5886_v30 }
0x313a   :  { %v3581_v49 = vpop.permute.xlu1 %3580 }
0x313b   :  { %v3583_v56 = vmul.f32 %v4792_v39, %v3581_v49 }
0x313d   :  { %3585 = vrot.lane.b32.xlu1 %v3583_v56, %s4915_s19 }
0x3145   :  { %v3656_v46 = vpop.permute.xlu0 %3655 }
0x3146   :  { %v3658_v62 = vmul.f32 %v4794_v6, %v3656_v46 }
0x3148   :  { %3660 = vrot.lane.b32.xlu0 %v3658_v62, %s4915_s19 }
0x31af   :  { %v3586_v43 = vpop.permute.xlu1 %3585 }
0x31b0   :  { %v5962_v33 = vadd.f32 %v3586_v43, %v3578_v13 }
0x31b2   :  { %4795 = vtanh.f32 %v5962_v33 }
0x31ba   :  { %v3661_v3 = vpop.permute.xlu0 %3660 }
0x31bb   :  { %v5966_v7 = vadd.f32 %v3661_v3, %v3653_v36 }
0x31bd   :  { %4797 = vtanh.f32 %v5966_v7 }
0x31be   :  { %4799 = vpow2.f32 %v4286_v19 }
0x31bf   :  { %v4796_v55 = vpop.eup %4795  ;;  %4801 = vpow2.f32 %v4289_v41 }
0x31c0   :  { %3591 = vrot.lane.b32.xlu1 %v4796_v55, %s4915_s19 }
0x31ca   :  { %v4798_v50 = vpop.eup %4797 }
0x31cb   :  { %3666 = vrot.lane.b32.xlu0 %v4798_v50, %s4915_s19  ;;  %v4800_v47 = vpop.eup %4799 }
0x31cc   :  { %v3572_v28 = vadd.f32 1.0, %v4800_v47  ;;  %v4802_v23 = vpop.eup %4801 }
0x31cd   :  { %v3647_v30 = vadd.f32 1.0, %v4802_v23 }
0x31ce   :  { %4803 = vrcp.f32 %v3572_v28 }
0x31cf   :  { %4805 = vrcp.f32 %v3647_v30 }
0x31db   :  { %v4804_v54 = vpop.eup %4803 }
0x31dc   :  { %v4806_v4 = vpop.eup %4805 }
0x3232   :  { %v3592_v48 = vpop.permute.xlu1 %3591 }
0x3233   :  { %v3594_v9 = vmul.f32 %v4804_v54, %v3592_v48 }
0x3235   :  { %v3671_v21 = vpack.c.bf16 %v3594_v9, %v3594_v9 }
0x3237   :  { %4290 = vmatmul.mubr.msk.bf16.vlgmr.msra.gmra.mxu1 %vm128_vm0, %v3671_v21 }
0x3238   :  { %3803 = vmatpush1.bf16.msra.mxu1 %v5824_v16  ;;  %3826 = vmatprep.mubr.bf16.mxu1 %v4914_v0 }
0x3239   :  { %3804 = vmatprep.subr.bf16.mxu1 %v5828_v14 }
0x323c   :  { %3805 = vmatpush1.bf16.msra.mxu1 %v5831_v44 }
0x323d   :  { %v3667_v52 = vpop.permute.xlu0 %3666  ;;  %3806 = vmatprep.subr.bf16.mxu1 %v5834_v17 }
0x323e   :  { %v3669_v40 = vmul.f32 %v4806_v4, %v3667_v52 }
0x3240   :  { %v3670_v11 = vpack.c.bf16 %v3669_v40, %v3669_v40  ;;  %3807 = vmatpush1.bf16.msra.mxu1 %v5837_v12 }
0x3241   :  { %3808 = vmatprep.subr.bf16.mxu1 %v5840_v35 }
0x3242   :  { %4291 = vmatmul.mubr.msk.bf16.vlgmr.msra.gmra.mxu0 %vm128_vm0, %v3670_v11 }
0x3243   :  { %3881 = vmatpush1.bf16.msra.mxu0 %v5897_v25  ;;  %3904 = vmatprep.mubr.bf16.mxu0 %v4914_v0 }
0x3244   :  { %3882 = vmatprep.subr.bf16.mxu0 %v5901_v63  ;;  %3809 = vmatpush1.bf16.msra.mxu1 %v5847_v32  ;;  %v2240_v63 = vadd.f32 %v5642_v24, %v5516_v29 }
0x3245   :  { %3924 = vmatprep.subr.bf16.mxu1 %v5920_v2 }
0x3247   :  { %3883 = vmatpush1.bf16.msra.mxu0 %v5906_v18  ;;  %4294 = vmatmul.mubr.msk.bf16.vlgmr.msra.gmra.mxu1 %vm128_vm0, %v3670_v11 }
0x3248   :  { %3884 = vmatprep.subr.bf16.mxu0 %v5910_v5  ;;  %3925 = vmatpush1.bf16.msra.mxu1 %v5927_v10 }
0x3249   :  { %3948 = vmatprep.mubr.bf16.mxu1 %v4914_v0  ;;  %3926 = vmatprep.subr.bf16.mxu1 %v5931_v38 }
0x324b   :  { %3885 = vmatpush1.bf16.msra.mxu0 %v5914_v45 }
0x324c   :  { %3886 = vmatprep.subr.bf16.mxu0 %v5917_v57  ;;  %3927 = vmatpush1.bf16.msra.mxu1 %v5935_v60  ;;  %v2242_v57 = vadd.f32 %v5644_v58, %v5520_v34 }
0x324d   :  { %3928 = vmatprep.subr.bf16.mxu1 %v5938_v59 }
0x324f   :  { %3887 = vmatpush1.bf16.msra.mxu0 %v5924_v53 }
0x3250   :  { %3929 = vmatpush1.bf16.msra.mxu1 %v5941_v22 }
0x3251   :  { %3930 = vmatprep.subr.bf16.mxu1 %v5944_v26 }
0x3254   :  { %3931 = vmatpush1.bf16.msra.mxu1 %v5947_v8 }
0x32f7   :  { %v3709_v16 = vpop.f32.mrf.mxu1 }
0x32f9   :  { %v3711_v0 = vpop.f32.mrf.mxu1 }
0x32fb   :  { %v3713_v14 = vpop.f32.mrf.mxu1 }
0x32fd   :  { %v3714_v44 = vpop.f32.mrf.mxu1 }
0x3302   :  { %v3753_v17 = vpop.f32.mrf.mxu0 }
0x3303   :  { %v3754_v12 = vadd.f32 %v3753_v17, %v3709_v16 }
0x3304   :  { %v3755_v35 = vpop.f32.mrf.mxu0 }
0x3305   :  { %v3756_v32 = vadd.f32 %v3755_v35, %v3711_v0  ;;  %v3760_v29 = vadd.f32 %v3754_v12, %v5658_v51 }
0x3306   :  { %v3757_v25 = vpop.f32.mrf.mxu0 }
0x3307   :  { %v3761_v18 = vadd.f32 %v3756_v32, %v5652_v37  ;;  %v3828_v5 = vpop.f32.mrf.mxu1  ;;  %v4292_v24 = vmul.f32 -1.442695, %v3760_v29 }
0x3308   :  { %v3758_v45 = vpop.f32.mrf.mxu0  ;;  %v3835_v2 = vadd.f32 %v3828_v5, %v2240_v63 }
0x3309   :  { %4807 = vtanh.f32 %v3761_v18  ;;  %v3830_v53 = vpop.f32.mrf.mxu1  ;;  %v4293_v36 = vmul.f32 -1.442695, %v3761_v18 }
0x330a   :  { %v3836_v10 = vadd.f32 %v3830_v53, %v2242_v57  ;;  %v4295_v26 = vmul.f32 -1.442695, %v3835_v2  ;;  %v4916_v57 = vmov 0.0   ;;  %v3994_v2 = vld [vmem:[%s6058_s3 + $0x28] sm:$0xff]  ;;  %v3993_v53 = vld [vmem:[%s6058_s3 + $0x20] sm:$0xff] }
0x330b   :  { %v3832_v38 = vpop.f32.mrf.mxu1  ;;  %4312 = vmatprep.subr.mxu0 %v4916_v57 }
0x330c   :  { %4809 = vtanh.f32 %v3836_v10  ;;  %v4296_v3 = vmul.f32 -1.442695, %v3836_v10  ;;  %v3992_v10 = vld [vmem:[%s6058_s3 + $0x18] sm:$0xff]  ;;  %v3991_v38 = vld [vmem:[%s6058_s3 + $0x10] sm:$0xff] }
0x330d   :  { %v3833_v60 = vpop.f32.mrf.mxu1  ;;  %4811 = vpow2.f32 %v4292_v24  ;;  %v3989_v24 = vld [vmem:[%s6058_s3] sm:$0xff] }
0x330e   :  { %4813 = vpow2.f32 %v4295_v26  ;;  %v3990_v60 = vld [vmem:[%s6058_s3 + $0x8] sm:$0xff] }
0x3316   :  { %v4808_v59 = vpop.eup %4807 }
0x3317   :  { %3777 = vrot.lane.b32.xlu1 %v4808_v59, %s4915_s19 }
0x3319   :  { %v4810_v22 = vpop.eup %4809 }
0x331a   :  { %3852 = vrot.lane.b32.xlu0 %v4810_v22, %s4915_s19  ;;  %v4812_v34 = vpop.eup %4811 }
0x331b   :  { %v3768_v58 = vadd.f32 1.0, %v4812_v34  ;;  %v4814_v8 = vpop.eup %4813 }
0x331c   :  { %v3843_v42 = vadd.f32 1.0, %v4814_v8 }
0x331d   :  { %4815 = vrcp.f32 %v3768_v58 }
0x331e   :  { %4817 = vrcp.f32 %v3843_v42 }
0x332a   :  { %v4816_v1 = vpop.eup %4815 }
0x332b   :  { %v4818_v61 = vpop.eup %4817  ;;  %v3775_v39 = vmul.f32 %v4816_v1, %v5962_v33 }
0x332c   :  { %v3850_v6 = vmul.f32 %v4818_v61, %v5966_v7 }
0x3389   :  { %v3778_v27 = vpop.permute.xlu1 %3777 }
0x338a   :  { %v3780_v31 = vmul.f32 %v4816_v1, %v3778_v27 }
0x338c   :  { %3782 = vrot.lane.b32.xlu1 %v3780_v31, %s4915_s19  ;;  %v3853_v20 = vpop.permute.xlu0 %3852  ;;  %v4301_v31 = vld [vmem:[%s6059_s4] ss:$0 sm:$0xff] }
0x338d   :  { %v3855_v15 = vmul.f32 %v4818_v61, %v3853_v20 }
0x338f   :  { %3857 = vrot.lane.b32.xlu0 %v3855_v15, %s4915_s19 }
0x33fe   :  { %v3783_v49 = vpop.permute.xlu1 %3782 }
0x33ff   :  { %v6010_v56 = vadd.f32 %v3783_v49, %v3775_v39 }
0x3401   :  { %4819 = vtanh.f32 %v6010_v56  ;;  %v3858_v46 = vpop.permute.xlu0 %3857 }
0x3402   :  { %v3860_v62 = vadd.f32 %v3858_v46, %v3850_v6 }
0x3404   :  { %4821 = vtanh.f32 %v3860_v62 }
0x3405   :  { %4823 = vpow2.f32 %v4293_v36 }
0x3406   :  { %4825 = vpow2.f32 %v4296_v3 }
0x340e   :  { %v4820_v13 = vpop.eup %4819 }
0x340f   :  { %3788 = vrot.lane.b32.xlu1 %v4820_v13, %s4915_s19 }
0x3411   :  { %v4822_v43 = vpop.eup %4821 }
0x3412   :  { %3863 = vrot.lane.b32.xlu0 %v4822_v43, %s4915_s19  ;;  %v4824_v33 = vpop.eup %4823 }
0x3413   :  { %v3769_v55 = vadd.f32 1.0, %v4824_v33  ;;  %v4826_v50 = vpop.eup %4825 }
0x3414   :  { %v3844_v19 = vadd.f32 1.0, %v4826_v50 }
0x3415   :  { %4827 = vrcp.f32 %v3769_v55 }
0x3416   :  { %4829 = vrcp.f32 %v3844_v19 }
0x3422   :  { %v4828_v7 = vpop.eup %4827 }
0x3423   :  { %v4830_v23 = vpop.eup %4829 }
0x3481   :  { %v3789_v41 = vpop.permute.xlu1 %3788 }
0x3482   :  { %v3791_v47 = vmul.f32 %v4828_v7, %v3789_v41 }
0x3484   :  { %v3868_v28 = vpack.c.bf16 %v3791_v47, %v3791_v47  ;;  %v3864_v30 = vpop.permute.xlu0 %3863 }
0x3485   :  { %v3866_v54 = vmul.f32 %v4830_v23, %v3864_v30 }
0x3486   :  { %4297 = vmatmul.mubr.msk.bf16.vlgmr.msra.gmra.mxu0 %vm128_vm0, %v3868_v28 }
0x3487   :  { %v3867_v48 = vpack.c.bf16 %v3866_v54, %v3866_v54  ;;  %4328 = vmatprep.mubr.msk.f32.mxu0 %vm4917_vm1, %v4916_v57 }
0x3489   :  { %4298 = vmatmul.mubr.msk.bf16.vlgmr.msra.gmra.mxu1 %vm128_vm0, %v3867_v48 }
0x3546   :  { %v3906_v9 = vpop.f32.mrf.mxu0 }
0x3548   :  { %v3908_v21 = vpop.f32.mrf.mxu0 }
0x3549   :  { %v3950_v4 = vpop.f32.mrf.mxu1 }
0x354a   :  { %v3910_v52 = vpop.f32.mrf.mxu0  ;;  %v3951_v40 = vadd.f32 %v3950_v4, %v3906_v9 }
0x354b   :  { %v3952_v11 = vpop.f32.mrf.mxu1 }
0x354c   :  { %v3911_v16 = vpop.f32.mrf.mxu0  ;;  %v3953_v0 = vadd.f32 %v3952_v11, %v3908_v21  ;;  %v3957_v35 = vadd.f32 %v3951_v40, %v5658_v51  ;;  %v3995_v51 = vld [vmem:[%s6058_s3 + $0x30] sm:$0xff] }
0x354d   :  { %v3954_v14 = vpop.f32.mrf.mxu1 }
0x354e   :  { %v3958_v44 = vadd.f32 %v3953_v0, %v5652_v37  ;;  %v4299_v32 = vmul.f32 -1.442695, %v3957_v35  ;;  %v3996_v37 = vld [vmem:[%s6058_s3 + $0x38] sm:$0xff]  ;;  %s4918_s3 = smov [#allocation8]  }
0x354f   :  { %v3955_v17 = vpop.f32.mrf.mxu1  ;;  %4313 = vmatpush3.msra.mxu0 %v3996_v37  ;;  %s4085_s23 = sshll.u32 %s4918_s3, 4  ;;  %s4086_s23 = int_to_ptr.vmem [resolvable:$true] %s4085_s23 }
0x3550   :  { %4831 = vtanh.f32 %v3958_v44  ;;  %4314 = vmatprep.subr.mxu0 %v4916_v57  ;;  %v4300_v34 = vmul.f32 -1.442695, %v3958_v44  ;;  %p4892_p6 = scmp.lt.s32.totalorder %s4086_s23, %s4086_s23 }
0x3551   :  { %4833 = vpow2.f32 %v4299_v32  ;;  %4315 = vmatpush3.msra.mxu0 %v3995_v51 }
0x3552   :  { %4316 = vmatprep.subr.mxu0 %v4916_v57 }
0x3553   :  { %4317 = vmatpush3.msra.mxu0 %v3994_v2 }
0x3554   :  { %4318 = vmatprep.subr.mxu0 %v4916_v57 }
0x3555   :  { %4319 = vmatpush3.msra.mxu0 %v3993_v53 }
0x3556   :  { %4320 = vmatprep.subr.mxu0 %v4916_v57 }
0x3557   :  { %4321 = vmatpush3.msra.mxu0 %v3992_v10 }
0x3558   :  { %4322 = vmatprep.subr.mxu0 %v4916_v57 }
0x3559   :  { %4323 = vmatpush3.msra.mxu0 %v3991_v38 }
0x355a   :  { %4324 = vmatprep.subr.mxu0 %v4916_v57 }
0x355b   :  { %4325 = vmatpush3.msra.mxu0 %v3990_v60 }
0x355c   :  { %4326 = vmatprep.subr.mxu0 %v4916_v57 }
0x355d   :  { %v4832_v12 = vpop.eup %4831  ;;  %4327 = vmatpush3.msra.mxu0 %v3989_v24 }
0x355e   :  { %3974 = vrot.lane.b32.xlu1 %v4832_v12, %s4915_s19  ;;  %v4834_v25 = vpop.eup %4833 }
0x355f   :  { %v3965_v63 = vadd.f32 1.0, %v4834_v25 }
0x3561   :  { %4835 = vrcp.f32 %v3965_v63 }
0x356e   :  { %v4836_v18 = vpop.eup %4835 }
0x356f   :  { %v3972_v59 = vmul.f32 %v4836_v18, %v6010_v56 }
0x35d0   :  { %v3975_v5 = vpop.permute.xlu1 %3974 }
0x35d1   :  { %v3977_v45 = vmul.f32 %v4836_v18, %v3975_v5 }
0x35d3   :  { %3979 = vrot.lane.b32.xlu0 %v3977_v45, %s4915_s19 }
0x3645   :  { %v3980_v22 = vpop.permute.xlu0 %3979 }
0x3646   :  { %v3982_v29 = vadd.f32 %v3980_v22, %v3972_v59 }
0x3648   :  { %4837 = vtanh.f32 %v3982_v29 }
0x3649   :  { %4839 = vpow2.f32 %v4300_v34 }
0x3655   :  { %v4838_v26 = vpop.eup %4837 }
0x3656   :  { %3985 = vrot.lane.b32.xlu1 %v4838_v26, %s4915_s19  ;;  %v4840_v58 = vpop.eup %4839  ;;  %s4887_s19 = scalar_lea.vmem %s4086_s23, 128 }
0x3657   :  { %v3966_v8 = vadd.f32 1.0, %v4840_v58  ;;  %p4888_p5 = scmp.ne.s32.totalorder %s4086_s23, %s4887_s19  ;;  %p4893_p7 = scmp.lt.s32.totalorder %s4887_s19, %s4887_s19 }
0x3659   :  { %4841 = vrcp.f32 %v3966_v8  ;;  %p4894_p8 = por %p4893_p7, %p4892_p6 }
0x365b   :  { %p4895_p9 = pnand %p4894_p8, %p4888_p5 }
0x3666   :  { %v4842_v42 = vpop.eup %4841 }
0x36c8   :  { %v3986_v1 = vpop.permute.xlu1 %3985 }
0x36c9   :  { %v3988_v27 = vmul.f32 %v4842_v42, %v3986_v1 }
0x36cb   :  { %4329 = vmatmul.mubr.msk.f32.vlgmr.msra.gmra.mxu0 %vm128_vm0, %v3988_v27 }
0x378b   :  { %v4073_v61 = vpop.f32.mrf.mxu0 }
0x378c   :  { %v4074_v20 = vadd.f32 %v4301_v31, %v4073_v61 }
0x378d   :  { %v4330_v15 = vpop.f32.mrf.mxu0 }
0x378e   :  { %4078 = vst.msk [vmem:[#allocation8] sm:$0xff] %vm4077_vm2, %v4074_v20 }
0x378f   :  { %4898 = shalt.err (!%p4895_p9)
}
0x3790   :  { %4088 = dma.vmem_to_hbm [thread:$0]  %s4086_s23, 128, %s6060_s5, [#allocation7]  }
0x3791   :  { %4909 = dma.done.wait [#allocation7], 128  }
0x3792   :  { %4910 = vsyncadd [#allocation7], 4294967168 }
0x3793   :  { %4092 = vsyncpa [#allocation6], 1 }
0x3794   :  { %4093 = vsyncpa [#allocation7], 1 }

</bundles_post_ra>
